<compile_context>
chip_gen: v5e
topology: v5e:2x2
jax: 0.10.0
libtpu: 0.0.40
codegen_flags: <defaults>
</compile_context>

<pallas_src>
import math
import jax
import jax.numpy as jnp
from jax.experimental import pallas as pl
from jax.experimental.pallas import tpu as pltpu

# ----------------------- model hyper-parameters (small) ----------------------
B          = 2
N          = [3, 8, 16, 16]     # channel plan (N[0] == 3 required by G_Net)
t          = [3, 3, 5]          # temporal kernel sizes
s          = [1, 1, 2]          # temporal strides
p          = [1, 1, 2]          # temporal paddings
T_SEQ      = 64                 # seq_len
F_SAMP     = 250.0              # sampling frequency F
EMB        = 16
MID        = 32
ICA        = 4
M_ENC      = 8                  # enc_in: electrode channels ("M")
H_HAR      = [2, 2]             # harmonics per Freq_Block
COMPRESS   = 4                  # squeeze-excite reduction
NFREQ      = 40                 # SSVEP stimulus frequencies (L = 40)
NUM_PERSON = 35

# derived time / sampling-rate plan (mirrors G_Net.__init__)
TS, FS = [], []
_tmp, _tmpF = T_SEQ, F_SAMP
for _i in range(len(N) - 1):
    TS.append(_tmp); FS.append(_tmpF)
    _new = 1 + int(math.floor((_tmp - t[_i] + 2 * p[_i]) / s[_i]))
    _tmpF = _tmpF / _tmp * _new
    _tmp = _new
TS.append(_tmp); FS.append(_tmpF)

T1, T2, T3 = TS[1], TS[2], TS[3]            # 64, 64, 32
C1, C2, C3 = N[1], N[2], N[3]               # 8, 16, 16
FLAT = N[-1] * TS[-1]                       # 16 * 32 = 512


# ------------------------------ fused Pallas kernel ---------------------------
def _fused_kernel(xin_ref, wpre_ref, bpre_ref, weff_ref, bchn_ref,
                  tab_ref, w1_ref, w2_ref, wc_ref,
                  wt_ref, btmp_ref, wdn_ref,
                  wfce_ref, bfc_ref, wattl_ref, battl_ref,
                  wcfc_ref, bcfc_ref,
                  o_ref,
                  xpre_buf, x2_buf):
    f32 = jnp.float32
    # zero the padded scratch once (padding columns must read as 0)
    xpre_buf[...] = jnp.zeros_like(xpre_buf)
    x2_buf[...] = jnp.zeros_like(x2_buf)

    for b in range(B):                                   # B == 2, fully unrolled
        # ------- stage 1: preprocess conv (1 x t0, pad p0) + ReLU -------------
        xr0 = b * N[0] * M_ENC                           # input rows  (24 / batch)
        pr0 = b * C1 * M_ENC                             # output rows (64 / batch)
        acc = jnp.dot(wpre_ref[0], xin_ref[xr0:xr0 + N[0] * M_ENC, 0:T1],
                      preferred_element_type=f32)
        for k in range(1, t[0]):
            acc += jnp.dot(wpre_ref[k], xin_ref[xr0:xr0 + N[0] * M_ENC, k:k + T1],
                           preferred_element_type=f32)
        xpre = jnp.maximum(acc + bpre_ref[...], 0.0)                 # (64, 64)
        xpre_buf[pr0:pr0 + C1 * M_ENC, p[1]:p[1] + T1] = xpre

        # ------- stage 2+3: person projection folded into chn conv + ReLU -----
        acc = jnp.dot(weff_ref[b * t[1] + 0], xpre_buf[pr0:pr0 + C1 * M_ENC, 0:T2],
                      preferred_element_type=f32)
        for k in range(1, t[1]):
            acc += jnp.dot(weff_ref[b * t[1] + k],
                           xpre_buf[pr0:pr0 + C1 * M_ENC, k:k + T2],
                           preferred_element_type=f32)
        x2 = jnp.maximum(acc + bchn_ref[...], 0.0)                   # (16, 64)

        # ------- Freq_Block 1 (CCA + SE gate) + residual relu(x + x*y) --------
        s1 = jnp.dot(x2, tab_ref[0], preferred_element_type=f32)     # (16, 40)
        s2 = jnp.dot(x2, tab_ref[1], preferred_element_type=f32)
        xy = s1 * s1 + s2 * s2
        ymean = jnp.mean(xy, axis=1, keepdims=True)                  # (16, 1)
        h = jnp.maximum(jnp.dot(w1_ref[0], ymean, preferred_element_type=f32), 0.0)
        ysc = jax.nn.sigmoid(jnp.dot(w2_ref[0], h, preferred_element_type=f32))
        x2r = jnp.maximum(x2 * (1.0 + ysc), 0.0)                     # fused residual
        mx = jnp.max(xy, axis=1, keepdims=True)
        ex = jnp.exp(xy - mx)
        sm = ex * pl.reciprocal(jnp.sum(ex, axis=1, keepdims=True), approx=True)
        att1 = jnp.dot(wc_ref[0], sm, preferred_element_type=f32)    # (1, 40)

        r2 = b * C2
        x2_buf[r2:r2 + C2, p[2]:p[2] + T2] = x2r

        # ------- tempo conv (stride 2, computed at full rate) + downsample ----
        acc = jnp.dot(wt_ref[0], x2_buf[r2:r2 + C2, 0:T2], preferred_element_type=f32)
        for k in range(1, t[2]):
            acc += jnp.dot(wt_ref[k], x2_buf[r2:r2 + C2, k:k + T2],
                           preferred_element_type=f32)
        xt = jnp.maximum(acc + btmp_ref[...], 0.0)                   # (16, 64)
        xd = jnp.dot(wdn_ref[...], x2_buf[r2:r2 + C2, p[2]:p[2] + T2],
                     preferred_element_type=f32)                     # (16, 64)

        # ------- Freq_Block 2 on even (stride-2) samples via zeroed tables ----
        s1 = jnp.dot(xt, tab_ref[2], preferred_element_type=f32)
        s2 = jnp.dot(xt, tab_ref[3], preferred_element_type=f32)
        xy2 = s1 * s1 + s2 * s2
        ymean2 = jnp.mean(xy2, axis=1, keepdims=True)
        h2 = jnp.maximum(jnp.dot(w1_ref[1], ymean2, preferred_element_type=f32), 0.0)
        ysc2 = jax.nn.sigmoid(jnp.dot(w2_ref[1], h2, preferred_element_type=f32))
        mx2 = jnp.max(xy2, axis=1, keepdims=True)
        ex2 = jnp.exp(xy2 - mx2)
        sm2 = ex2 * pl.reciprocal(jnp.sum(ex2, axis=1, keepdims=True), approx=True)
        att2 = jnp.dot(wc_ref[1], sm2, preferred_element_type=f32)   # (1, 40)

        # residual relu(x*y + downsample(x)); valid on even columns only,
        # odd columns are finite garbage that is zero-masked by wfce below.
        x3 = jnp.maximum(xt * ysc2 + xd, 0.0)                        # (16, 64)

        # ------- heads: fc_linear / att_linear / C_Net -------------------------
        xfc = bfc_ref[...]                                           # (1, 32)
        for c in range(C3):
            xfc = xfc + jnp.dot(x3[c:c + 1, :], wfce_ref[c],
                                preferred_element_type=f32)
        attfc = (battl_ref[...]
                 + jnp.dot(jnp.maximum(att1, 0.0), wattl_ref[0:NFREQ, :],
                           preferred_element_type=f32)
                 + jnp.dot(jnp.maximum(att2, 0.0), wattl_ref[NFREQ:2 * NFREQ, :],
                           preferred_element_type=f32))              # (1, 32)
        yrow = (bcfc_ref[...]
                + jnp.dot(jnp.maximum(xfc, 0.0), wcfc_ref[0:MID, :],
                          preferred_element_type=f32)
                + jnp.dot(jnp.maximum(attfc, 0.0), wcfc_ref[MID:2 * MID, :],
                          preferred_element_type=f32))               # (1, 40)
        o_ref[b:b + 1, :] = yrow


def _full_spec(shape):
    n = len(shape)
    return pl.BlockSpec(shape, lambda i, _n=n: (0,) * _n)


# ------------------------------- parameters -----------------------------------
def init_params(key):
    def nrm_init(k, shape, scale=0.1):
        k, sub = jax.random.split(k)
        return k, jax.random.normal(sub, shape, dtype=jnp.float32) * scale

    P = {}
    key, P["emb_w"]    = nrm_init(key, (NUM_PERSON, EMB), 1.0)
    key, P["idop_w"]   = nrm_init(key, (EMB, (M_ENC + 1) * ICA), 0.25)   # no bias
    key, P["pre_w"]    = nrm_init(key, (N[1], N[0], 1, t[0]), 0.3)
    key, P["pre_b"]    = nrm_init(key, (N[1],), 0.1)
    key, P["chn_w"]    = nrm_init(key, (N[2], N[1], ICA, t[1]), 0.15)
    key, P["chn_b"]    = nrm_init(key, (N[2],), 0.1)
    key, P["tempo_w"]  = nrm_init(key, (N[3], N[2], 1, t[2]), 0.15)
    key, P["tempo_b"]  = nrm_init(key, (N[3],), 0.1)
    key, P["down_w"]   = nrm_init(key, (N[3], N[2], 1, 1), 0.2)          # no bias
    key, P["fclin_w"]  = nrm_init(key, (FLAT, MID), 0.05)
    key, P["fclin_b"]  = nrm_init(key, (MID,), 0.05)
    key, P["attlin_w"] = nrm_init(key, (NFREQ * (len(t) - 1), MID), 0.05)
    key, P["attlin_b"] = nrm_init(key, (MID,), 0.05)
    key, P["cfc_w"]    = nrm_init(key, (2 * MID, NFREQ), 0.05)
    key, P["cfc_b"]    = nrm_init(key, (NFREQ,), 0.05)

    def freq_params(k, C, H):
        fp = {}
        k, fp["wy"] = nrm_init(k, (H,), 1.0)
        fp["wc"] = jnp.ones((C,), jnp.float32) / C
        k, fp["w1"] = nrm_init(k, (C // COMPRESS, C), 0.3)   # Linear(C, C//r)
        k, fp["w2"] = nrm_init(k, (C, C // COMPRESS), 0.3)   # Linear(C//r, C)
        return k, fp

    key, P["freq1"] = freq_params(key, N[2], H_HAR[0])       # chn_attention
    key, P["freq2"] = freq_params(key, N[3], H_HAR[1])       # tempo attention
    return P, key


# ---------------------- tiny JAX glue: fold params for the kernel -------------
def _cca_tables(TN, Fs, wy):
    f32 = jnp.float32
    freqs = jnp.linspace(8.0, 15.8, NFREQ)
    pos = jnp.arange(TN, dtype=f32)[:, None] / Fs                     # (TN, 1)
    harm = jnp.arange(1, wy.shape[0] + 1, dtype=f32)[:, None, None]   # (H, 1, 1)
    ang = 2.0 * math.pi * pos[None] * freqs[None, None] * harm        # (H, TN, F)
    ps = jnp.einsum('htf,h->tf', jnp.sin(ang), wy)                    # (TN, F)
    pc = jnp.einsum('htf,h->tf', jnp.cos(ang), wy)
    return ps, pc


def _build_kernel_inputs(P, x, ids):
    f32 = jnp.float32
    # nn.Embedding(35, emb, max_norm=1): gather + renorm (forward-equivalent)
    e = P["emb_w"][ids]
    nrm = jnp.linalg.norm(e, axis=1, keepdims=True)
    e = e * jnp.where(nrm > 1.0, 1.0 / (nrm + 1e-7), 1.0)
    pmat = (e @ P["idop_w"]).reshape(B, M_ENC + 1, ICA)               # (B, 9, 4)

    # fold the (x - mean, mean) concat into an effective 8-electrode projection
    peff = (pmat[:, :M_ENC, :]
            + (pmat[:, M_ENC:, :]
               - jnp.sum(pmat[:, :M_ENC, :], axis=1, keepdims=True)) / M_ENC)

    # fold person projection into the chn-combination conv weights
    weff = jnp.einsum('ocnk,bmn->bkocm', P["chn_w"], peff)            # (B,3,16,8,8)
    weff = weff.reshape(B * t[1], C2, C1 * M_ENC)

    # block-diagonal (over electrodes) preprocess conv weights
    eye_m = jnp.eye(M_ENC, dtype=f32)
    wpre = jnp.einsum('ock,mn->komcn', P["pre_w"][:, :, 0, :], eye_m)
    wpre = wpre.reshape(t[0], C1 * M_ENC, N[0] * M_ENC)
    bpre = jnp.repeat(P["pre_b"], M_ENC).reshape(C1 * M_ENC, 1)

    # input: rows = cin*8 + electrode, time padded for the first conv
    xin = jnp.pad(x.reshape(B, N[0] * M_ENC, T_SEQ), ((0, 0), (0, 0), (p[0], p[0])))
    xin = xin.reshape(B * N[0] * M_ENC, T_SEQ + 2 * p[0])

    bchn = P["chn_b"].reshape(C2, 1)

    # CCA tables; block-2 tables zero-interleaved so the stride-2 path stays
    # at full rate inside the kernel.
    ps1, pc1 = _cca_tables(T2, FS[2], P["freq1"]["wy"])
    ps2, pc2 = _cca_tables(T3, FS[2], P["freq2"]["wy"])
    ps2e = jnp.zeros((T2, NFREQ), f32).at[0::s[2], :].set(ps2)
    pc2e = jnp.zeros((T2, NFREQ), f32).at[0::s[2], :].set(pc2)
    tab = jnp.stack([ps1, pc1, ps2e, pc2e])                           # (4, 64, 40)

    w1s = jnp.stack([P["freq1"]["w1"], P["freq2"]["w1"]])             # (2, 4, 16)
    w2s = jnp.stack([P["freq1"]["w2"], P["freq2"]["w2"]])             # (2, 16, 4)
    wcs = jnp.stack([P["freq1"]["wc"].reshape(1, C2),
                     P["freq2"]["wc"].reshape(1, C3)])                # (2, 1, 16)

    wt = jnp.transpose(P["tempo_w"][:, :, 0, :], (2, 0, 1))           # (5, 16, 16)
    btmp = P["tempo_b"].reshape(C3, 1)
    wdn = P["down_w"].reshape(C3, C2)

    # fc_linear weights with zero rows at the odd (skipped) time positions
    wfce = jnp.zeros((C3, T2, MID), f32).at[:, 0::s[2], :].set(
        P["fclin_w"].reshape(C3, T3, MID))
    bfc = P["fclin_b"].reshape(1, MID)
    wattl = P["attlin_w"]
    battl = P["attlin_b"].reshape(1, MID)
    wcfc = P["cfc_w"]
    bcfc = P["cfc_b"].reshape(1, NFREQ)

    return (xin, wpre, bpre, weff, bchn, tab, w1s, w2s, wcs,
            wt, btmp, wdn, wfce, bfc, wattl, battl, wcfc, bcfc)


# ------------------------------- forward pass ---------------------------------
@jax.jit
def ssvep_forward(P, x, ids):
    ins = _build_kernel_inputs(P, x, ids)
    return pl.pallas_call(
        _fused_kernel,
        out_shape=jax.ShapeDtypeStruct((B, NFREQ), jnp.float32),
        grid=(1,),
        in_specs=[_full_spec(a.shape) for a in ins],
        out_specs=_full_spec((B, NFREQ)),
        scratch_shapes=[
            pltpu.VMEM((B * C1 * M_ENC, T1 + 2 * p[1]), jnp.float32),  # (128, 66)
            pltpu.VMEM((B * C2, T2 + 2 * p[2]), jnp.float32),          # (32, 68)
        ],
        compiler_params=pltpu.CompilerParams(
            dimension_semantics=("arbitrary",),
            vmem_limit_bytes=32 * 1024 * 1024),
    )(*ins)


# ---------------------------------- main ---------------------------------------
if __name__ == "__main__":
    key = jax.random.PRNGKey(0)
    params, key = init_params(key)
    key, kx, kid = jax.random.split(key, 3)
    x = jax.random.normal(kx, (B, N[0], M_ENC, T_SEQ), dtype=jnp.float32)
    ids = jax.random.randint(kid, (B,), 0, NUM_PERSON)

    y = ssvep_forward(params, x, ids)
    y = jax.block_until_ready(y)

    assert y.shape == (B, NFREQ), y.shape
    assert bool(jnp.all(jnp.isfinite(y)))
    print("KERNEL_OK")
</pallas_src>

<mosaic_0001>
module attributes {stable_mosaic.version = 11 : i64} {
  func.func @_fused_kernel(%arg0: i32, %arg1: memref<48x66xf32, #tpu.memory_space<vmem>>, %arg2: memref<3x64x24xf32, #tpu.memory_space<vmem>>, %arg3: memref<64x1xf32, #tpu.memory_space<vmem>>, %arg4: memref<6x16x64xf32, #tpu.memory_space<vmem>>, %arg5: memref<16x1xf32, #tpu.memory_space<vmem>>, %arg6: memref<4x64x40xf32, #tpu.memory_space<vmem>>, %arg7: memref<2x4x16xf32, #tpu.memory_space<vmem>>, %arg8: memref<2x16x4xf32, #tpu.memory_space<vmem>>, %arg9: memref<2x1x16xf32, #tpu.memory_space<vmem>>, %arg10: memref<5x16x16xf32, #tpu.memory_space<vmem>>, %arg11: memref<16x1xf32, #tpu.memory_space<vmem>>, %arg12: memref<16x16xf32, #tpu.memory_space<vmem>>, %arg13: memref<16x64x32xf32, #tpu.memory_space<vmem>>, %arg14: memref<1x32xf32, #tpu.memory_space<vmem>>, %arg15: memref<80x32xf32, #tpu.memory_space<vmem>>, %arg16: memref<1x32xf32, #tpu.memory_space<vmem>>, %arg17: memref<64x40xf32, #tpu.memory_space<vmem>>, %arg18: memref<1x40xf32, #tpu.memory_space<vmem>>, %arg19: memref<2x40xf32, #tpu.memory_space<vmem>>, %arg20: memref<128x66xf32, #tpu.memory_space<vmem>>, %arg21: memref<32x68xf32, #tpu.memory_space<vmem>>) attributes {dimension_semantics = [#tpu.dimension_semantics<arbitrary>], iteration_bounds = array<i64: 1>, scalar_prefetch = 0 : i64, scratch_operands = 2 : i64, tpu.core_type = #tpu.core_type<tc>, window_params = [{pipeline_mode = #tpu.pipeline_mode<synchronous>, transform_indices = @transform_0, window_bounds = array<i64: 48, 66>}, {pipeline_mode = #tpu.pipeline_mode<synchronous>, transform_indices = @transform_1, window_bounds = array<i64: 3, 64, 24>}, {pipeline_mode = #tpu.pipeline_mode<synchronous>, transform_indices = @transform_2, window_bounds = array<i64: 64, 1>}, {pipeline_mode = #tpu.pipeline_mode<synchronous>, transform_indices = @transform_3, window_bounds = array<i64: 6, 16, 64>}, {pipeline_mode = #tpu.pipeline_mode<synchronous>, transform_indices = @transform_4, window_bounds = array<i64: 16, 1>}, {pipeline_mode = #tpu.pipeline_mode<synchronous>, transform_indices = @transform_5, window_bounds = array<i64: 4, 64, 40>}, {pipeline_mode = #tpu.pipeline_mode<synchronous>, transform_indices = @transform_6, window_bounds = array<i64: 2, 4, 16>}, {pipeline_mode = #tpu.pipeline_mode<synchronous>, transform_indices = @transform_7, window_bounds = array<i64: 2, 16, 4>}, {pipeline_mode = #tpu.pipeline_mode<synchronous>, transform_indices = @transform_8, window_bounds = array<i64: 2, 1, 16>}, {pipeline_mode = #tpu.pipeline_mode<synchronous>, transform_indices = @transform_9, window_bounds = array<i64: 5, 16, 16>}, {pipeline_mode = #tpu.pipeline_mode<synchronous>, transform_indices = @transform_10, window_bounds = array<i64: 16, 1>}, {pipeline_mode = #tpu.pipeline_mode<synchronous>, transform_indices = @transform_11, window_bounds = array<i64: 16, 16>}, {pipeline_mode = #tpu.pipeline_mode<synchronous>, transform_indices = @transform_12, window_bounds = array<i64: 16, 64, 32>}, {pipeline_mode = #tpu.pipeline_mode<synchronous>, transform_indices = @transform_13, window_bounds = array<i64: 1, 32>}, {pipeline_mode = #tpu.pipeline_mode<synchronous>, transform_indices = @transform_14, window_bounds = array<i64: 80, 32>}, {pipeline_mode = #tpu.pipeline_mode<synchronous>, transform_indices = @transform_15, window_bounds = array<i64: 1, 32>}, {pipeline_mode = #tpu.pipeline_mode<synchronous>, transform_indices = @transform_16, window_bounds = array<i64: 64, 40>}, {pipeline_mode = #tpu.pipeline_mode<synchronous>, transform_indices = @transform_17, window_bounds = array<i64: 1, 40>}, {pipeline_mode = #tpu.pipeline_mode<synchronous>, transform_indices = @transform_18, window_bounds = array<i64: 2, 40>}]} {
    %cst = arith.constant 0.000000e+00 : f32
    %0 = vector.broadcast %cst : f32 to vector<128x66xf32>
    %c0 = arith.constant 0 : index
    %c0_0 = arith.constant 0 : index
    %1 = vector.load %arg20[%c0, %c0_0] : memref<128x66xf32, #tpu.memory_space<vmem>>, vector<128x66xf32>
    tpu.vector_store %arg20[%c0, %c0_0], %0 {strides = array<i32>} : memref<128x66xf32, #tpu.memory_space<vmem>>, vector<128x66xf32>,
    %cst_1 = arith.constant 0.000000e+00 : f32
    %2 = vector.broadcast %cst_1 : f32 to vector<32x68xf32>
    %c0_2 = arith.constant 0 : index
    %c0_3 = arith.constant 0 : index
    %3 = vector.load %arg21[%c0_2, %c0_3] : memref<32x68xf32, #tpu.memory_space<vmem>>, vector<32x68xf32>
    tpu.vector_store %arg21[%c0_2, %c0_3], %2 {strides = array<i32>} : memref<32x68xf32, #tpu.memory_space<vmem>>, vector<32x68xf32>,
    %c0_4 = arith.constant 0 : index
    %c0_5 = arith.constant 0 : index
    %c0_6 = arith.constant 0 : index
    %4 = vector.load %arg2[%c0_4, %c0_5, %c0_6] : memref<3x64x24xf32, #tpu.memory_space<vmem>>, vector<1x64x24xf32>
    %5 = vector.shape_cast %4 : vector<1x64x24xf32> to vector<64x24xf32>
    %c0_7 = arith.constant 0 : index
    %c0_8 = arith.constant 0 : index
    %6 = vector.load %arg1[%c0_7, %c0_8] : memref<48x66xf32, #tpu.memory_space<vmem>>, vector<24x64xf32>
    %cst_9 = arith.constant dense<0.000000e+00> : vector<64x64xf32>
    %7 = tpu.matmul %5, %6, %cst_9 {dimension_numbers = #tpu.dot_dimension_numbers<[1], [0], [0], [1], [0, 0, 1, 1], [], []>} : vector<64x24xf32>, vector<24x64xf32>, vector<64x64xf32> -> vector<64x64xf32>
    %c1 = arith.constant 1 : index
    %c0_10 = arith.constant 0 : index
    %c0_11 = arith.constant 0 : index
    %8 = vector.load %arg2[%c1, %c0_10, %c0_11] : memref<3x64x24xf32, #tpu.memory_space<vmem>>, vector<1x64x24xf32>
    %9 = vector.shape_cast %8 : vector<1x64x24xf32> to vector<64x24xf32>
    %c0_12 = arith.constant 0 : index
    %c1_13 = arith.constant 1 : index
    %10 = vector.load %arg1[%c0_12, %c1_13] : memref<48x66xf32, #tpu.memory_space<vmem>>, vector<24x64xf32>
    %cst_14 = arith.constant dense<0.000000e+00> : vector<64x64xf32>
    %11 = tpu.matmul %9, %10, %cst_14 {dimension_numbers = #tpu.dot_dimension_numbers<[1], [0], [0], [1], [0, 0, 1, 1], [], []>} : vector<64x24xf32>, vector<24x64xf32>, vector<64x64xf32> -> vector<64x64xf32>
    %12 = arith.addf %7, %11 : vector<64x64xf32>
    %c2 = arith.constant 2 : index
    %c0_15 = arith.constant 0 : index
    %c0_16 = arith.constant 0 : index
    %13 = vector.load %arg2[%c2, %c0_15, %c0_16] : memref<3x64x24xf32, #tpu.memory_space<vmem>>, vector<1x64x24xf32>
    %14 = vector.shape_cast %13 : vector<1x64x24xf32> to vector<64x24xf32>
    %c0_17 = arith.constant 0 : index
    %c2_18 = arith.constant 2 : index
    %15 = vector.load %arg1[%c0_17, %c2_18] : memref<48x66xf32, #tpu.memory_space<vmem>>, vector<24x64xf32>
    %cst_19 = arith.constant dense<0.000000e+00> : vector<64x64xf32>
    %16 = tpu.matmul %14, %15, %cst_19 {dimension_numbers = #tpu.dot_dimension_numbers<[1], [0], [0], [1], [0, 0, 1, 1], [], []>} : vector<64x24xf32>, vector<24x64xf32>, vector<64x64xf32> -> vector<64x64xf32>
    %17 = arith.addf %12, %16 : vector<64x64xf32>
    %c0_20 = arith.constant 0 : index
    %c0_21 = arith.constant 0 : index
    %18 = vector.load %arg3[%c0_20, %c0_21] : memref<64x1xf32, #tpu.memory_space<vmem>>, vector<64x1xf32>
    %19 = vector.broadcast %18 : vector<64x1xf32> to vector<64x64xf32>
    %20 = arith.addf %17, %19 : vector<64x64xf32>
    %cst_22 = arith.constant 0.000000e+00 : f32
    %21 = vector.broadcast %cst_22 : f32 to vector<64x64xf32>
    %22 = arith.maximumf %20, %21 : vector<64x64xf32>
    %c0_23 = arith.constant 0 : index
    %c1_24 = arith.constant 1 : index
    %23 = vector.load %arg20[%c0_23, %c1_24] : memref<128x66xf32, #tpu.memory_space<vmem>>, vector<64x64xf32>
    tpu.vector_store %arg20[%c0_23, %c1_24], %22 {strides = array<i32>} : memref<128x66xf32, #tpu.memory_space<vmem>>, vector<64x64xf32>,
    %c0_25 = arith.constant 0 : index
    %c0_26 = arith.constant 0 : index
    %c0_27 = arith.constant 0 : index
    %24 = vector.load %arg4[%c0_25, %c0_26, %c0_27] : memref<6x16x64xf32, #tpu.memory_space<vmem>>, vector<1x16x64xf32>
    %25 = vector.shape_cast %24 : vector<1x16x64xf32> to vector<16x64xf32>
    %c0_28 = arith.constant 0 : index
    %c0_29 = arith.constant 0 : index
    %26 = vector.load %arg20[%c0_28, %c0_29] : memref<128x66xf32, #tpu.memory_space<vmem>>, vector<64x64xf32>
    %cst_30 = arith.constant dense<0.000000e+00> : vector<16x64xf32>
    %27 = tpu.matmul %25, %26, %cst_30 {dimension_numbers = #tpu.dot_dimension_numbers<[1], [0], [0], [1], [0, 0, 1, 1], [], []>} : vector<16x64xf32>, vector<64x64xf32>, vector<16x64xf32> -> vector<16x64xf32>
    %c1_31 = arith.constant 1 : index
    %c0_32 = arith.constant 0 : index
    %c0_33 = arith.constant 0 : index
    %28 = vector.load %arg4[%c1_31, %c0_32, %c0_33] : memref<6x16x64xf32, #tpu.memory_space<vmem>>, vector<1x16x64xf32>
    %29 = vector.shape_cast %28 : vector<1x16x64xf32> to vector<16x64xf32>
    %c0_34 = arith.constant 0 : index
    %c1_35 = arith.constant 1 : index
    %30 = vector.load %arg20[%c0_34, %c1_35] : memref<128x66xf32, #tpu.memory_space<vmem>>, vector<64x64xf32>
    %cst_36 = arith.constant dense<0.000000e+00> : vector<16x64xf32>
    %31 = tpu.matmul %29, %30, %cst_36 {dimension_numbers = #tpu.dot_dimension_numbers<[1], [0], [0], [1], [0, 0, 1, 1], [], []>} : vector<16x64xf32>, vector<64x64xf32>, vector<16x64xf32> -> vector<16x64xf32>
    %32 = arith.addf %27, %31 : vector<16x64xf32>
    %c2_37 = arith.constant 2 : index
    %c0_38 = arith.constant 0 : index
    %c0_39 = arith.constant 0 : index
    %33 = vector.load %arg4[%c2_37, %c0_38, %c0_39] : memref<6x16x64xf32, #tpu.memory_space<vmem>>, vector<1x16x64xf32>
    %34 = vector.shape_cast %33 : vector<1x16x64xf32> to vector<16x64xf32>
    %c0_40 = arith.constant 0 : index
    %c2_41 = arith.constant 2 : index
    %35 = vector.load %arg20[%c0_40, %c2_41] : memref<128x66xf32, #tpu.memory_space<vmem>>, vector<64x64xf32>
    %cst_42 = arith.constant dense<0.000000e+00> : vector<16x64xf32>
    %36 = tpu.matmul %34, %35, %cst_42 {dimension_numbers = #tpu.dot_dimension_numbers<[1], [0], [0], [1], [0, 0, 1, 1], [], []>} : vector<16x64xf32>, vector<64x64xf32>, vector<16x64xf32> -> vector<16x64xf32>
    %37 = arith.addf %32, %36 : vector<16x64xf32>
    %c0_43 = arith.constant 0 : index
    %c0_44 = arith.constant 0 : index
    %38 = vector.load %arg5[%c0_43, %c0_44] : memref<16x1xf32, #tpu.memory_space<vmem>>, vector<16x1xf32>
    %39 = vector.broadcast %38 : vector<16x1xf32> to vector<16x64xf32>
    %40 = arith.addf %37, %39 : vector<16x64xf32>
    %cst_45 = arith.constant 0.000000e+00 : f32
    %41 = vector.broadcast %cst_45 : f32 to vector<16x64xf32>
    %42 = arith.maximumf %40, %41 : vector<16x64xf32>
    %c0_46 = arith.constant 0 : index
    %c0_47 = arith.constant 0 : index
    %c0_48 = arith.constant 0 : index
    %43 = vector.load %arg6[%c0_46, %c0_47, %c0_48] : memref<4x64x40xf32, #tpu.memory_space<vmem>>, vector<1x64x40xf32>
    %44 = vector.shape_cast %43 : vector<1x64x40xf32> to vector<64x40xf32>
    %cst_49 = arith.constant dense<0.000000e+00> : vector<16x40xf32>
    %45 = tpu.matmul %42, %44, %cst_49 {dimension_numbers = #tpu.dot_dimension_numbers<[1], [0], [0], [1], [0, 0, 1, 1], [], []>} : vector<16x64xf32>, vector<64x40xf32>, vector<16x40xf32> -> vector<16x40xf32>
    %c1_50 = arith.constant 1 : index
    %c0_51 = arith.constant 0 : index
    %c0_52 = arith.constant 0 : index
    %46 = vector.load %arg6[%c1_50, %c0_51, %c0_52] : memref<4x64x40xf32, #tpu.memory_space<vmem>>, vector<1x64x40xf32>
    %47 = vector.shape_cast %46 : vector<1x64x40xf32> to vector<64x40xf32>
    %cst_53 = arith.constant dense<0.000000e+00> : vector<16x40xf32>
    %48 = tpu.matmul %42, %47, %cst_53 {dimension_numbers = #tpu.dot_dimension_numbers<[1], [0], [0], [1], [0, 0, 1, 1], [], []>} : vector<16x64xf32>, vector<64x40xf32>, vector<16x40xf32> -> vector<16x40xf32>
    %49 = arith.mulf %45, %45 : vector<16x40xf32>
    %50 = arith.mulf %48, %48 : vector<16x40xf32>
    %51 = arith.addf %49, %50 : vector<16x40xf32>
    %cst_54 = arith.constant dense<0.000000e+00> : vector<16xf32>
    %52 = vector.multi_reduction <add>, %51, %cst_54 [1] : vector<16x40xf32> to vector<16xf32>
    %53 = vector.shape_cast %52 : vector<16xf32> to vector<16x1xf32>
    %cst_55 = arith.constant 4.000000e+01 : f32
    %54 = vector.broadcast %cst_55 : f32 to vector<16x1xf32>
    %55 = arith.divf %53, %54 : vector<16x1xf32>
    %c0_56 = arith.constant 0 : index
    %c0_57 = arith.constant 0 : index
    %c0_58 = arith.constant 0 : index
    %56 = vector.load %arg7[%c0_56, %c0_57, %c0_58] : memref<2x4x16xf32, #tpu.memory_space<vmem>>, vector<1x4x16xf32>
    %57 = vector.shape_cast %56 : vector<1x4x16xf32> to vector<4x16xf32>
    %cst_59 = arith.constant dense<0.000000e+00> : vector<4x1xf32>
    %58 = tpu.matmul %57, %55, %cst_59 {dimension_numbers = #tpu.dot_dimension_numbers<[1], [0], [0], [1], [0, 0, 1, 1], [], []>} : vector<4x16xf32>, vector<16x1xf32>, vector<4x1xf32> -> vector<4x1xf32>
    %cst_60 = arith.constant 0.000000e+00 : f32
    %59 = vector.broadcast %cst_60 : f32 to vector<4x1xf32>
    %60 = arith.maximumf %58, %59 : vector<4x1xf32>
    %c0_61 = arith.constant 0 : index
    %c0_62 = arith.constant 0 : index
    %c0_63 = arith.constant 0 : index
    %61 = vector.load %arg8[%c0_61, %c0_62, %c0_63] : memref<2x16x4xf32, #tpu.memory_space<vmem>>, vector<1x16x4xf32>
    %62 = vector.shape_cast %61 : vector<1x16x4xf32> to vector<16x4xf32>
    %cst_64 = arith.constant dense<0.000000e+00> : vector<16x1xf32>
    %63 = tpu.matmul %62, %60, %cst_64 {dimension_numbers = #tpu.dot_dimension_numbers<[1], [0], [0], [1], [0, 0, 1, 1], [], []>} : vector<16x4xf32>, vector<4x1xf32>, vector<16x1xf32> -> vector<16x1xf32>
    %64 = arith.negf %63 : vector<16x1xf32>
    %65 = math.exp %64 : vector<16x1xf32>
    %cst_65 = arith.constant 1.000000e+00 : f32
    %66 = vector.broadcast %cst_65 : f32 to vector<16x1xf32>
    %67 = arith.addf %66, %65 : vector<16x1xf32>
    %68 = arith.divf %66, %67 : vector<16x1xf32>
    %cst_66 = arith.constant 1.000000e+00 : f32
    %69 = vector.broadcast %cst_66 : f32 to vector<16x1xf32>
    %70 = arith.addf %69, %68 : vector<16x1xf32>
    %71 = vector.broadcast %70 : vector<16x1xf32> to vector<16x64xf32>
    %72 = arith.mulf %42, %71 : vector<16x64xf32>
    %cst_67 = arith.constant 0.000000e+00 : f32
    %73 = vector.broadcast %cst_67 : f32 to vector<16x64xf32>
    %74 = arith.maximumf %72, %73 : vector<16x64xf32>
    %cst_68 = arith.constant dense<0xFF800000> : vector<16xf32>
    %75 = vector.multi_reduction <maximumf>, %51, %cst_68 [1] : vector<16x40xf32> to vector<16xf32>
    %76 = vector.shape_cast %75 : vector<16xf32> to vector<16x1xf32>
    %77 = vector.broadcast %76 : vector<16x1xf32> to vector<16x40xf32>
    %78 = arith.subf %51, %77 : vector<16x40xf32>
    %79 = math.exp %78 : vector<16x40xf32>
    %cst_69 = arith.constant dense<0.000000e+00> : vector<16xf32>
    %80 = vector.multi_reduction <add>, %79, %cst_69 [1] : vector<16x40xf32> to vector<16xf32>
    %81 = vector.shape_cast %80 : vector<16xf32> to vector<16x1xf32>
    %82 = tpu.reciprocal %81 {approx = true} : vector<16x1xf32> -> vector<16x1xf32>
    %83 = vector.broadcast %82 : vector<16x1xf32> to vector<16x40xf32>
    %84 = arith.mulf %79, %83 : vector<16x40xf32>
    %c0_70 = arith.constant 0 : index
    %c0_71 = arith.constant 0 : index
    %c0_72 = arith.constant 0 : index
    %85 = vector.load %arg9[%c0_70, %c0_71, %c0_72] : memref<2x1x16xf32, #tpu.memory_space<vmem>>, vector<1x1x16xf32>
    %86 = vector.shape_cast %85 : vector<1x1x16xf32> to vector<1x16xf32>
    %cst_73 = arith.constant dense<0.000000e+00> : vector<1x40xf32>
    %87 = tpu.matmul %86, %84, %cst_73 {dimension_numbers = #tpu.dot_dimension_numbers<[1], [0], [0], [1], [0, 0, 1, 1], [], []>} : vector<1x16xf32>, vector<16x40xf32>, vector<1x40xf32> -> vector<1x40xf32>
    %c0_74 = arith.constant 0 : index
    %c2_75 = arith.constant 2 : index
    %88 = vector.load %arg21[%c0_74, %c2_75] : memref<32x68xf32, #tpu.memory_space<vmem>>, vector<16x64xf32>
    tpu.vector_store %arg21[%c0_74, %c2_75], %74 {strides = array<i32>} : memref<32x68xf32, #tpu.memory_space<vmem>>, vector<16x64xf32>,
    %c0_76 = arith.constant 0 : index
    %c0_77 = arith.constant 0 : index
    %c0_78 = arith.constant 0 : index
    %89 = vector.load %arg10[%c0_76, %c0_77, %c0_78] : memref<5x16x16xf32, #tpu.memory_space<vmem>>, vector<1x16x16xf32>
    %90 = vector.shape_cast %89 : vector<1x16x16xf32> to vector<16x16xf32>
    %c0_79 = arith.constant 0 : index
    %c0_80 = arith.constant 0 : index
    %91 = vector.load %arg21[%c0_79, %c0_80] : memref<32x68xf32, #tpu.memory_space<vmem>>, vector<16x64xf32>
    %cst_81 = arith.constant dense<0.000000e+00> : vector<16x64xf32>
    %92 = tpu.matmul %90, %91, %cst_81 {dimension_numbers = #tpu.dot_dimension_numbers<[1], [0], [0], [1], [0, 0, 1, 1], [], []>} : vector<16x16xf32>, vector<16x64xf32>, vector<16x64xf32> -> vector<16x64xf32>
    %c1_82 = arith.constant 1 : index
    %c0_83 = arith.constant 0 : index
    %c0_84 = arith.constant 0 : index
    %93 = vector.load %arg10[%c1_82, %c0_83, %c0_84] : memref<5x16x16xf32, #tpu.memory_space<vmem>>, vector<1x16x16xf32>
    %94 = vector.shape_cast %93 : vector<1x16x16xf32> to vector<16x16xf32>
    %c0_85 = arith.constant 0 : index
    %c1_86 = arith.constant 1 : index
    %95 = vector.load %arg21[%c0_85, %c1_86] : memref<32x68xf32, #tpu.memory_space<vmem>>, vector<16x64xf32>
    %cst_87 = arith.constant dense<0.000000e+00> : vector<16x64xf32>
    %96 = tpu.matmul %94, %95, %cst_87 {dimension_numbers = #tpu.dot_dimension_numbers<[1], [0], [0], [1], [0, 0, 1, 1], [], []>} : vector<16x16xf32>, vector<16x64xf32>, vector<16x64xf32> -> vector<16x64xf32>
    %97 = arith.addf %92, %96 : vector<16x64xf32>
    %c2_88 = arith.constant 2 : index
    %c0_89 = arith.constant 0 : index
    %c0_90 = arith.constant 0 : index
    %98 = vector.load %arg10[%c2_88, %c0_89, %c0_90] : memref<5x16x16xf32, #tpu.memory_space<vmem>>, vector<1x16x16xf32>
    %99 = vector.shape_cast %98 : vector<1x16x16xf32> to vector<16x16xf32>
    %c0_91 = arith.constant 0 : index
    %c2_92 = arith.constant 2 : index
    %100 = vector.load %arg21[%c0_91, %c2_92] : memref<32x68xf32, #tpu.memory_space<vmem>>, vector<16x64xf32>
    %cst_93 = arith.constant dense<0.000000e+00> : vector<16x64xf32>
    %101 = tpu.matmul %99, %100, %cst_93 {dimension_numbers = #tpu.dot_dimension_numbers<[1], [0], [0], [1], [0, 0, 1, 1], [], []>} : vector<16x16xf32>, vector<16x64xf32>, vector<16x64xf32> -> vector<16x64xf32>
    %102 = arith.addf %97, %101 : vector<16x64xf32>
    %c3 = arith.constant 3 : index
    %c0_94 = arith.constant 0 : index
    %c0_95 = arith.constant 0 : index
    %103 = vector.load %arg10[%c3, %c0_94, %c0_95] : memref<5x16x16xf32, #tpu.memory_space<vmem>>, vector<1x16x16xf32>
    %104 = vector.shape_cast %103 : vector<1x16x16xf32> to vector<16x16xf32>
    %c0_96 = arith.constant 0 : index
    %c3_97 = arith.constant 3 : index
    %105 = vector.load %arg21[%c0_96, %c3_97] : memref<32x68xf32, #tpu.memory_space<vmem>>, vector<16x64xf32>
    %cst_98 = arith.constant dense<0.000000e+00> : vector<16x64xf32>
    %106 = tpu.matmul %104, %105, %cst_98 {dimension_numbers = #tpu.dot_dimension_numbers<[1], [0], [0], [1], [0, 0, 1, 1], [], []>} : vector<16x16xf32>, vector<16x64xf32>, vector<16x64xf32> -> vector<16x64xf32>
    %107 = arith.addf %102, %106 : vector<16x64xf32>
    %c4 = arith.constant 4 : index
    %c0_99 = arith.constant 0 : index
    %c0_100 = arith.constant 0 : index
    %108 = vector.load %arg10[%c4, %c0_99, %c0_100] : memref<5x16x16xf32, #tpu.memory_space<vmem>>, vector<1x16x16xf32>
    %109 = vector.shape_cast %108 : vector<1x16x16xf32> to vector<16x16xf32>
    %c0_101 = arith.constant 0 : index
    %c4_102 = arith.constant 4 : index
    %110 = vector.load %arg21[%c0_101, %c4_102] : memref<32x68xf32, #tpu.memory_space<vmem>>, vector<16x64xf32>
    %cst_103 = arith.constant dense<0.000000e+00> : vector<16x64xf32>
    %111 = tpu.matmul %109, %110, %cst_103 {dimension_numbers = #tpu.dot_dimension_numbers<[1], [0], [0], [1], [0, 0, 1, 1], [], []>} : vector<16x16xf32>, vector<16x64xf32>, vector<16x64xf32> -> vector<16x64xf32>
    %112 = arith.addf %107, %111 : vector<16x64xf32>
    %c0_104 = arith.constant 0 : index
    %c0_105 = arith.constant 0 : index
    %113 = vector.load %arg11[%c0_104, %c0_105] : memref<16x1xf32, #tpu.memory_space<vmem>>, vector<16x1xf32>
    %114 = vector.broadcast %113 : vector<16x1xf32> to vector<16x64xf32>
    %115 = arith.addf %112, %114 : vector<16x64xf32>
    %cst_106 = arith.constant 0.000000e+00 : f32
    %116 = vector.broadcast %cst_106 : f32 to vector<16x64xf32>
    %117 = arith.maximumf %115, %116 : vector<16x64xf32>
    %c0_107 = arith.constant 0 : index
    %c0_108 = arith.constant 0 : index
    %118 = vector.load %arg12[%c0_107, %c0_108] : memref<16x16xf32, #tpu.memory_space<vmem>>, vector<16x16xf32>
    %c0_109 = arith.constant 0 : index
    %c2_110 = arith.constant 2 : index
    %119 = vector.load %arg21[%c0_109, %c2_110] : memref<32x68xf32, #tpu.memory_space<vmem>>, vector<16x64xf32>
    %cst_111 = arith.constant dense<0.000000e+00> : vector<16x64xf32>
    %120 = tpu.matmul %118, %119, %cst_111 {dimension_numbers = #tpu.dot_dimension_numbers<[1], [0], [0], [1], [0, 0, 1, 1], [], []>} : vector<16x16xf32>, vector<16x64xf32>, vector<16x64xf32> -> vector<16x64xf32>
    %c2_112 = arith.constant 2 : index
    %c0_113 = arith.constant 0 : index
    %c0_114 = arith.constant 0 : index
    %121 = vector.load %arg6[%c2_112, %c0_113, %c0_114] : memref<4x64x40xf32, #tpu.memory_space<vmem>>, vector<1x64x40xf32>
    %122 = vector.shape_cast %121 : vector<1x64x40xf32> to vector<64x40xf32>
    %cst_115 = arith.constant dense<0.000000e+00> : vector<16x40xf32>
    %123 = tpu.matmul %117, %122, %cst_115 {dimension_numbers = #tpu.dot_dimension_numbers<[1], [0], [0], [1], [0, 0, 1, 1], [], []>} : vector<16x64xf32>, vector<64x40xf32>, vector<16x40xf32> -> vector<16x40xf32>
    %c3_116 = arith.constant 3 : index
    %c0_117 = arith.constant 0 : index
    %c0_118 = arith.constant 0 : index
    %124 = vector.load %arg6[%c3_116, %c0_117, %c0_118] : memref<4x64x40xf32, #tpu.memory_space<vmem>>, vector<1x64x40xf32>
    %125 = vector.shape_cast %124 : vector<1x64x40xf32> to vector<64x40xf32>
    %cst_119 = arith.constant dense<0.000000e+00> : vector<16x40xf32>
    %126 = tpu.matmul %117, %125, %cst_119 {dimension_numbers = #tpu.dot_dimension_numbers<[1], [0], [0], [1], [0, 0, 1, 1], [], []>} : vector<16x64xf32>, vector<64x40xf32>, vector<16x40xf32> -> vector<16x40xf32>
    %127 = arith.mulf %123, %123 : vector<16x40xf32>
    %128 = arith.mulf %126, %126 : vector<16x40xf32>
    %129 = arith.addf %127, %128 : vector<16x40xf32>
    %cst_120 = arith.constant dense<0.000000e+00> : vector<16xf32>
    %130 = vector.multi_reduction <add>, %129, %cst_120 [1] : vector<16x40xf32> to vector<16xf32>
    %131 = vector.shape_cast %130 : vector<16xf32> to vector<16x1xf32>
    %cst_121 = arith.constant 4.000000e+01 : f32
    %132 = vector.broadcast %cst_121 : f32 to vector<16x1xf32>
    %133 = arith.divf %131, %132 : vector<16x1xf32>
    %c1_122 = arith.constant 1 : index
    %c0_123 = arith.constant 0 : index
    %c0_124 = arith.constant 0 : index
    %134 = vector.load %arg7[%c1_122, %c0_123, %c0_124] : memref<2x4x16xf32, #tpu.memory_space<vmem>>, vector<1x4x16xf32>
    %135 = vector.shape_cast %134 : vector<1x4x16xf32> to vector<4x16xf32>
    %cst_125 = arith.constant dense<0.000000e+00> : vector<4x1xf32>
    %136 = tpu.matmul %135, %133, %cst_125 {dimension_numbers = #tpu.dot_dimension_numbers<[1], [0], [0], [1], [0, 0, 1, 1], [], []>} : vector<4x16xf32>, vector<16x1xf32>, vector<4x1xf32> -> vector<4x1xf32>
    %cst_126 = arith.constant 0.000000e+00 : f32
    %137 = vector.broadcast %cst_126 : f32 to vector<4x1xf32>
    %138 = arith.maximumf %136, %137 : vector<4x1xf32>
    %c1_127 = arith.constant 1 : index
    %c0_128 = arith.constant 0 : index
    %c0_129 = arith.constant 0 : index
    %139 = vector.load %arg8[%c1_127, %c0_128, %c0_129] : memref<2x16x4xf32, #tpu.memory_space<vmem>>, vector<1x16x4xf32>
    %140 = vector.shape_cast %139 : vector<1x16x4xf32> to vector<16x4xf32>
    %cst_130 = arith.constant dense<0.000000e+00> : vector<16x1xf32>
    %141 = tpu.matmul %140, %138, %cst_130 {dimension_numbers = #tpu.dot_dimension_numbers<[1], [0], [0], [1], [0, 0, 1, 1], [], []>} : vector<16x4xf32>, vector<4x1xf32>, vector<16x1xf32> -> vector<16x1xf32>
    %142 = arith.negf %141 : vector<16x1xf32>
    %143 = math.exp %142 : vector<16x1xf32>
    %cst_131 = arith.constant 1.000000e+00 : f32
    %144 = vector.broadcast %cst_131 : f32 to vector<16x1xf32>
    %145 = arith.addf %144, %143 : vector<16x1xf32>
    %146 = arith.divf %144, %145 : vector<16x1xf32>
    %cst_132 = arith.constant dense<0xFF800000> : vector<16xf32>
    %147 = vector.multi_reduction <maximumf>, %129, %cst_132 [1] : vector<16x40xf32> to vector<16xf32>
    %148 = vector.shape_cast %147 : vector<16xf32> to vector<16x1xf32>
    %149 = vector.broadcast %148 : vector<16x1xf32> to vector<16x40xf32>
    %150 = arith.subf %129, %149 : vector<16x40xf32>
    %151 = math.exp %150 : vector<16x40xf32>
    %cst_133 = arith.constant dense<0.000000e+00> : vector<16xf32>
    %152 = vector.multi_reduction <add>, %151, %cst_133 [1] : vector<16x40xf32> to vector<16xf32>
    %153 = vector.shape_cast %152 : vector<16xf32> to vector<16x1xf32>
    %154 = tpu.reciprocal %153 {approx = true} : vector<16x1xf32> -> vector<16x1xf32>
    %155 = vector.broadcast %154 : vector<16x1xf32> to vector<16x40xf32>
    %156 = arith.mulf %151, %155 : vector<16x40xf32>
    %c1_134 = arith.constant 1 : index
    %c0_135 = arith.constant 0 : index
    %c0_136 = arith.constant 0 : index
    %157 = vector.load %arg9[%c1_134, %c0_135, %c0_136] : memref<2x1x16xf32, #tpu.memory_space<vmem>>, vector<1x1x16xf32>
    %158 = vector.shape_cast %157 : vector<1x1x16xf32> to vector<1x16xf32>
    %cst_137 = arith.constant dense<0.000000e+00> : vector<1x40xf32>
    %159 = tpu.matmul %158, %156, %cst_137 {dimension_numbers = #tpu.dot_dimension_numbers<[1], [0], [0], [1], [0, 0, 1, 1], [], []>} : vector<1x16xf32>, vector<16x40xf32>, vector<1x40xf32> -> vector<1x40xf32>
    %160 = vector.broadcast %146 : vector<16x1xf32> to vector<16x64xf32>
    %161 = arith.mulf %117, %160 : vector<16x64xf32>
    %162 = arith.addf %161, %120 : vector<16x64xf32>
    %cst_138 = arith.constant 0.000000e+00 : f32
    %163 = vector.broadcast %cst_138 : f32 to vector<16x64xf32>
    %164 = arith.maximumf %162, %163 : vector<16x64xf32>
    %c0_139 = arith.constant 0 : index
    %c0_140 = arith.constant 0 : index
    %165 = vector.load %arg14[%c0_139, %c0_140] : memref<1x32xf32, #tpu.memory_space<vmem>>, vector<1x32xf32>
    %166 = vector.extract_strided_slice %164 {offsets = [0, 0], sizes = [1, 64], strides = [1, 1]} : vector<16x64xf32> to vector<1x64xf32>
    %c0_141 = arith.constant 0 : index
    %c0_142 = arith.constant 0 : index
    %c0_143 = arith.constant 0 : index
    %167 = vector.load %arg13[%c0_141, %c0_142, %c0_143] : memref<16x64x32xf32, #tpu.memory_space<vmem>>, vector<1x64x32xf32>
    %168 = vector.shape_cast %167 : vector<1x64x32xf32> to vector<64x32xf32>
    %cst_144 = arith.constant dense<0.000000e+00> : vector<1x32xf32>
    %169 = tpu.matmul %166, %168, %cst_144 {dimension_numbers = #tpu.dot_dimension_numbers<[1], [0], [0], [1], [0, 0, 1, 1], [], []>} : vector<1x64xf32>, vector<64x32xf32>, vector<1x32xf32> -> vector<1x32xf32>
    %170 = arith.addf %165, %169 : vector<1x32xf32>
    %171 = vector.extract_strided_slice %164 {offsets = [1, 0], sizes = [1, 64], strides = [1, 1]} : vector<16x64xf32> to vector<1x64xf32>
    %c1_145 = arith.constant 1 : index
    %c0_146 = arith.constant 0 : index
    %c0_147 = arith.constant 0 : index
    %172 = vector.load %arg13[%c1_145, %c0_146, %c0_147] : memref<16x64x32xf32, #tpu.memory_space<vmem>>, vector<1x64x32xf32>
    %173 = vector.shape_cast %172 : vector<1x64x32xf32> to vector<64x32xf32>
    %cst_148 = arith.constant dense<0.000000e+00> : vector<1x32xf32>
    %174 = tpu.matmul %171, %173, %cst_148 {dimension_numbers = #tpu.dot_dimension_numbers<[1], [0], [0], [1], [0, 0, 1, 1], [], []>} : vector<1x64xf32>, vector<64x32xf32>, vector<1x32xf32> -> vector<1x32xf32>
    %175 = arith.addf %170, %174 : vector<1x32xf32>
    %176 = vector.extract_strided_slice %164 {offsets = [2, 0], sizes = [1, 64], strides = [1, 1]} : vector<16x64xf32> to vector<1x64xf32>
    %c2_149 = arith.constant 2 : index
    %c0_150 = arith.constant 0 : index
    %c0_151 = arith.constant 0 : index
    %177 = vector.load %arg13[%c2_149, %c0_150, %c0_151] : memref<16x64x32xf32, #tpu.memory_space<vmem>>, vector<1x64x32xf32>
    %178 = vector.shape_cast %177 : vector<1x64x32xf32> to vector<64x32xf32>
    %cst_152 = arith.constant dense<0.000000e+00> : vector<1x32xf32>
    %179 = tpu.matmul %176, %178, %cst_152 {dimension_numbers = #tpu.dot_dimension_numbers<[1], [0], [0], [1], [0, 0, 1, 1], [], []>} : vector<1x64xf32>, vector<64x32xf32>, vector<1x32xf32> -> vector<1x32xf32>
    %180 = arith.addf %175, %179 : vector<1x32xf32>
    %181 = vector.extract_strided_slice %164 {offsets = [3, 0], sizes = [1, 64], strides = [1, 1]} : vector<16x64xf32> to vector<1x64xf32>
    %c3_153 = arith.constant 3 : index
    %c0_154 = arith.constant 0 : index
    %c0_155 = arith.constant 0 : index
    %182 = vector.load %arg13[%c3_153, %c0_154, %c0_155] : memref<16x64x32xf32, #tpu.memory_space<vmem>>, vector<1x64x32xf32>
    %183 = vector.shape_cast %182 : vector<1x64x32xf32> to vector<64x32xf32>
    %cst_156 = arith.constant dense<0.000000e+00> : vector<1x32xf32>
    %184 = tpu.matmul %181, %183, %cst_156 {dimension_numbers = #tpu.dot_dimension_numbers<[1], [0], [0], [1], [0, 0, 1, 1], [], []>} : vector<1x64xf32>, vector<64x32xf32>, vector<1x32xf32> -> vector<1x32xf32>
    %185 = arith.addf %180, %184 : vector<1x32xf32>
    %186 = vector.extract_strided_slice %164 {offsets = [4, 0], sizes = [1, 64], strides = [1, 1]} : vector<16x64xf32> to vector<1x64xf32>
    %c4_157 = arith.constant 4 : index
    %c0_158 = arith.constant 0 : index
    %c0_159 = arith.constant 0 : index
    %187 = vector.load %arg13[%c4_157, %c0_158, %c0_159] : memref<16x64x32xf32, #tpu.memory_space<vmem>>, vector<1x64x32xf32>
    %188 = vector.shape_cast %187 : vector<1x64x32xf32> to vector<64x32xf32>
    %cst_160 = arith.constant dense<0.000000e+00> : vector<1x32xf32>
    %189 = tpu.matmul %186, %188, %cst_160 {dimension_numbers = #tpu.dot_dimension_numbers<[1], [0], [0], [1], [0, 0, 1, 1], [], []>} : vector<1x64xf32>, vector<64x32xf32>, vector<1x32xf32> -> vector<1x32xf32>
    %190 = arith.addf %185, %189 : vector<1x32xf32>
    %191 = vector.extract_strided_slice %164 {offsets = [5, 0], sizes = [1, 64], strides = [1, 1]} : vector<16x64xf32> to vector<1x64xf32>
    %c5 = arith.constant 5 : index
    %c0_161 = arith.constant 0 : index
    %c0_162 = arith.constant 0 : index
    %192 = vector.load %arg13[%c5, %c0_161, %c0_162] : memref<16x64x32xf32, #tpu.memory_space<vmem>>, vector<1x64x32xf32>
    %193 = vector.shape_cast %192 : vector<1x64x32xf32> to vector<64x32xf32>
    %cst_163 = arith.constant dense<0.000000e+00> : vector<1x32xf32>
    %194 = tpu.matmul %191, %193, %cst_163 {dimension_numbers = #tpu.dot_dimension_numbers<[1], [0], [0], [1], [0, 0, 1, 1], [], []>} : vector<1x64xf32>, vector<64x32xf32>, vector<1x32xf32> -> vector<1x32xf32>
    %195 = arith.addf %190, %194 : vector<1x32xf32>
    %196 = vector.extract_strided_slice %164 {offsets = [6, 0], sizes = [1, 64], strides = [1, 1]} : vector<16x64xf32> to vector<1x64xf32>
    %c6 = arith.constant 6 : index
    %c0_164 = arith.constant 0 : index
    %c0_165 = arith.constant 0 : index
    %197 = vector.load %arg13[%c6, %c0_164, %c0_165] : memref<16x64x32xf32, #tpu.memory_space<vmem>>, vector<1x64x32xf32>
    %198 = vector.shape_cast %197 : vector<1x64x32xf32> to vector<64x32xf32>
    %cst_166 = arith.constant dense<0.000000e+00> : vector<1x32xf32>
    %199 = tpu.matmul %196, %198, %cst_166 {dimension_numbers = #tpu.dot_dimension_numbers<[1], [0], [0], [1], [0, 0, 1, 1], [], []>} : vector<1x64xf32>, vector<64x32xf32>, vector<1x32xf32> -> vector<1x32xf32>
    %200 = arith.addf %195, %199 : vector<1x32xf32>
    %201 = vector.extract_strided_slice %164 {offsets = [7, 0], sizes = [1, 64], strides = [1, 1]} : vector<16x64xf32> to vector<1x64xf32>
    %c7 = arith.constant 7 : index
    %c0_167 = arith.constant 0 : index
    %c0_168 = arith.constant 0 : index
    %202 = vector.load %arg13[%c7, %c0_167, %c0_168] : memref<16x64x32xf32, #tpu.memory_space<vmem>>, vector<1x64x32xf32>
    %203 = vector.shape_cast %202 : vector<1x64x32xf32> to vector<64x32xf32>
    %cst_169 = arith.constant dense<0.000000e+00> : vector<1x32xf32>
    %204 = tpu.matmul %201, %203, %cst_169 {dimension_numbers = #tpu.dot_dimension_numbers<[1], [0], [0], [1], [0, 0, 1, 1], [], []>} : vector<1x64xf32>, vector<64x32xf32>, vector<1x32xf32> -> vector<1x32xf32>
    %205 = arith.addf %200, %204 : vector<1x32xf32>
    %206 = vector.extract_strided_slice %164 {offsets = [8, 0], sizes = [1, 64], strides = [1, 1]} : vector<16x64xf32> to vector<1x64xf32>
    %c8 = arith.constant 8 : index
    %c0_170 = arith.constant 0 : index
    %c0_171 = arith.constant 0 : index
    %207 = vector.load %arg13[%c8, %c0_170, %c0_171] : memref<16x64x32xf32, #tpu.memory_space<vmem>>, vector<1x64x32xf32>
    %208 = vector.shape_cast %207 : vector<1x64x32xf32> to vector<64x32xf32>
    %cst_172 = arith.constant dense<0.000000e+00> : vector<1x32xf32>
    %209 = tpu.matmul %206, %208, %cst_172 {dimension_numbers = #tpu.dot_dimension_numbers<[1], [0], [0], [1], [0, 0, 1, 1], [], []>} : vector<1x64xf32>, vector<64x32xf32>, vector<1x32xf32> -> vector<1x32xf32>
    %210 = arith.addf %205, %209 : vector<1x32xf32>
    %211 = vector.extract_strided_slice %164 {offsets = [9, 0], sizes = [1, 64], strides = [1, 1]} : vector<16x64xf32> to vector<1x64xf32>
    %c9 = arith.constant 9 : index
    %c0_173 = arith.constant 0 : index
    %c0_174 = arith.constant 0 : index
    %212 = vector.load %arg13[%c9, %c0_173, %c0_174] : memref<16x64x32xf32, #tpu.memory_space<vmem>>, vector<1x64x32xf32>
    %213 = vector.shape_cast %212 : vector<1x64x32xf32> to vector<64x32xf32>
    %cst_175 = arith.constant dense<0.000000e+00> : vector<1x32xf32>
    %214 = tpu.matmul %211, %213, %cst_175 {dimension_numbers = #tpu.dot_dimension_numbers<[1], [0], [0], [1], [0, 0, 1, 1], [], []>} : vector<1x64xf32>, vector<64x32xf32>, vector<1x32xf32> -> vector<1x32xf32>
    %215 = arith.addf %210, %214 : vector<1x32xf32>
    %216 = vector.extract_strided_slice %164 {offsets = [10, 0], sizes = [1, 64], strides = [1, 1]} : vector<16x64xf32> to vector<1x64xf32>
    %c10 = arith.constant 10 : index
    %c0_176 = arith.constant 0 : index
    %c0_177 = arith.constant 0 : index
    %217 = vector.load %arg13[%c10, %c0_176, %c0_177] : memref<16x64x32xf32, #tpu.memory_space<vmem>>, vector<1x64x32xf32>
    %218 = vector.shape_cast %217 : vector<1x64x32xf32> to vector<64x32xf32>
    %cst_178 = arith.constant dense<0.000000e+00> : vector<1x32xf32>
    %219 = tpu.matmul %216, %218, %cst_178 {dimension_numbers = #tpu.dot_dimension_numbers<[1], [0], [0], [1], [0, 0, 1, 1], [], []>} : vector<1x64xf32>, vector<64x32xf32>, vector<1x32xf32> -> vector<1x32xf32>
    %220 = arith.addf %215, %219 : vector<1x32xf32>
    %221 = vector.extract_strided_slice %164 {offsets = [11, 0], sizes = [1, 64], strides = [1, 1]} : vector<16x64xf32> to vector<1x64xf32>
    %c11 = arith.constant 11 : index
    %c0_179 = arith.constant 0 : index
    %c0_180 = arith.constant 0 : index
    %222 = vector.load %arg13[%c11, %c0_179, %c0_180] : memref<16x64x32xf32, #tpu.memory_space<vmem>>, vector<1x64x32xf32>
    %223 = vector.shape_cast %222 : vector<1x64x32xf32> to vector<64x32xf32>
    %cst_181 = arith.constant dense<0.000000e+00> : vector<1x32xf32>
    %224 = tpu.matmul %221, %223, %cst_181 {dimension_numbers = #tpu.dot_dimension_numbers<[1], [0], [0], [1], [0, 0, 1, 1], [], []>} : vector<1x64xf32>, vector<64x32xf32>, vector<1x32xf32> -> vector<1x32xf32>
    %225 = arith.addf %220, %224 : vector<1x32xf32>
    %226 = vector.extract_strided_slice %164 {offsets = [12, 0], sizes = [1, 64], strides = [1, 1]} : vector<16x64xf32> to vector<1x64xf32>
    %c12 = arith.constant 12 : index
    %c0_182 = arith.constant 0 : index
    %c0_183 = arith.constant 0 : index
    %227 = vector.load %arg13[%c12, %c0_182, %c0_183] : memref<16x64x32xf32, #tpu.memory_space<vmem>>, vector<1x64x32xf32>
    %228 = vector.shape_cast %227 : vector<1x64x32xf32> to vector<64x32xf32>
    %cst_184 = arith.constant dense<0.000000e+00> : vector<1x32xf32>
    %229 = tpu.matmul %226, %228, %cst_184 {dimension_numbers = #tpu.dot_dimension_numbers<[1], [0], [0], [1], [0, 0, 1, 1], [], []>} : vector<1x64xf32>, vector<64x32xf32>, vector<1x32xf32> -> vector<1x32xf32>
    %230 = arith.addf %225, %229 : vector<1x32xf32>
    %231 = vector.extract_strided_slice %164 {offsets = [13, 0], sizes = [1, 64], strides = [1, 1]} : vector<16x64xf32> to vector<1x64xf32>
    %c13 = arith.constant 13 : index
    %c0_185 = arith.constant 0 : index
    %c0_186 = arith.constant 0 : index
    %232 = vector.load %arg13[%c13, %c0_185, %c0_186] : memref<16x64x32xf32, #tpu.memory_space<vmem>>, vector<1x64x32xf32>
    %233 = vector.shape_cast %232 : vector<1x64x32xf32> to vector<64x32xf32>
    %cst_187 = arith.constant dense<0.000000e+00> : vector<1x32xf32>
    %234 = tpu.matmul %231, %233, %cst_187 {dimension_numbers = #tpu.dot_dimension_numbers<[1], [0], [0], [1], [0, 0, 1, 1], [], []>} : vector<1x64xf32>, vector<64x32xf32>, vector<1x32xf32> -> vector<1x32xf32>
    %235 = arith.addf %230, %234 : vector<1x32xf32>
    %236 = vector.extract_strided_slice %164 {offsets = [14, 0], sizes = [1, 64], strides = [1, 1]} : vector<16x64xf32> to vector<1x64xf32>
    %c14 = arith.constant 14 : index
    %c0_188 = arith.constant 0 : index
    %c0_189 = arith.constant 0 : index
    %237 = vector.load %arg13[%c14, %c0_188, %c0_189] : memref<16x64x32xf32, #tpu.memory_space<vmem>>, vector<1x64x32xf32>
    %238 = vector.shape_cast %237 : vector<1x64x32xf32> to vector<64x32xf32>
    %cst_190 = arith.constant dense<0.000000e+00> : vector<1x32xf32>
    %239 = tpu.matmul %236, %238, %cst_190 {dimension_numbers = #tpu.dot_dimension_numbers<[1], [0], [0], [1], [0, 0, 1, 1], [], []>} : vector<1x64xf32>, vector<64x32xf32>, vector<1x32xf32> -> vector<1x32xf32>
    %240 = arith.addf %235, %239 : vector<1x32xf32>
    %241 = vector.extract_strided_slice %164 {offsets = [15, 0], sizes = [1, 64], strides = [1, 1]} : vector<16x64xf32> to vector<1x64xf32>
    %c15 = arith.constant 15 : index
    %c0_191 = arith.constant 0 : index
    %c0_192 = arith.constant 0 : index
    %242 = vector.load %arg13[%c15, %c0_191, %c0_192] : memref<16x64x32xf32, #tpu.memory_space<vmem>>, vector<1x64x32xf32>
    %243 = vector.shape_cast %242 : vector<1x64x32xf32> to vector<64x32xf32>
    %cst_193 = arith.constant dense<0.000000e+00> : vector<1x32xf32>
    %244 = tpu.matmul %241, %243, %cst_193 {dimension_numbers = #tpu.dot_dimension_numbers<[1], [0], [0], [1], [0, 0, 1, 1], [], []>} : vector<1x64xf32>, vector<64x32xf32>, vector<1x32xf32> -> vector<1x32xf32>
    %245 = arith.addf %240, %244 : vector<1x32xf32>
    %c0_194 = arith.constant 0 : index
    %c0_195 = arith.constant 0 : index
    %246 = vector.load %arg16[%c0_194, %c0_195] : memref<1x32xf32, #tpu.memory_space<vmem>>, vector<1x32xf32>
    %cst_196 = arith.constant 0.000000e+00 : f32
    %247 = vector.broadcast %cst_196 : f32 to vector<1x40xf32>
    %248 = arith.maximumf %87, %247 : vector<1x40xf32>
    %c0_197 = arith.constant 0 : index
    %c0_198 = arith.constant 0 : index
    %249 = vector.load %arg15[%c0_197, %c0_198] : memref<80x32xf32, #tpu.memory_space<vmem>>, vector<40x32xf32>
    %cst_199 = arith.constant dense<0.000000e+00> : vector<1x32xf32>
    %250 = tpu.matmul %248, %249, %cst_199 {dimension_numbers = #tpu.dot_dimension_numbers<[1], [0], [0], [1], [0, 0, 1, 1], [], []>} : vector<1x40xf32>, vector<40x32xf32>, vector<1x32xf32> -> vector<1x32xf32>
    %251 = arith.addf %246, %250 : vector<1x32xf32>
    %cst_200 = arith.constant 0.000000e+00 : f32
    %252 = vector.broadcast %cst_200 : f32 to vector<1x40xf32>
    %253 = arith.maximumf %159, %252 : vector<1x40xf32>
    %c40 = arith.constant 40 : index
    %c0_201 = arith.constant 0 : index
    %254 = vector.load %arg15[%c40, %c0_201] : memref<80x32xf32, #tpu.memory_space<vmem>>, vector<40x32xf32>
    %cst_202 = arith.constant dense<0.000000e+00> : vector<1x32xf32>
    %255 = tpu.matmul %253, %254, %cst_202 {dimension_numbers = #tpu.dot_dimension_numbers<[1], [0], [0], [1], [0, 0, 1, 1], [], []>} : vector<1x40xf32>, vector<40x32xf32>, vector<1x32xf32> -> vector<1x32xf32>
    %256 = arith.addf %251, %255 : vector<1x32xf32>
    %c0_203 = arith.constant 0 : index
    %c0_204 = arith.constant 0 : index
    %257 = vector.load %arg18[%c0_203, %c0_204] : memref<1x40xf32, #tpu.memory_space<vmem>>, vector<1x40xf32>
    %cst_205 = arith.constant 0.000000e+00 : f32
    %258 = vector.broadcast %cst_205 : f32 to vector<1x32xf32>
    %259 = arith.maximumf %245, %258 : vector<1x32xf32>
    %c0_206 = arith.constant 0 : index
    %c0_207 = arith.constant 0 : index
    %260 = vector.load %arg17[%c0_206, %c0_207] : memref<64x40xf32, #tpu.memory_space<vmem>>, vector<32x40xf32>
    %cst_208 = arith.constant dense<0.000000e+00> : vector<1x40xf32>
    %261 = tpu.matmul %259, %260, %cst_208 {dimension_numbers = #tpu.dot_dimension_numbers<[1], [0], [0], [1], [0, 0, 1, 1], [], []>} : vector<1x32xf32>, vector<32x40xf32>, vector<1x40xf32> -> vector<1x40xf32>
    %262 = arith.addf %257, %261 : vector<1x40xf32>
    %cst_209 = arith.constant 0.000000e+00 : f32
    %263 = vector.broadcast %cst_209 : f32 to vector<1x32xf32>
    %264 = arith.maximumf %256, %263 : vector<1x32xf32>
    %c32 = arith.constant 32 : index
    %c0_210 = arith.constant 0 : index
    %265 = vector.load %arg17[%c32, %c0_210] : memref<64x40xf32, #tpu.memory_space<vmem>>, vector<32x40xf32>
    %cst_211 = arith.constant dense<0.000000e+00> : vector<1x40xf32>
    %266 = tpu.matmul %264, %265, %cst_211 {dimension_numbers = #tpu.dot_dimension_numbers<[1], [0], [0], [1], [0, 0, 1, 1], [], []>} : vector<1x32xf32>, vector<32x40xf32>, vector<1x40xf32> -> vector<1x40xf32>
    %267 = arith.addf %262, %266 : vector<1x40xf32>
    %c0_212 = arith.constant 0 : index
    %c0_213 = arith.constant 0 : index
    %268 = vector.load %arg19[%c0_212, %c0_213] : memref<2x40xf32, #tpu.memory_space<vmem>>, vector<1x40xf32>
    tpu.vector_store %arg19[%c0_212, %c0_213], %267 {strides = array<i32>} : memref<2x40xf32, #tpu.memory_space<vmem>>, vector<1x40xf32>,
    %c0_214 = arith.constant 0 : index
    %c0_215 = arith.constant 0 : index
    %c0_216 = arith.constant 0 : index
    %269 = vector.load %arg2[%c0_214, %c0_215, %c0_216] : memref<3x64x24xf32, #tpu.memory_space<vmem>>, vector<1x64x24xf32>
    %270 = vector.shape_cast %269 : vector<1x64x24xf32> to vector<64x24xf32>
    %c24 = arith.constant 24 : index
    %c0_217 = arith.constant 0 : index
    %271 = vector.load %arg1[%c24, %c0_217] : memref<48x66xf32, #tpu.memory_space<vmem>>, vector<24x64xf32>
    %cst_218 = arith.constant dense<0.000000e+00> : vector<64x64xf32>
    %272 = tpu.matmul %270, %271, %cst_218 {dimension_numbers = #tpu.dot_dimension_numbers<[1], [0], [0], [1], [0, 0, 1, 1], [], []>} : vector<64x24xf32>, vector<24x64xf32>, vector<64x64xf32> -> vector<64x64xf32>
    %c1_219 = arith.constant 1 : index
    %c0_220 = arith.constant 0 : index
    %c0_221 = arith.constant 0 : index
    %273 = vector.load %arg2[%c1_219, %c0_220, %c0_221] : memref<3x64x24xf32, #tpu.memory_space<vmem>>, vector<1x64x24xf32>
    %274 = vector.shape_cast %273 : vector<1x64x24xf32> to vector<64x24xf32>
    %c24_222 = arith.constant 24 : index
    %c1_223 = arith.constant 1 : index
    %275 = vector.load %arg1[%c24_222, %c1_223] : memref<48x66xf32, #tpu.memory_space<vmem>>, vector<24x64xf32>
    %cst_224 = arith.constant dense<0.000000e+00> : vector<64x64xf32>
    %276 = tpu.matmul %274, %275, %cst_224 {dimension_numbers = #tpu.dot_dimension_numbers<[1], [0], [0], [1], [0, 0, 1, 1], [], []>} : vector<64x24xf32>, vector<24x64xf32>, vector<64x64xf32> -> vector<64x64xf32>
    %277 = arith.addf %272, %276 : vector<64x64xf32>
    %c2_225 = arith.constant 2 : index
    %c0_226 = arith.constant 0 : index
    %c0_227 = arith.constant 0 : index
    %278 = vector.load %arg2[%c2_225, %c0_226, %c0_227] : memref<3x64x24xf32, #tpu.memory_space<vmem>>, vector<1x64x24xf32>
    %279 = vector.shape_cast %278 : vector<1x64x24xf32> to vector<64x24xf32>
    %c24_228 = arith.constant 24 : index
    %c2_229 = arith.constant 2 : index
    %280 = vector.load %arg1[%c24_228, %c2_229] : memref<48x66xf32, #tpu.memory_space<vmem>>, vector<24x64xf32>
    %cst_230 = arith.constant dense<0.000000e+00> : vector<64x64xf32>
    %281 = tpu.matmul %279, %280, %cst_230 {dimension_numbers = #tpu.dot_dimension_numbers<[1], [0], [0], [1], [0, 0, 1, 1], [], []>} : vector<64x24xf32>, vector<24x64xf32>, vector<64x64xf32> -> vector<64x64xf32>
    %282 = arith.addf %277, %281 : vector<64x64xf32>
    %c0_231 = arith.constant 0 : index
    %c0_232 = arith.constant 0 : index
    %283 = vector.load %arg3[%c0_231, %c0_232] : memref<64x1xf32, #tpu.memory_space<vmem>>, vector<64x1xf32>
    %284 = vector.broadcast %283 : vector<64x1xf32> to vector<64x64xf32>
    %285 = arith.addf %282, %284 : vector<64x64xf32>
    %cst_233 = arith.constant 0.000000e+00 : f32
    %286 = vector.broadcast %cst_233 : f32 to vector<64x64xf32>
    %287 = arith.maximumf %285, %286 : vector<64x64xf32>
    %c64 = arith.constant 64 : index
    %c1_234 = arith.constant 1 : index
    %288 = vector.load %arg20[%c64, %c1_234] : memref<128x66xf32, #tpu.memory_space<vmem>>, vector<64x64xf32>
    tpu.vector_store %arg20[%c64, %c1_234], %287 {strides = array<i32>} : memref<128x66xf32, #tpu.memory_space<vmem>>, vector<64x64xf32>,
    %c3_235 = arith.constant 3 : index
    %c0_236 = arith.constant 0 : index
    %c0_237 = arith.constant 0 : index
    %289 = vector.load %arg4[%c3_235, %c0_236, %c0_237] : memref<6x16x64xf32, #tpu.memory_space<vmem>>, vector<1x16x64xf32>
    %290 = vector.shape_cast %289 : vector<1x16x64xf32> to vector<16x64xf32>
    %c64_238 = arith.constant 64 : index
    %c0_239 = arith.constant 0 : index
    %291 = vector.load %arg20[%c64_238, %c0_239] : memref<128x66xf32, #tpu.memory_space<vmem>>, vector<64x64xf32>
    %cst_240 = arith.constant dense<0.000000e+00> : vector<16x64xf32>
    %292 = tpu.matmul %290, %291, %cst_240 {dimension_numbers = #tpu.dot_dimension_numbers<[1], [0], [0], [1], [0, 0, 1, 1], [], []>} : vector<16x64xf32>, vector<64x64xf32>, vector<16x64xf32> -> vector<16x64xf32>
    %c4_241 = arith.constant 4 : index
    %c0_242 = arith.constant 0 : index
    %c0_243 = arith.constant 0 : index
    %293 = vector.load %arg4[%c4_241, %c0_242, %c0_243] : memref<6x16x64xf32, #tpu.memory_space<vmem>>, vector<1x16x64xf32>
    %294 = vector.shape_cast %293 : vector<1x16x64xf32> to vector<16x64xf32>
    %c64_244 = arith.constant 64 : index
    %c1_245 = arith.constant 1 : index
    %295 = vector.load %arg20[%c64_244, %c1_245] : memref<128x66xf32, #tpu.memory_space<vmem>>, vector<64x64xf32>
    %cst_246 = arith.constant dense<0.000000e+00> : vector<16x64xf32>
    %296 = tpu.matmul %294, %295, %cst_246 {dimension_numbers = #tpu.dot_dimension_numbers<[1], [0], [0], [1], [0, 0, 1, 1], [], []>} : vector<16x64xf32>, vector<64x64xf32>, vector<16x64xf32> -> vector<16x64xf32>
    %297 = arith.addf %292, %296 : vector<16x64xf32>
    %c5_247 = arith.constant 5 : index
    %c0_248 = arith.constant 0 : index
    %c0_249 = arith.constant 0 : index
    %298 = vector.load %arg4[%c5_247, %c0_248, %c0_249] : memref<6x16x64xf32, #tpu.memory_space<vmem>>, vector<1x16x64xf32>
    %299 = vector.shape_cast %298 : vector<1x16x64xf32> to vector<16x64xf32>
    %c64_250 = arith.constant 64 : index
    %c2_251 = arith.constant 2 : index
    %300 = vector.load %arg20[%c64_250, %c2_251] : memref<128x66xf32, #tpu.memory_space<vmem>>, vector<64x64xf32>
    %cst_252 = arith.constant dense<0.000000e+00> : vector<16x64xf32>
    %301 = tpu.matmul %299, %300, %cst_252 {dimension_numbers = #tpu.dot_dimension_numbers<[1], [0], [0], [1], [0, 0, 1, 1], [], []>} : vector<16x64xf32>, vector<64x64xf32>, vector<16x64xf32> -> vector<16x64xf32>
    %302 = arith.addf %297, %301 : vector<16x64xf32>
    %c0_253 = arith.constant 0 : index
    %c0_254 = arith.constant 0 : index
    %303 = vector.load %arg5[%c0_253, %c0_254] : memref<16x1xf32, #tpu.memory_space<vmem>>, vector<16x1xf32>
    %304 = vector.broadcast %303 : vector<16x1xf32> to vector<16x64xf32>
    %305 = arith.addf %302, %304 : vector<16x64xf32>
    %cst_255 = arith.constant 0.000000e+00 : f32
    %306 = vector.broadcast %cst_255 : f32 to vector<16x64xf32>
    %307 = arith.maximumf %305, %306 : vector<16x64xf32>
    %c0_256 = arith.constant 0 : index
    %c0_257 = arith.constant 0 : index
    %c0_258 = arith.constant 0 : index
    %308 = vector.load %arg6[%c0_256, %c0_257, %c0_258] : memref<4x64x40xf32, #tpu.memory_space<vmem>>, vector<1x64x40xf32>
    %309 = vector.shape_cast %308 : vector<1x64x40xf32> to vector<64x40xf32>
    %cst_259 = arith.constant dense<0.000000e+00> : vector<16x40xf32>
    %310 = tpu.matmul %307, %309, %cst_259 {dimension_numbers = #tpu.dot_dimension_numbers<[1], [0], [0], [1], [0, 0, 1, 1], [], []>} : vector<16x64xf32>, vector<64x40xf32>, vector<16x40xf32> -> vector<16x40xf32>
    %c1_260 = arith.constant 1 : index
    %c0_261 = arith.constant 0 : index
    %c0_262 = arith.constant 0 : index
    %311 = vector.load %arg6[%c1_260, %c0_261, %c0_262] : memref<4x64x40xf32, #tpu.memory_space<vmem>>, vector<1x64x40xf32>
    %312 = vector.shape_cast %311 : vector<1x64x40xf32> to vector<64x40xf32>
    %cst_263 = arith.constant dense<0.000000e+00> : vector<16x40xf32>
    %313 = tpu.matmul %307, %312, %cst_263 {dimension_numbers = #tpu.dot_dimension_numbers<[1], [0], [0], [1], [0, 0, 1, 1], [], []>} : vector<16x64xf32>, vector<64x40xf32>, vector<16x40xf32> -> vector<16x40xf32>
    %314 = arith.mulf %310, %310 : vector<16x40xf32>
    %315 = arith.mulf %313, %313 : vector<16x40xf32>
    %316 = arith.addf %314, %315 : vector<16x40xf32>
    %cst_264 = arith.constant dense<0.000000e+00> : vector<16xf32>
    %317 = vector.multi_reduction <add>, %316, %cst_264 [1] : vector<16x40xf32> to vector<16xf32>
    %318 = vector.shape_cast %317 : vector<16xf32> to vector<16x1xf32>
    %cst_265 = arith.constant 4.000000e+01 : f32
    %319 = vector.broadcast %cst_265 : f32 to vector<16x1xf32>
    %320 = arith.divf %318, %319 : vector<16x1xf32>
    %c0_266 = arith.constant 0 : index
    %c0_267 = arith.constant 0 : index
    %c0_268 = arith.constant 0 : index
    %321 = vector.load %arg7[%c0_266, %c0_267, %c0_268] : memref<2x4x16xf32, #tpu.memory_space<vmem>>, vector<1x4x16xf32>
    %322 = vector.shape_cast %321 : vector<1x4x16xf32> to vector<4x16xf32>
    %cst_269 = arith.constant dense<0.000000e+00> : vector<4x1xf32>
    %323 = tpu.matmul %322, %320, %cst_269 {dimension_numbers = #tpu.dot_dimension_numbers<[1], [0], [0], [1], [0, 0, 1, 1], [], []>} : vector<4x16xf32>, vector<16x1xf32>, vector<4x1xf32> -> vector<4x1xf32>
    %cst_270 = arith.constant 0.000000e+00 : f32
    %324 = vector.broadcast %cst_270 : f32 to vector<4x1xf32>
    %325 = arith.maximumf %323, %324 : vector<4x1xf32>
    %c0_271 = arith.constant 0 : index
    %c0_272 = arith.constant 0 : index
    %c0_273 = arith.constant 0 : index
    %326 = vector.load %arg8[%c0_271, %c0_272, %c0_273] : memref<2x16x4xf32, #tpu.memory_space<vmem>>, vector<1x16x4xf32>
    %327 = vector.shape_cast %326 : vector<1x16x4xf32> to vector<16x4xf32>
    %cst_274 = arith.constant dense<0.000000e+00> : vector<16x1xf32>
    %328 = tpu.matmul %327, %325, %cst_274 {dimension_numbers = #tpu.dot_dimension_numbers<[1], [0], [0], [1], [0, 0, 1, 1], [], []>} : vector<16x4xf32>, vector<4x1xf32>, vector<16x1xf32> -> vector<16x1xf32>
    %329 = arith.negf %328 : vector<16x1xf32>
    %330 = math.exp %329 : vector<16x1xf32>
    %cst_275 = arith.constant 1.000000e+00 : f32
    %331 = vector.broadcast %cst_275 : f32 to vector<16x1xf32>
    %332 = arith.addf %331, %330 : vector<16x1xf32>
    %333 = arith.divf %331, %332 : vector<16x1xf32>
    %cst_276 = arith.constant 1.000000e+00 : f32
    %334 = vector.broadcast %cst_276 : f32 to vector<16x1xf32>
    %335 = arith.addf %334, %333 : vector<16x1xf32>
    %336 = vector.broadcast %335 : vector<16x1xf32> to vector<16x64xf32>
    %337 = arith.mulf %307, %336 : vector<16x64xf32>
    %cst_277 = arith.constant 0.000000e+00 : f32
    %338 = vector.broadcast %cst_277 : f32 to vector<16x64xf32>
    %339 = arith.maximumf %337, %338 : vector<16x64xf32>
    %cst_278 = arith.constant dense<0xFF800000> : vector<16xf32>
    %340 = vector.multi_reduction <maximumf>, %316, %cst_278 [1] : vector<16x40xf32> to vector<16xf32>
    %341 = vector.shape_cast %340 : vector<16xf32> to vector<16x1xf32>
    %342 = vector.broadcast %341 : vector<16x1xf32> to vector<16x40xf32>
    %343 = arith.subf %316, %342 : vector<16x40xf32>
    %344 = math.exp %343 : vector<16x40xf32>
    %cst_279 = arith.constant dense<0.000000e+00> : vector<16xf32>
    %345 = vector.multi_reduction <add>, %344, %cst_279 [1] : vector<16x40xf32> to vector<16xf32>
    %346 = vector.shape_cast %345 : vector<16xf32> to vector<16x1xf32>
    %347 = tpu.reciprocal %346 {approx = true} : vector<16x1xf32> -> vector<16x1xf32>
    %348 = vector.broadcast %347 : vector<16x1xf32> to vector<16x40xf32>
    %349 = arith.mulf %344, %348 : vector<16x40xf32>
    %c0_280 = arith.constant 0 : index
    %c0_281 = arith.constant 0 : index
    %c0_282 = arith.constant 0 : index
    %350 = vector.load %arg9[%c0_280, %c0_281, %c0_282] : memref<2x1x16xf32, #tpu.memory_space<vmem>>, vector<1x1x16xf32>
    %351 = vector.shape_cast %350 : vector<1x1x16xf32> to vector<1x16xf32>
    %cst_283 = arith.constant dense<0.000000e+00> : vector<1x40xf32>
    %352 = tpu.matmul %351, %349, %cst_283 {dimension_numbers = #tpu.dot_dimension_numbers<[1], [0], [0], [1], [0, 0, 1, 1], [], []>} : vector<1x16xf32>, vector<16x40xf32>, vector<1x40xf32> -> vector<1x40xf32>
    %c16 = arith.constant 16 : index
    %c2_284 = arith.constant 2 : index
    %353 = vector.load %arg21[%c16, %c2_284] : memref<32x68xf32, #tpu.memory_space<vmem>>, vector<16x64xf32>
    tpu.vector_store %arg21[%c16, %c2_284], %339 {strides = array<i32>} : memref<32x68xf32, #tpu.memory_space<vmem>>, vector<16x64xf32>,
    %c0_285 = arith.constant 0 : index
    %c0_286 = arith.constant 0 : index
    %c0_287 = arith.constant 0 : index
    %354 = vector.load %arg10[%c0_285, %c0_286, %c0_287] : memref<5x16x16xf32, #tpu.memory_space<vmem>>, vector<1x16x16xf32>
    %355 = vector.shape_cast %354 : vector<1x16x16xf32> to vector<16x16xf32>
    %c16_288 = arith.constant 16 : index
    %c0_289 = arith.constant 0 : index
    %356 = vector.load %arg21[%c16_288, %c0_289] : memref<32x68xf32, #tpu.memory_space<vmem>>, vector<16x64xf32>
    %cst_290 = arith.constant dense<0.000000e+00> : vector<16x64xf32>
    %357 = tpu.matmul %355, %356, %cst_290 {dimension_numbers = #tpu.dot_dimension_numbers<[1], [0], [0], [1], [0, 0, 1, 1], [], []>} : vector<16x16xf32>, vector<16x64xf32>, vector<16x64xf32> -> vector<16x64xf32>
    %c1_291 = arith.constant 1 : index
    %c0_292 = arith.constant 0 : index
    %c0_293 = arith.constant 0 : index
    %358 = vector.load %arg10[%c1_291, %c0_292, %c0_293] : memref<5x16x16xf32, #tpu.memory_space<vmem>>, vector<1x16x16xf32>
    %359 = vector.shape_cast %358 : vector<1x16x16xf32> to vector<16x16xf32>
    %c16_294 = arith.constant 16 : index
    %c1_295 = arith.constant 1 : index
    %360 = vector.load %arg21[%c16_294, %c1_295] : memref<32x68xf32, #tpu.memory_space<vmem>>, vector<16x64xf32>
    %cst_296 = arith.constant dense<0.000000e+00> : vector<16x64xf32>
    %361 = tpu.matmul %359, %360, %cst_296 {dimension_numbers = #tpu.dot_dimension_numbers<[1], [0], [0], [1], [0, 0, 1, 1], [], []>} : vector<16x16xf32>, vector<16x64xf32>, vector<16x64xf32> -> vector<16x64xf32>
    %362 = arith.addf %357, %361 : vector<16x64xf32>
    %c2_297 = arith.constant 2 : index
    %c0_298 = arith.constant 0 : index
    %c0_299 = arith.constant 0 : index
    %363 = vector.load %arg10[%c2_297, %c0_298, %c0_299] : memref<5x16x16xf32, #tpu.memory_space<vmem>>, vector<1x16x16xf32>
    %364 = vector.shape_cast %363 : vector<1x16x16xf32> to vector<16x16xf32>
    %c16_300 = arith.constant 16 : index
    %c2_301 = arith.constant 2 : index
    %365 = vector.load %arg21[%c16_300, %c2_301] : memref<32x68xf32, #tpu.memory_space<vmem>>, vector<16x64xf32>
    %cst_302 = arith.constant dense<0.000000e+00> : vector<16x64xf32>
    %366 = tpu.matmul %364, %365, %cst_302 {dimension_numbers = #tpu.dot_dimension_numbers<[1], [0], [0], [1], [0, 0, 1, 1], [], []>} : vector<16x16xf32>, vector<16x64xf32>, vector<16x64xf32> -> vector<16x64xf32>
    %367 = arith.addf %362, %366 : vector<16x64xf32>
    %c3_303 = arith.constant 3 : index
    %c0_304 = arith.constant 0 : index
    %c0_305 = arith.constant 0 : index
    %368 = vector.load %arg10[%c3_303, %c0_304, %c0_305] : memref<5x16x16xf32, #tpu.memory_space<vmem>>, vector<1x16x16xf32>
    %369 = vector.shape_cast %368 : vector<1x16x16xf32> to vector<16x16xf32>
    %c16_306 = arith.constant 16 : index
    %c3_307 = arith.constant 3 : index
    %370 = vector.load %arg21[%c16_306, %c3_307] : memref<32x68xf32, #tpu.memory_space<vmem>>, vector<16x64xf32>
    %cst_308 = arith.constant dense<0.000000e+00> : vector<16x64xf32>
    %371 = tpu.matmul %369, %370, %cst_308 {dimension_numbers = #tpu.dot_dimension_numbers<[1], [0], [0], [1], [0, 0, 1, 1], [], []>} : vector<16x16xf32>, vector<16x64xf32>, vector<16x64xf32> -> vector<16x64xf32>
    %372 = arith.addf %367, %371 : vector<16x64xf32>
    %c4_309 = arith.constant 4 : index
    %c0_310 = arith.constant 0 : index
    %c0_311 = arith.constant 0 : index
    %373 = vector.load %arg10[%c4_309, %c0_310, %c0_311] : memref<5x16x16xf32, #tpu.memory_space<vmem>>, vector<1x16x16xf32>
    %374 = vector.shape_cast %373 : vector<1x16x16xf32> to vector<16x16xf32>
    %c16_312 = arith.constant 16 : index
    %c4_313 = arith.constant 4 : index
    %375 = vector.load %arg21[%c16_312, %c4_313] : memref<32x68xf32, #tpu.memory_space<vmem>>, vector<16x64xf32>
    %cst_314 = arith.constant dense<0.000000e+00> : vector<16x64xf32>
    %376 = tpu.matmul %374, %375, %cst_314 {dimension_numbers = #tpu.dot_dimension_numbers<[1], [0], [0], [1], [0, 0, 1, 1], [], []>} : vector<16x16xf32>, vector<16x64xf32>, vector<16x64xf32> -> vector<16x64xf32>
    %377 = arith.addf %372, %376 : vector<16x64xf32>
    %c0_315 = arith.constant 0 : index
    %c0_316 = arith.constant 0 : index
    %378 = vector.load %arg11[%c0_315, %c0_316] : memref<16x1xf32, #tpu.memory_space<vmem>>, vector<16x1xf32>
    %379 = vector.broadcast %378 : vector<16x1xf32> to vector<16x64xf32>
    %380 = arith.addf %377, %379 : vector<16x64xf32>
    %cst_317 = arith.constant 0.000000e+00 : f32
    %381 = vector.broadcast %cst_317 : f32 to vector<16x64xf32>
    %382 = arith.maximumf %380, %381 : vector<16x64xf32>
    %c0_318 = arith.constant 0 : index
    %c0_319 = arith.constant 0 : index
    %383 = vector.load %arg12[%c0_318, %c0_319] : memref<16x16xf32, #tpu.memory_space<vmem>>, vector<16x16xf32>
    %c16_320 = arith.constant 16 : index
    %c2_321 = arith.constant 2 : index
    %384 = vector.load %arg21[%c16_320, %c2_321] : memref<32x68xf32, #tpu.memory_space<vmem>>, vector<16x64xf32>
    %cst_322 = arith.constant dense<0.000000e+00> : vector<16x64xf32>
    %385 = tpu.matmul %383, %384, %cst_322 {dimension_numbers = #tpu.dot_dimension_numbers<[1], [0], [0], [1], [0, 0, 1, 1], [], []>} : vector<16x16xf32>, vector<16x64xf32>, vector<16x64xf32> -> vector<16x64xf32>
    %c2_323 = arith.constant 2 : index
    %c0_324 = arith.constant 0 : index
    %c0_325 = arith.constant 0 : index
    %386 = vector.load %arg6[%c2_323, %c0_324, %c0_325] : memref<4x64x40xf32, #tpu.memory_space<vmem>>, vector<1x64x40xf32>
    %387 = vector.shape_cast %386 : vector<1x64x40xf32> to vector<64x40xf32>
    %cst_326 = arith.constant dense<0.000000e+00> : vector<16x40xf32>
    %388 = tpu.matmul %382, %387, %cst_326 {dimension_numbers = #tpu.dot_dimension_numbers<[1], [0], [0], [1], [0, 0, 1, 1], [], []>} : vector<16x64xf32>, vector<64x40xf32>, vector<16x40xf32> -> vector<16x40xf32>
    %c3_327 = arith.constant 3 : index
    %c0_328 = arith.constant 0 : index
    %c0_329 = arith.constant 0 : index
    %389 = vector.load %arg6[%c3_327, %c0_328, %c0_329] : memref<4x64x40xf32, #tpu.memory_space<vmem>>, vector<1x64x40xf32>
    %390 = vector.shape_cast %389 : vector<1x64x40xf32> to vector<64x40xf32>
    %cst_330 = arith.constant dense<0.000000e+00> : vector<16x40xf32>
    %391 = tpu.matmul %382, %390, %cst_330 {dimension_numbers = #tpu.dot_dimension_numbers<[1], [0], [0], [1], [0, 0, 1, 1], [], []>} : vector<16x64xf32>, vector<64x40xf32>, vector<16x40xf32> -> vector<16x40xf32>
    %392 = arith.mulf %388, %388 : vector<16x40xf32>
    %393 = arith.mulf %391, %391 : vector<16x40xf32>
    %394 = arith.addf %392, %393 : vector<16x40xf32>
    %cst_331 = arith.constant dense<0.000000e+00> : vector<16xf32>
    %395 = vector.multi_reduction <add>, %394, %cst_331 [1] : vector<16x40xf32> to vector<16xf32>
    %396 = vector.shape_cast %395 : vector<16xf32> to vector<16x1xf32>
    %cst_332 = arith.constant 4.000000e+01 : f32
    %397 = vector.broadcast %cst_332 : f32 to vector<16x1xf32>
    %398 = arith.divf %396, %397 : vector<16x1xf32>
    %c1_333 = arith.constant 1 : index
    %c0_334 = arith.constant 0 : index
    %c0_335 = arith.constant 0 : index
    %399 = vector.load %arg7[%c1_333, %c0_334, %c0_335] : memref<2x4x16xf32, #tpu.memory_space<vmem>>, vector<1x4x16xf32>
    %400 = vector.shape_cast %399 : vector<1x4x16xf32> to vector<4x16xf32>
    %cst_336 = arith.constant dense<0.000000e+00> : vector<4x1xf32>
    %401 = tpu.matmul %400, %398, %cst_336 {dimension_numbers = #tpu.dot_dimension_numbers<[1], [0], [0], [1], [0, 0, 1, 1], [], []>} : vector<4x16xf32>, vector<16x1xf32>, vector<4x1xf32> -> vector<4x1xf32>
    %cst_337 = arith.constant 0.000000e+00 : f32
    %402 = vector.broadcast %cst_337 : f32 to vector<4x1xf32>
    %403 = arith.maximumf %401, %402 : vector<4x1xf32>
    %c1_338 = arith.constant 1 : index
    %c0_339 = arith.constant 0 : index
    %c0_340 = arith.constant 0 : index
    %404 = vector.load %arg8[%c1_338, %c0_339, %c0_340] : memref<2x16x4xf32, #tpu.memory_space<vmem>>, vector<1x16x4xf32>
    %405 = vector.shape_cast %404 : vector<1x16x4xf32> to vector<16x4xf32>
    %cst_341 = arith.constant dense<0.000000e+00> : vector<16x1xf32>
    %406 = tpu.matmul %405, %403, %cst_341 {dimension_numbers = #tpu.dot_dimension_numbers<[1], [0], [0], [1], [0, 0, 1, 1], [], []>} : vector<16x4xf32>, vector<4x1xf32>, vector<16x1xf32> -> vector<16x1xf32>
    %407 = arith.negf %406 : vector<16x1xf32>
    %408 = math.exp %407 : vector<16x1xf32>
    %cst_342 = arith.constant 1.000000e+00 : f32
    %409 = vector.broadcast %cst_342 : f32 to vector<16x1xf32>
    %410 = arith.addf %409, %408 : vector<16x1xf32>
    %411 = arith.divf %409, %410 : vector<16x1xf32>
    %cst_343 = arith.constant dense<0xFF800000> : vector<16xf32>
    %412 = vector.multi_reduction <maximumf>, %394, %cst_343 [1] : vector<16x40xf32> to vector<16xf32>
    %413 = vector.shape_cast %412 : vector<16xf32> to vector<16x1xf32>
    %414 = vector.broadcast %413 : vector<16x1xf32> to vector<16x40xf32>
    %415 = arith.subf %394, %414 : vector<16x40xf32>
    %416 = math.exp %415 : vector<16x40xf32>
    %cst_344 = arith.constant dense<0.000000e+00> : vector<16xf32>
    %417 = vector.multi_reduction <add>, %416, %cst_344 [1] : vector<16x40xf32> to vector<16xf32>
    %418 = vector.shape_cast %417 : vector<16xf32> to vector<16x1xf32>
    %419 = tpu.reciprocal %418 {approx = true} : vector<16x1xf32> -> vector<16x1xf32>
    %420 = vector.broadcast %419 : vector<16x1xf32> to vector<16x40xf32>
    %421 = arith.mulf %416, %420 : vector<16x40xf32>
    %c1_345 = arith.constant 1 : index
    %c0_346 = arith.constant 0 : index
    %c0_347 = arith.constant 0 : index
    %422 = vector.load %arg9[%c1_345, %c0_346, %c0_347] : memref<2x1x16xf32, #tpu.memory_space<vmem>>, vector<1x1x16xf32>
    %423 = vector.shape_cast %422 : vector<1x1x16xf32> to vector<1x16xf32>
    %cst_348 = arith.constant dense<0.000000e+00> : vector<1x40xf32>
    %424 = tpu.matmul %423, %421, %cst_348 {dimension_numbers = #tpu.dot_dimension_numbers<[1], [0], [0], [1], [0, 0, 1, 1], [], []>} : vector<1x16xf32>, vector<16x40xf32>, vector<1x40xf32> -> vector<1x40xf32>
    %425 = vector.broadcast %411 : vector<16x1xf32> to vector<16x64xf32>
    %426 = arith.mulf %382, %425 : vector<16x64xf32>
    %427 = arith.addf %426, %385 : vector<16x64xf32>
    %cst_349 = arith.constant 0.000000e+00 : f32
    %428 = vector.broadcast %cst_349 : f32 to vector<16x64xf32>
    %429 = arith.maximumf %427, %428 : vector<16x64xf32>
    %c0_350 = arith.constant 0 : index
    %c0_351 = arith.constant 0 : index
    %430 = vector.load %arg14[%c0_350, %c0_351] : memref<1x32xf32, #tpu.memory_space<vmem>>, vector<1x32xf32>
    %431 = vector.extract_strided_slice %429 {offsets = [0, 0], sizes = [1, 64], strides = [1, 1]} : vector<16x64xf32> to vector<1x64xf32>
    %c0_352 = arith.constant 0 : index
    %c0_353 = arith.constant 0 : index
    %c0_354 = arith.constant 0 : index
    %432 = vector.load %arg13[%c0_352, %c0_353, %c0_354] : memref<16x64x32xf32, #tpu.memory_space<vmem>>, vector<1x64x32xf32>
    %433 = vector.shape_cast %432 : vector<1x64x32xf32> to vector<64x32xf32>
    %cst_355 = arith.constant dense<0.000000e+00> : vector<1x32xf32>
    %434 = tpu.matmul %431, %433, %cst_355 {dimension_numbers = #tpu.dot_dimension_numbers<[1], [0], [0], [1], [0, 0, 1, 1], [], []>} : vector<1x64xf32>, vector<64x32xf32>, vector<1x32xf32> -> vector<1x32xf32>
    %435 = arith.addf %430, %434 : vector<1x32xf32>
    %436 = vector.extract_strided_slice %429 {offsets = [1, 0], sizes = [1, 64], strides = [1, 1]} : vector<16x64xf32> to vector<1x64xf32>
    %c1_356 = arith.constant 1 : index
    %c0_357 = arith.constant 0 : index
    %c0_358 = arith.constant 0 : index
    %437 = vector.load %arg13[%c1_356, %c0_357, %c0_358] : memref<16x64x32xf32, #tpu.memory_space<vmem>>, vector<1x64x32xf32>
    %438 = vector.shape_cast %437 : vector<1x64x32xf32> to vector<64x32xf32>
    %cst_359 = arith.constant dense<0.000000e+00> : vector<1x32xf32>
    %439 = tpu.matmul %436, %438, %cst_359 {dimension_numbers = #tpu.dot_dimension_numbers<[1], [0], [0], [1], [0, 0, 1, 1], [], []>} : vector<1x64xf32>, vector<64x32xf32>, vector<1x32xf32> -> vector<1x32xf32>
    %440 = arith.addf %435, %439 : vector<1x32xf32>
    %441 = vector.extract_strided_slice %429 {offsets = [2, 0], sizes = [1, 64], strides = [1, 1]} : vector<16x64xf32> to vector<1x64xf32>
    %c2_360 = arith.constant 2 : index
    %c0_361 = arith.constant 0 : index
    %c0_362 = arith.constant 0 : index
    %442 = vector.load %arg13[%c2_360, %c0_361, %c0_362] : memref<16x64x32xf32, #tpu.memory_space<vmem>>, vector<1x64x32xf32>
    %443 = vector.shape_cast %442 : vector<1x64x32xf32> to vector<64x32xf32>
    %cst_363 = arith.constant dense<0.000000e+00> : vector<1x32xf32>
    %444 = tpu.matmul %441, %443, %cst_363 {dimension_numbers = #tpu.dot_dimension_numbers<[1], [0], [0], [1], [0, 0, 1, 1], [], []>} : vector<1x64xf32>, vector<64x32xf32>, vector<1x32xf32> -> vector<1x32xf32>
    %445 = arith.addf %440, %444 : vector<1x32xf32>
    %446 = vector.extract_strided_slice %429 {offsets = [3, 0], sizes = [1, 64], strides = [1, 1]} : vector<16x64xf32> to vector<1x64xf32>
    %c3_364 = arith.constant 3 : index
    %c0_365 = arith.constant 0 : index
    %c0_366 = arith.constant 0 : index
    %447 = vector.load %arg13[%c3_364, %c0_365, %c0_366] : memref<16x64x32xf32, #tpu.memory_space<vmem>>, vector<1x64x32xf32>
    %448 = vector.shape_cast %447 : vector<1x64x32xf32> to vector<64x32xf32>
    %cst_367 = arith.constant dense<0.000000e+00> : vector<1x32xf32>
    %449 = tpu.matmul %446, %448, %cst_367 {dimension_numbers = #tpu.dot_dimension_numbers<[1], [0], [0], [1], [0, 0, 1, 1], [], []>} : vector<1x64xf32>, vector<64x32xf32>, vector<1x32xf32> -> vector<1x32xf32>
    %450 = arith.addf %445, %449 : vector<1x32xf32>
    %451 = vector.extract_strided_slice %429 {offsets = [4, 0], sizes = [1, 64], strides = [1, 1]} : vector<16x64xf32> to vector<1x64xf32>
    %c4_368 = arith.constant 4 : index
    %c0_369 = arith.constant 0 : index
    %c0_370 = arith.constant 0 : index
    %452 = vector.load %arg13[%c4_368, %c0_369, %c0_370] : memref<16x64x32xf32, #tpu.memory_space<vmem>>, vector<1x64x32xf32>
    %453 = vector.shape_cast %452 : vector<1x64x32xf32> to vector<64x32xf32>
    %cst_371 = arith.constant dense<0.000000e+00> : vector<1x32xf32>
    %454 = tpu.matmul %451, %453, %cst_371 {dimension_numbers = #tpu.dot_dimension_numbers<[1], [0], [0], [1], [0, 0, 1, 1], [], []>} : vector<1x64xf32>, vector<64x32xf32>, vector<1x32xf32> -> vector<1x32xf32>
    %455 = arith.addf %450, %454 : vector<1x32xf32>
    %456 = vector.extract_strided_slice %429 {offsets = [5, 0], sizes = [1, 64], strides = [1, 1]} : vector<16x64xf32> to vector<1x64xf32>
    %c5_372 = arith.constant 5 : index
    %c0_373 = arith.constant 0 : index
    %c0_374 = arith.constant 0 : index
    %457 = vector.load %arg13[%c5_372, %c0_373, %c0_374] : memref<16x64x32xf32, #tpu.memory_space<vmem>>, vector<1x64x32xf32>
    %458 = vector.shape_cast %457 : vector<1x64x32xf32> to vector<64x32xf32>
    %cst_375 = arith.constant dense<0.000000e+00> : vector<1x32xf32>
    %459 = tpu.matmul %456, %458, %cst_375 {dimension_numbers = #tpu.dot_dimension_numbers<[1], [0], [0], [1], [0, 0, 1, 1], [], []>} : vector<1x64xf32>, vector<64x32xf32>, vector<1x32xf32> -> vector<1x32xf32>
    %460 = arith.addf %455, %459 : vector<1x32xf32>
    %461 = vector.extract_strided_slice %429 {offsets = [6, 0], sizes = [1, 64], strides = [1, 1]} : vector<16x64xf32> to vector<1x64xf32>
    %c6_376 = arith.constant 6 : index
    %c0_377 = arith.constant 0 : index
    %c0_378 = arith.constant 0 : index
    %462 = vector.load %arg13[%c6_376, %c0_377, %c0_378] : memref<16x64x32xf32, #tpu.memory_space<vmem>>, vector<1x64x32xf32>
    %463 = vector.shape_cast %462 : vector<1x64x32xf32> to vector<64x32xf32>
    %cst_379 = arith.constant dense<0.000000e+00> : vector<1x32xf32>
    %464 = tpu.matmul %461, %463, %cst_379 {dimension_numbers = #tpu.dot_dimension_numbers<[1], [0], [0], [1], [0, 0, 1, 1], [], []>} : vector<1x64xf32>, vector<64x32xf32>, vector<1x32xf32> -> vector<1x32xf32>
    %465 = arith.addf %460, %464 : vector<1x32xf32>
    %466 = vector.extract_strided_slice %429 {offsets = [7, 0], sizes = [1, 64], strides = [1, 1]} : vector<16x64xf32> to vector<1x64xf32>
    %c7_380 = arith.constant 7 : index
    %c0_381 = arith.constant 0 : index
    %c0_382 = arith.constant 0 : index
    %467 = vector.load %arg13[%c7_380, %c0_381, %c0_382] : memref<16x64x32xf32, #tpu.memory_space<vmem>>, vector<1x64x32xf32>
    %468 = vector.shape_cast %467 : vector<1x64x32xf32> to vector<64x32xf32>
    %cst_383 = arith.constant dense<0.000000e+00> : vector<1x32xf32>
    %469 = tpu.matmul %466, %468, %cst_383 {dimension_numbers = #tpu.dot_dimension_numbers<[1], [0], [0], [1], [0, 0, 1, 1], [], []>} : vector<1x64xf32>, vector<64x32xf32>, vector<1x32xf32> -> vector<1x32xf32>
    %470 = arith.addf %465, %469 : vector<1x32xf32>
    %471 = vector.extract_strided_slice %429 {offsets = [8, 0], sizes = [1, 64], strides = [1, 1]} : vector<16x64xf32> to vector<1x64xf32>
    %c8_384 = arith.constant 8 : index
    %c0_385 = arith.constant 0 : index
    %c0_386 = arith.constant 0 : index
    %472 = vector.load %arg13[%c8_384, %c0_385, %c0_386] : memref<16x64x32xf32, #tpu.memory_space<vmem>>, vector<1x64x32xf32>
    %473 = vector.shape_cast %472 : vector<1x64x32xf32> to vector<64x32xf32>
    %cst_387 = arith.constant dense<0.000000e+00> : vector<1x32xf32>
    %474 = tpu.matmul %471, %473, %cst_387 {dimension_numbers = #tpu.dot_dimension_numbers<[1], [0], [0], [1], [0, 0, 1, 1], [], []>} : vector<1x64xf32>, vector<64x32xf32>, vector<1x32xf32> -> vector<1x32xf32>
    %475 = arith.addf %470, %474 : vector<1x32xf32>
    %476 = vector.extract_strided_slice %429 {offsets = [9, 0], sizes = [1, 64], strides = [1, 1]} : vector<16x64xf32> to vector<1x64xf32>
    %c9_388 = arith.constant 9 : index
    %c0_389 = arith.constant 0 : index
    %c0_390 = arith.constant 0 : index
    %477 = vector.load %arg13[%c9_388, %c0_389, %c0_390] : memref<16x64x32xf32, #tpu.memory_space<vmem>>, vector<1x64x32xf32>
    %478 = vector.shape_cast %477 : vector<1x64x32xf32> to vector<64x32xf32>
    %cst_391 = arith.constant dense<0.000000e+00> : vector<1x32xf32>
    %479 = tpu.matmul %476, %478, %cst_391 {dimension_numbers = #tpu.dot_dimension_numbers<[1], [0], [0], [1], [0, 0, 1, 1], [], []>} : vector<1x64xf32>, vector<64x32xf32>, vector<1x32xf32> -> vector<1x32xf32>
    %480 = arith.addf %475, %479 : vector<1x32xf32>
    %481 = vector.extract_strided_slice %429 {offsets = [10, 0], sizes = [1, 64], strides = [1, 1]} : vector<16x64xf32> to vector<1x64xf32>
    %c10_392 = arith.constant 10 : index
    %c0_393 = arith.constant 0 : index
    %c0_394 = arith.constant 0 : index
    %482 = vector.load %arg13[%c10_392, %c0_393, %c0_394] : memref<16x64x32xf32, #tpu.memory_space<vmem>>, vector<1x64x32xf32>
    %483 = vector.shape_cast %482 : vector<1x64x32xf32> to vector<64x32xf32>
    %cst_395 = arith.constant dense<0.000000e+00> : vector<1x32xf32>
    %484 = tpu.matmul %481, %483, %cst_395 {dimension_numbers = #tpu.dot_dimension_numbers<[1], [0], [0], [1], [0, 0, 1, 1], [], []>} : vector<1x64xf32>, vector<64x32xf32>, vector<1x32xf32> -> vector<1x32xf32>
    %485 = arith.addf %480, %484 : vector<1x32xf32>
    %486 = vector.extract_strided_slice %429 {offsets = [11, 0], sizes = [1, 64], strides = [1, 1]} : vector<16x64xf32> to vector<1x64xf32>
    %c11_396 = arith.constant 11 : index
    %c0_397 = arith.constant 0 : index
    %c0_398 = arith.constant 0 : index
    %487 = vector.load %arg13[%c11_396, %c0_397, %c0_398] : memref<16x64x32xf32, #tpu.memory_space<vmem>>, vector<1x64x32xf32>
    %488 = vector.shape_cast %487 : vector<1x64x32xf32> to vector<64x32xf32>
    %cst_399 = arith.constant dense<0.000000e+00> : vector<1x32xf32>
    %489 = tpu.matmul %486, %488, %cst_399 {dimension_numbers = #tpu.dot_dimension_numbers<[1], [0], [0], [1], [0, 0, 1, 1], [], []>} : vector<1x64xf32>, vector<64x32xf32>, vector<1x32xf32> -> vector<1x32xf32>
    %490 = arith.addf %485, %489 : vector<1x32xf32>
    %491 = vector.extract_strided_slice %429 {offsets = [12, 0], sizes = [1, 64], strides = [1, 1]} : vector<16x64xf32> to vector<1x64xf32>
    %c12_400 = arith.constant 12 : index
    %c0_401 = arith.constant 0 : index
    %c0_402 = arith.constant 0 : index
    %492 = vector.load %arg13[%c12_400, %c0_401, %c0_402] : memref<16x64x32xf32, #tpu.memory_space<vmem>>, vector<1x64x32xf32>
    %493 = vector.shape_cast %492 : vector<1x64x32xf32> to vector<64x32xf32>
    %cst_403 = arith.constant dense<0.000000e+00> : vector<1x32xf32>
    %494 = tpu.matmul %491, %493, %cst_403 {dimension_numbers = #tpu.dot_dimension_numbers<[1], [0], [0], [1], [0, 0, 1, 1], [], []>} : vector<1x64xf32>, vector<64x32xf32>, vector<1x32xf32> -> vector<1x32xf32>
    %495 = arith.addf %490, %494 : vector<1x32xf32>
    %496 = vector.extract_strided_slice %429 {offsets = [13, 0], sizes = [1, 64], strides = [1, 1]} : vector<16x64xf32> to vector<1x64xf32>
    %c13_404 = arith.constant 13 : index
    %c0_405 = arith.constant 0 : index
    %c0_406 = arith.constant 0 : index
    %497 = vector.load %arg13[%c13_404, %c0_405, %c0_406] : memref<16x64x32xf32, #tpu.memory_space<vmem>>, vector<1x64x32xf32>
    %498 = vector.shape_cast %497 : vector<1x64x32xf32> to vector<64x32xf32>
    %cst_407 = arith.constant dense<0.000000e+00> : vector<1x32xf32>
    %499 = tpu.matmul %496, %498, %cst_407 {dimension_numbers = #tpu.dot_dimension_numbers<[1], [0], [0], [1], [0, 0, 1, 1], [], []>} : vector<1x64xf32>, vector<64x32xf32>, vector<1x32xf32> -> vector<1x32xf32>
    %500 = arith.addf %495, %499 : vector<1x32xf32>
    %501 = vector.extract_strided_slice %429 {offsets = [14, 0], sizes = [1, 64], strides = [1, 1]} : vector<16x64xf32> to vector<1x64xf32>
    %c14_408 = arith.constant 14 : index
    %c0_409 = arith.constant 0 : index
    %c0_410 = arith.constant 0 : index
    %502 = vector.load %arg13[%c14_408, %c0_409, %c0_410] : memref<16x64x32xf32, #tpu.memory_space<vmem>>, vector<1x64x32xf32>
    %503 = vector.shape_cast %502 : vector<1x64x32xf32> to vector<64x32xf32>
    %cst_411 = arith.constant dense<0.000000e+00> : vector<1x32xf32>
    %504 = tpu.matmul %501, %503, %cst_411 {dimension_numbers = #tpu.dot_dimension_numbers<[1], [0], [0], [1], [0, 0, 1, 1], [], []>} : vector<1x64xf32>, vector<64x32xf32>, vector<1x32xf32> -> vector<1x32xf32>
    %505 = arith.addf %500, %504 : vector<1x32xf32>
    %506 = vector.extract_strided_slice %429 {offsets = [15, 0], sizes = [1, 64], strides = [1, 1]} : vector<16x64xf32> to vector<1x64xf32>
    %c15_412 = arith.constant 15 : index
    %c0_413 = arith.constant 0 : index
    %c0_414 = arith.constant 0 : index
    %507 = vector.load %arg13[%c15_412, %c0_413, %c0_414] : memref<16x64x32xf32, #tpu.memory_space<vmem>>, vector<1x64x32xf32>
    %508 = vector.shape_cast %507 : vector<1x64x32xf32> to vector<64x32xf32>
    %cst_415 = arith.constant dense<0.000000e+00> : vector<1x32xf32>
    %509 = tpu.matmul %506, %508, %cst_415 {dimension_numbers = #tpu.dot_dimension_numbers<[1], [0], [0], [1], [0, 0, 1, 1], [], []>} : vector<1x64xf32>, vector<64x32xf32>, vector<1x32xf32> -> vector<1x32xf32>
    %510 = arith.addf %505, %509 : vector<1x32xf32>
    %c0_416 = arith.constant 0 : index
    %c0_417 = arith.constant 0 : index
    %511 = vector.load %arg16[%c0_416, %c0_417] : memref<1x32xf32, #tpu.memory_space<vmem>>, vector<1x32xf32>
    %cst_418 = arith.constant 0.000000e+00 : f32
    %512 = vector.broadcast %cst_418 : f32 to vector<1x40xf32>
    %513 = arith.maximumf %352, %512 : vector<1x40xf32>
    %c0_419 = arith.constant 0 : index
    %c0_420 = arith.constant 0 : index
    %514 = vector.load %arg15[%c0_419, %c0_420] : memref<80x32xf32, #tpu.memory_space<vmem>>, vector<40x32xf32>
    %cst_421 = arith.constant dense<0.000000e+00> : vector<1x32xf32>
    %515 = tpu.matmul %513, %514, %cst_421 {dimension_numbers = #tpu.dot_dimension_numbers<[1], [0], [0], [1], [0, 0, 1, 1], [], []>} : vector<1x40xf32>, vector<40x32xf32>, vector<1x32xf32> -> vector<1x32xf32>
    %516 = arith.addf %511, %515 : vector<1x32xf32>
    %cst_422 = arith.constant 0.000000e+00 : f32
    %517 = vector.broadcast %cst_422 : f32 to vector<1x40xf32>
    %518 = arith.maximumf %424, %517 : vector<1x40xf32>
    %c40_423 = arith.constant 40 : index
    %c0_424 = arith.constant 0 : index
    %519 = vector.load %arg15[%c40_423, %c0_424] : memref<80x32xf32, #tpu.memory_space<vmem>>, vector<40x32xf32>
    %cst_425 = arith.constant dense<0.000000e+00> : vector<1x32xf32>
    %520 = tpu.matmul %518, %519, %cst_425 {dimension_numbers = #tpu.dot_dimension_numbers<[1], [0], [0], [1], [0, 0, 1, 1], [], []>} : vector<1x40xf32>, vector<40x32xf32>, vector<1x32xf32> -> vector<1x32xf32>
    %521 = arith.addf %516, %520 : vector<1x32xf32>
    %c0_426 = arith.constant 0 : index
    %c0_427 = arith.constant 0 : index
    %522 = vector.load %arg18[%c0_426, %c0_427] : memref<1x40xf32, #tpu.memory_space<vmem>>, vector<1x40xf32>
    %cst_428 = arith.constant 0.000000e+00 : f32
    %523 = vector.broadcast %cst_428 : f32 to vector<1x32xf32>
    %524 = arith.maximumf %510, %523 : vector<1x32xf32>
    %c0_429 = arith.constant 0 : index
    %c0_430 = arith.constant 0 : index
    %525 = vector.load %arg17[%c0_429, %c0_430] : memref<64x40xf32, #tpu.memory_space<vmem>>, vector<32x40xf32>
    %cst_431 = arith.constant dense<0.000000e+00> : vector<1x40xf32>
    %526 = tpu.matmul %524, %525, %cst_431 {dimension_numbers = #tpu.dot_dimension_numbers<[1], [0], [0], [1], [0, 0, 1, 1], [], []>} : vector<1x32xf32>, vector<32x40xf32>, vector<1x40xf32> -> vector<1x40xf32>
    %527 = arith.addf %522, %526 : vector<1x40xf32>
    %cst_432 = arith.constant 0.000000e+00 : f32
    %528 = vector.broadcast %cst_432 : f32 to vector<1x32xf32>
    %529 = arith.maximumf %521, %528 : vector<1x32xf32>
    %c32_433 = arith.constant 32 : index
    %c0_434 = arith.constant 0 : index
    %530 = vector.load %arg17[%c32_433, %c0_434] : memref<64x40xf32, #tpu.memory_space<vmem>>, vector<32x40xf32>
    %cst_435 = arith.constant dense<0.000000e+00> : vector<1x40xf32>
    %531 = tpu.matmul %529, %530, %cst_435 {dimension_numbers = #tpu.dot_dimension_numbers<[1], [0], [0], [1], [0, 0, 1, 1], [], []>} : vector<1x32xf32>, vector<32x40xf32>, vector<1x40xf32> -> vector<1x40xf32>
    %532 = arith.addf %527, %531 : vector<1x40xf32>
    %c1_436 = arith.constant 1 : index
    %c0_437 = arith.constant 0 : index
    %533 = vector.load %arg19[%c1_436, %c0_437] : memref<2x40xf32, #tpu.memory_space<vmem>>, vector<1x40xf32>
    tpu.vector_store %arg19[%c1_436, %c0_437], %532 {strides = array<i32>} : memref<2x40xf32, #tpu.memory_space<vmem>>, vector<1x40xf32>,
    return
  }
  func.func @transform_0(%arg0: i32) -> (i32, i32) {
    %c0_i32 = arith.constant 0 : i32
    %c0_i32_0 = arith.constant 0 : i32
    %c0_i32_1 = arith.constant 0 : i32
    return %c0_i32, %c0_i32_0 : i32, i32
  }
  func.func @transform_1(%arg0: i32) -> (i32, i32, i32) {
    %c0_i32 = arith.constant 0 : i32
    %c0_i32_0 = arith.constant 0 : i32
    %c0_i32_1 = arith.constant 0 : i32
    %c0_i32_2 = arith.constant 0 : i32
    return %c0_i32, %c0_i32_0, %c0_i32_1 : i32, i32, i32
  }
  func.func @transform_2(%arg0: i32) -> (i32, i32) {
    %c0_i32 = arith.constant 0 : i32
    %c0_i32_0 = arith.constant 0 : i32
    %c0_i32_1 = arith.constant 0 : i32
    return %c0_i32, %c0_i32_0 : i32, i32
  }
  func.func @transform_3(%arg0: i32) -> (i32, i32, i32) {
    %c0_i32 = arith.constant 0 : i32
    %c0_i32_0 = arith.constant 0 : i32
    %c0_i32_1 = arith.constant 0 : i32
    %c0_i32_2 = arith.constant 0 : i32
    return %c0_i32, %c0_i32_0, %c0_i32_1 : i32, i32, i32
  }
  func.func @transform_4(%arg0: i32) -> (i32, i32) {
    %c0_i32 = arith.constant 0 : i32
    %c0_i32_0 = arith.constant 0 : i32
    %c0_i32_1 = arith.constant 0 : i32
    return %c0_i32, %c0_i32_0 : i32, i32
  }
  func.func @transform_5(%arg0: i32) -> (i32, i32, i32) {
    %c0_i32 = arith.constant 0 : i32
    %c0_i32_0 = arith.constant 0 : i32
    %c0_i32_1 = arith.constant 0 : i32
    %c0_i32_2 = arith.constant 0 : i32
    return %c0_i32, %c0_i32_0, %c0_i32_1 : i32, i32, i32
  }
  func.func @transform_6(%arg0: i32) -> (i32, i32, i32) {
    %c0_i32 = arith.constant 0 : i32
    %c0_i32_0 = arith.constant 0 : i32
    %c0_i32_1 = arith.constant 0 : i32
    %c0_i32_2 = arith.constant 0 : i32
    return %c0_i32, %c0_i32_0, %c0_i32_1 : i32, i32, i32
  }
  func.func @transform_7(%arg0: i32) -> (i32, i32, i32) {
    %c0_i32 = arith.constant 0 : i32
    %c0_i32_0 = arith.constant 0 : i32
    %c0_i32_1 = arith.constant 0 : i32
    %c0_i32_2 = arith.constant 0 : i32
    return %c0_i32, %c0_i32_0, %c0_i32_1 : i32, i32, i32
  }
  func.func @transform_8(%arg0: i32) -> (i32, i32, i32) {
    %c0_i32 = arith.constant 0 : i32
    %c0_i32_0 = arith.constant 0 : i32
    %c0_i32_1 = arith.constant 0 : i32
    %c0_i32_2 = arith.constant 0 : i32
    return %c0_i32, %c0_i32_0, %c0_i32_1 : i32, i32, i32
  }
  func.func @transform_9(%arg0: i32) -> (i32, i32, i32) {
    %c0_i32 = arith.constant 0 : i32
    %c0_i32_0 = arith.constant 0 : i32
    %c0_i32_1 = arith.constant 0 : i32
    %c0_i32_2 = arith.constant 0 : i32
    return %c0_i32, %c0_i32_0, %c0_i32_1 : i32, i32, i32
  }
  func.func @transform_10(%arg0: i32) -> (i32, i32) {
    %c0_i32 = arith.constant 0 : i32
    %c0_i32_0 = arith.constant 0 : i32
    %c0_i32_1 = arith.constant 0 : i32
    return %c0_i32, %c0_i32_0 : i32, i32
  }
  func.func @transform_11(%arg0: i32) -> (i32, i32) {
    %c0_i32 = arith.constant 0 : i32
    %c0_i32_0 = arith.constant 0 : i32
    %c0_i32_1 = arith.constant 0 : i32
    return %c0_i32, %c0_i32_0 : i32, i32
  }
  func.func @transform_12(%arg0: i32) -> (i32, i32, i32) {
    %c0_i32 = arith.constant 0 : i32
    %c0_i32_0 = arith.constant 0 : i32
    %c0_i32_1 = arith.constant 0 : i32
    %c0_i32_2 = arith.constant 0 : i32
    return %c0_i32, %c0_i32_0, %c0_i32_1 : i32, i32, i32
  }
  func.func @transform_13(%arg0: i32) -> (i32, i32) {
    %c0_i32 = arith.constant 0 : i32
    %c0_i32_0 = arith.constant 0 : i32
    %c0_i32_1 = arith.constant 0 : i32
    return %c0_i32, %c0_i32_0 : i32, i32
  }
  func.func @transform_14(%arg0: i32) -> (i32, i32) {
    %c0_i32 = arith.constant 0 : i32
    %c0_i32_0 = arith.constant 0 : i32
    %c0_i32_1 = arith.constant 0 : i32
    return %c0_i32, %c0_i32_0 : i32, i32
  }
  func.func @transform_15(%arg0: i32) -> (i32, i32) {
    %c0_i32 = arith.constant 0 : i32
    %c0_i32_0 = arith.constant 0 : i32
    %c0_i32_1 = arith.constant 0 : i32
    return %c0_i32, %c0_i32_0 : i32, i32
  }
  func.func @transform_16(%arg0: i32) -> (i32, i32) {
    %c0_i32 = arith.constant 0 : i32
    %c0_i32_0 = arith.constant 0 : i32
    %c0_i32_1 = arith.constant 0 : i32
    return %c0_i32, %c0_i32_0 : i32, i32
  }
  func.func @transform_17(%arg0: i32) -> (i32, i32) {
    %c0_i32 = arith.constant 0 : i32
    %c0_i32_0 = arith.constant 0 : i32
    %c0_i32_1 = arith.constant 0 : i32
    return %c0_i32, %c0_i32_0 : i32, i32
  }
  func.func @transform_18(%arg0: i32) -> (i32, i32) {
    %c0_i32 = arith.constant 0 : i32
    %c0_i32_0 = arith.constant 0 : i32
    %c0_i32_1 = arith.constant 0 : i32
    return %c0_i32, %c0_i32_0 : i32, i32
  }
}

</mosaic_0001>

<bundles_post_ra>
// kernel: ssvep_forward.1
= control target key start
LH: loop header
LB: loop body
LE: loop exit
PB: predicated region body
PF: predicated region fallthrough
CT: control target
= control target key end

     0   :  { %s6716_s0 = inlined_call_operand.vmem [shape: f32[48,66], index: 0, kind: input, shape index: {}]   ;;  %s6717_s1 = inlined_call_operand.vmem [shape: f32[3,64,24], index: 1, kind: input, shape index: {}]   ;;  %s6718_s2 = inlined_call_operand.vmem [shape: f32[64,1], index: 2, kind: input, shape index: {}]   ;;  %s6719_s3 = inlined_call_operand.vmem [shape: f32[6,16,64], index: 3, kind: input, shape index: {}]   ;;  %s6720_s4 = inlined_call_operand.vmem [shape: f32[16,1], index: 4, kind: input, shape index: {}]   ;;  %s6721_s5 = inlined_call_operand.vmem [shape: f32[4,64,40], index: 5, kind: input, shape index: {}]   ;;  %s6722_s6 = inlined_call_operand.vmem [shape: f32[2,4,16], index: 6, kind: input, shape index: {}]   ;;  %s6723_s7 = inlined_call_operand.vmem [shape: f32[2,16,4], index: 7, kind: input, shape index: {}]   ;;  %s6724_s8 = inlined_call_operand.vmem [shape: f32[2,1,16], index: 8, kind: input, shape index: {}]   ;;  %s6725_s9 = inlined_call_operand.vmem [shape: f32[5,16,16], index: 9, kind: input, shape index: {}]   ;;  %s6726_s10 = inlined_call_operand.vmem [shape: f32[16,1], index: 10, kind: input, shape index: {}]   ;;  %s6727_s11 = inlined_call_operand.vmem [shape: f32[16,16], index: 11, kind: input, shape index: {}]   ;;  %s6728_s12 = inlined_call_operand.vmem [shape: f32[16,64,32], index: 12, kind: input, shape index: {}]   ;;  %s6729_s13 = inlined_call_operand.vmem [shape: f32[1,32], index: 13, kind: input, shape index: {}]   ;;  %s6730_s14 = inlined_call_operand.vmem [shape: f32[80,32], index: 14, kind: input, shape index: {}]   ;;  %s6731_s15 = inlined_call_operand.vmem [shape: f32[1,32], index: 15, kind: input, shape index: {}]   ;;  %s6732_s16 = inlined_call_operand.vmem [shape: f32[64,40], index: 16, kind: input, shape index: {}]   ;;  %s6733_s17 = inlined_call_operand.vmem [shape: f32[1,40], index: 17, kind: input, shape index: {}]   ;;  %s6734_s18 = inlined_call_operand.hbm [shape: f32[2,40], index: 18, kind: output, shape index: {}]  }
   0x1   :  { %6744 = sst [smem:[#allocation7_spill]] %s6716_s0 }
   0x2   :  { %6745 = sst [smem:[#allocation8_spill]] %s6717_s1 }
   0x3   :  { %6746 = sst [smem:[#allocation9_spill]] %s6718_s2 }
   0x4   :  { %s6747_s29 = sld [smem:[#allocation7_spill]]  ;;  %s4698_s20 = smov 126  }
   0xa   :  { %v91_v0 = vld [vmem:[%s6747_s29 + $0x8] sm:$0xff]  ;;  %v92_v1 = vld [vmem:[%s6747_s29 + $0x10] sm:$0xff]  ;;  %v90_v2 = vld [vmem:[%s6747_s29] sm:$0xff] }
   0xb   :  { %v4463_v3 = vpack.i.bf16 %v91_v0, %v92_v1  ;;  %254 = vrot.lane.b32.xlu1 %v90_v2, %s4698_s20  ;;  %217 = vmatpush.msra.mxu1 %v92_v1 }
   0xc   :  { %23 = vsyncpa [#allocation5], 0  ;;  %s4699_s21 = smov 127   ;;  %vm114_vm0 = vcmask 195584   ;;  %s6748_s23 = sld [smem:[#allocation8_spill]]  ;;  %v4700_v6 = vmov 0  }
   0xd   :  { %4464 = vrot.lane.b32.xlu0 %v4463_v3, %s4698_s20  ;;  %218 = vmatpush.msra.mxu1 %v91_v0  ;;  %s6749_s26 = sld [smem:[#allocation9_spill]]  ;;  %s6738_s27 = smov 1   ;;  %vm60_vm1 = vcmask 539648   ;;  %vm432_vm2 = vcmask 531464   ;;  %vm486_vm3 = vcmask 523264   ;;  %vm694_vm4 = vcmask 326656  }
   0xe   :  { %4474 = vset.pattern.permute.xlu0 %v4700_v6  ;;  %4475 = vset.pattern.permute.xlu1 %v4700_v6  ;;  %vm711_vm6 = vcmask 130048   ;;  %vm745_vm7 = vcmask 1043456   ;;  %vm738_vm8 = vcmask 31744   ;;  %s6742_s22 = smov 2   ;;  %s6741_s2 = smov 125  }
   0xf   :  { %219 = vmatpush.msra.mxu1 %v90_v2  ;;  %4473 = vset.pattern.permute.xlu2 %v4700_v6  ;;  %s6740_s28 = smov 124  }
  0x12   :  { %v82_v4 = vld [vmem:[%s6748_s23] sm:$0xff]  ;;  %v83_v7 = vld [vmem:[%s6748_s23 + $0x8] sm:$0xff]  ;;  %v84_v9 = vld [vmem:[%s6748_s23 + $0x10] sm:$0xff] }
  0x13   :  { %105 = vrot.lane.b32.xlu1 %v90_v2, %s4699_s21  ;;  %3947 = vmatmul.msk.f32.vlgmr.msra.gmra.mxu1 %vm114_vm0, %v82_v4  ;;  %v341_v5 = vld [vmem:[%s6749_s26 + $0x28] sm:$0xff]  ;;  %v336_v8 = vld [vmem:[%s6749_s26] sm:$0xff]  ;;  %v343_v11 = vld [vmem:[%s6749_s26 + $0x38] sm:$0xff] }
  0x14   :  { %v340_v12 = vld [vmem:[%s6749_s26 + $0x20] sm:$0xff]  ;;  %381 = vperm.xlu2 %4473, %v343_v11   ;;  %v85_v17 = vld [vmem:[%s6748_s23 + $0x18] sm:$0xff]  ;;  %v342_v19 = vld [vmem:[%s6749_s26 + $0x30] sm:$0xff] }
  0x15   :  { %4469 = vrot.lane.b32.xlu0 %v4463_v3, %s4699_s21  ;;  %v3955_v16 = vld [vmem:[%s6748_s23 + $0x80] sm:$0xff]  ;;  %v338_v20 = vld [vmem:[%s6749_s26 + $0x10] sm:$0xff]  ;;  %v3956_v25 = vld [vmem:[%s6748_s23 + $0x88] sm:$0xff] }
  0x16   :  { %v3931_v24 = vld [vmem:[%s6748_s23 + $0x40] sm:$0xff]  ;;  %v339_v27 = vld [vmem:[%s6749_s26 + $0x18] sm:$0xff]  ;;  %v3932_v28 = vld [vmem:[%s6748_s23 + $0x48] sm:$0xff] }
  0x17   :  { %v86_v26 = vld [vmem:[%s6748_s23 + $0x20] sm:$0xff]  ;;  %v3957_v29 = vld [vmem:[%s6748_s23 + $0x90] sm:$0xff]  ;;  %v87_v30 = vld [vmem:[%s6748_s23 + $0x28] sm:$0xff] }
  0x18   :  { %v337_v31 = vld [vmem:[%s6749_s26 + $0x8] sm:$0xff]  ;;  %v3933_v32 = vld [vmem:[%s6748_s23 + $0x50] sm:$0xff]  ;;  %v3958_v33 = vld [vmem:[%s6748_s23 + $0x98] sm:$0xff] }
  0x19   :  { %v88_v34 = vld [vmem:[%s6748_s23 + $0x30] sm:$0xff]  ;;  %v3934_v35 = vld [vmem:[%s6748_s23 + $0x58] sm:$0xff]  ;;  %v3959_v36 = vld [vmem:[%s6748_s23 + $0xa0] sm:$0xff] }
  0x1a   :  { %v89_v37 = vld [vmem:[%s6748_s23 + $0x38] sm:$0xff]  ;;  %v3935_v38 = vld [vmem:[%s6748_s23 + $0x60] sm:$0xff]  ;;  %v3960_v39 = vld [vmem:[%s6748_s23 + $0xa8] sm:$0xff] }
  0x1b   :  { %3948 = vmatmul.msk.f32.gmra.mxu1 %vm114_vm0, %v83_v7  ;;  %366 = vperm.xlu1 %4475, %v340_v12   ;;  %v3936_v40 = vld [vmem:[%s6748_s23 + $0x68] sm:$0xff]  ;;  %v3961_v41 = vld [vmem:[%s6748_s23 + $0xb0] sm:$0xff]  ;;  %v3962_v43 = vld [vmem:[%s6748_s23 + $0xb8] sm:$0xff] }
  0x1c   :  { %376 = vperm.xlu2 %4473, %v342_v19   ;;  %v3937_v42 = vld [vmem:[%s6748_s23 + $0x70] sm:$0xff]  ;;  %v3938_v44 = vld [vmem:[%s6748_s23 + $0x78] sm:$0xff] }
  0x1d   :  { %371 = vperm.xlu0 %4474, %v341_v5  }
  0x23   :  { %3949 = vmatmul.msk.f32.gmra.mxu1 %vm114_vm0, %v84_v9  ;;  %356 = vperm.xlu1 %4475, %v338_v20  }
  0x24   :  { %361 = vperm.xlu2 %4473, %v339_v27  }
  0x25   :  { %346 = vperm.xlu0 %4474, %v336_v8  }
  0x2b   :  { %3950 = vmatmul.msk.f32.gmra.mxu1 %vm114_vm0, %v85_v17 }
  0x2c   :  { %351 = vperm.xlu2 %4473, %v337_v31  }
  0x33   :  { %3951 = vmatmul.msk.f32.gmra.mxu1 %vm114_vm0, %v86_v26 }
  0x3b   :  { %3952 = vmatmul.msk.f32.gmra.mxu1 %vm114_vm0, %v87_v30 }
  0x43   :  { %3953 = vmatmul.msk.f32.gmra.mxu1 %vm114_vm0, %v88_v34 }
  0x4b   :  { %3954 = vmatmul.msk.f32.gmra.mxu1 %vm114_vm0, %v89_v37 }
  0x6e   :  { %v382_v61 = vpop.permute.xlu2 %381 }
  0x76   :  { %v377_v8 = vpop.permute.xlu2 %376 }
  0x7d   :  { %v255_v14 = vpop.permute.xlu1 %254 }
  0x7f   :  { %v4465_v10 = vpop.permute.xlu0 %4464 }
  0x80   :  { %v4466_v13 = vunpack.i.l.bf16 %v4465_v10  ;;  %v4467_v15 = vunpack.i.h.bf16 %v4465_v10 }
  0x82   :  { %300 = vmatpush.msra.mxu2 %v4466_v13 }
  0x84   :  { %301 = vmatpush.msra.mxu2 %v4467_v15 }
  0x85   :  { %v106_v23 = vpop.permute.xlu1 %105 }
  0x86   :  { %302 = vmatpush.msra.mxu2 %v255_v14 }
  0x87   :  { %v4470_v18 = vpop.permute.xlu0 %4469  ;;  %3963 = vmatmul.msk.f32.vlgmr.msra.gmra.mxu2 %vm114_vm0, %v3955_v16 }
  0x88   :  { %v4471_v21 = vunpack.i.l.bf16 %v4470_v18  ;;  %v4472_v22 = vunpack.i.h.bf16 %v4470_v18 }
  0x8a   :  { %152 = vmatpush.msra.mxu0 %v4471_v21 }
  0x8c   :  { %153 = vmatpush.msra.mxu0 %v4472_v22 }
  0x8d   :  { %v367_v62 = vpop.permute.xlu1 %366 }
  0x8e   :  { %154 = vmatpush.msra.mxu0 %v106_v23 }
  0x8f   :  { %3939 = vmatmul.msk.f32.vlgmr.msra.gmra.mxu0 %vm114_vm0, %v3931_v24  ;;  %3964 = vmatmul.msk.f32.gmra.mxu2 %vm114_vm0, %v3956_v25  ;;  %v372_v4 = vpop.permute.xlu0 %371  ;;  %v362_v25 = vpop.permute.xlu2 %361 }
  0x90   :  { %v221_v45 = vpop.f32.mrf.mxu1 }
  0x95   :  { %v357_v11 = vpop.permute.xlu1 %356 }
  0x97   :  { %3940 = vmatmul.msk.f32.gmra.mxu0 %vm114_vm0, %v3932_v28  ;;  %3965 = vmatmul.msk.f32.gmra.mxu2 %vm114_vm0, %v3957_v29 }
  0x98   :  { %v224_v46 = vpop.f32.mrf.mxu1 }
  0x9f   :  { %3941 = vmatmul.msk.f32.gmra.mxu0 %vm114_vm0, %v3933_v32  ;;  %3966 = vmatmul.msk.f32.gmra.mxu2 %vm114_vm0, %v3958_v33 }
  0xa0   :  { %v227_v49 = vpop.f32.mrf.mxu1 }
  0xa7   :  { %3942 = vmatmul.msk.f32.gmra.mxu0 %vm114_vm0, %v3934_v35  ;;  %3967 = vmatmul.msk.f32.gmra.mxu2 %vm114_vm0, %v3959_v36  ;;  %v347_v35 = vpop.permute.xlu0 %346 }
  0xa8   :  { %v230_v53 = vpop.f32.mrf.mxu1 }
  0xaf   :  { %3943 = vmatmul.msk.f32.gmra.mxu0 %vm114_vm0, %v3935_v38  ;;  %3968 = vmatmul.msk.f32.gmra.mxu2 %vm114_vm0, %v3960_v39 }
  0xb0   :  { %v233_v57 = vpop.f32.mrf.mxu1 }
  0xb7   :  { %3944 = vmatmul.msk.f32.gmra.mxu0 %vm114_vm0, %v3936_v40  ;;  %3969 = vmatmul.msk.f32.gmra.mxu2 %vm114_vm0, %v3961_v41 }
  0xb8   :  { %v236_v60 = vpop.f32.mrf.mxu1 }
  0xbf   :  { %3945 = vmatmul.msk.f32.gmra.mxu0 %vm114_vm0, %v3937_v42  ;;  %3970 = vmatmul.msk.f32.gmra.mxu2 %vm114_vm0, %v3962_v43  ;;  %v352_v42 = vpop.permute.xlu2 %351 }
  0xc0   :  { %v239_v5 = vpop.f32.mrf.mxu1 }
  0xc7   :  { %3946 = vmatmul.msk.f32.gmra.mxu0 %vm114_vm0, %v3938_v44 }
  0xc8   :  { %v242_v18 = vpop.f32.mrf.mxu1 }
 0x10a   :  { %v304_v47 = vpop.f32.mrf.mxu2 }
 0x10c   :  { %v156_v48 = vpop.f32.mrf.mxu0 }
 0x10d   :  { %v222_v26 = vadd.f32 %v221_v45, %v156_v48  ;;  %v4702_v45 = vmov 0.0  }
 0x10e   :  { %67 = vst.msk [vmem:[#allocation2 + $0x30] sm:$0xff] %vm60_vm1, %v4702_v45 }
 0x10f   :  { %v328_v31 = vadd.f32 %v304_v47, %v222_v26  ;;  %61 = vst.msk [vmem:[#allocation2] sm:$0xff] %vm60_vm1, %v4702_v45 }
 0x110   :  { %62 = vst.msk [vmem:[#allocation2 + $0x8] sm:$0xff] %vm60_vm1, %v4702_v45 }
 0x111   :  { %v384_v36 = vadd.f32 %v347_v35, %v328_v31  ;;  %63 = vst.msk [vmem:[#allocation2 + $0x10] sm:$0xff] %vm60_vm1, %v4702_v45  ;;  %v3990_v35 = vld [vmem:[%s6721_s5 + $0x78] sm:$0xff] }
 0x112   :  { %v307_v50 = vpop.f32.mrf.mxu2  ;;  %64 = vst.msk [vmem:[#allocation2 + $0x18] sm:$0xff] %vm60_vm1, %v4702_v45  ;;  %673 = vmatpush.msrb.mxu0 %v3990_v35 }
 0x113   :  { %v392_v39 = vmax.f32 %v384_v36, 0.0  ;;  %65 = vst.msk [vmem:[#allocation2 + $0x20] sm:$0xff] %vm60_vm1, %v4702_v45  ;;  %v625_v36 = vld [vmem:[%s6721_s5 + $0x30] sm:$0xff] }
 0x114   :  { %v159_v51 = vpop.f32.mrf.mxu0  ;;  %66 = vst.msk [vmem:[#allocation2 + $0x28] sm:$0xff] %vm60_vm1, %v4702_v45 }
 0x115   :  { %v225_v37 = vadd.f32 %v224_v46, %v159_v51  ;;  %68 = vst.msk [vmem:[#allocation2 + $0x38] sm:$0xff] %vm60_vm1, %v4702_v45 }
 0x116   :  { %69 = vst.msk [vmem:[#allocation2 + $0x40] sm:$0xff] %vm60_vm1, %v4702_v45 }
 0x117   :  { %v329_v40 = vadd.f32 %v307_v50, %v225_v37  ;;  %70 = vst.msk [vmem:[#allocation2 + $0x48] sm:$0xff] %vm60_vm1, %v4702_v45  ;;  %v3989_v37 = vld [vmem:[%s6721_s5 + $0x70] sm:$0xff] }
 0x118   :  { %71 = vst.msk [vmem:[#allocation2 + $0x50] sm:$0xff] %vm60_vm1, %v4702_v45  ;;  %674 = vmatpush.msrb.mxu0 %v3989_v37 }
 0x119   :  { %v385_v43 = vadd.f32 %v352_v42, %v329_v40  ;;  %72 = vst.msk [vmem:[#allocation2 + $0x58] sm:$0xff] %vm60_vm1, %v4702_v45  ;;  %v623_v40 = vld [vmem:[%s6721_s5 + $0x20] sm:$0xff] }
 0x11a   :  { %v310_v52 = vpop.f32.mrf.mxu2  ;;  %73 = vst.msk [vmem:[#allocation2 + $0x60] sm:$0xff] %vm60_vm1, %v4702_v45 }
 0x11b   :  { %v393_v44 = vmax.f32 %v385_v43, 0.0  ;;  %74 = vst.msk [vmem:[#allocation2 + $0x68] sm:$0xff] %vm60_vm1, %v4702_v45  ;;  %v622_v43 = vld [vmem:[%s6721_s5 + $0x18] sm:$0xff] }
 0x11c   :  { %v162_v54 = vpop.f32.mrf.mxu0  ;;  %75 = vst.msk [vmem:[#allocation2 + $0x70] sm:$0xff] %vm60_vm1, %v4702_v45 }
 0x11d   :  { %v228_v2 = vadd.f32 %v227_v49, %v162_v54  ;;  %76 = vst.msk [vmem:[#allocation2 + $0x78] sm:$0xff] %vm60_vm1, %v4702_v45 }
 0x11f   :  { %v330_v9 = vadd.f32 %v310_v52, %v228_v2 }
 0x121   :  { %v386_v14 = vadd.f32 %v357_v11, %v330_v9 }
 0x122   :  { %v313_v55 = vpop.f32.mrf.mxu2 }
 0x123   :  { %v394_v19 = vmax.f32 %v386_v14, 0.0 }
 0x124   :  { %v165_v56 = vpop.f32.mrf.mxu0 }
 0x125   :  { %v231_v15 = vadd.f32 %v230_v53, %v165_v56 }
 0x127   :  { %v331_v20 = vadd.f32 %v313_v55, %v231_v15 }
 0x129   :  { %v387_v27 = vadd.f32 %v362_v25, %v331_v20  ;;  %v441_v20 = vld [vmem:[%s6719_s3] sm:$0xff] }
 0x12a   :  { %v316_v58 = vpop.f32.mrf.mxu2 }
 0x12b   :  { %v395_v34 = vmax.f32 %v387_v27, 0.0  ;;  %v442_v27 = vld [vmem:[%s6719_s3 + $0x8] sm:$0xff] }
 0x12c   :  { %v168_v59 = vpop.f32.mrf.mxu0 }
 0x12d   :  { %v234_v28 = vadd.f32 %v233_v57, %v168_v59 }
 0x12f   :  { %v332_v32 = vadd.f32 %v316_v58, %v234_v28 }
 0x131   :  { %v388_v38 = vadd.f32 %v367_v62, %v332_v32  ;;  %v3977_v32 = vld [vmem:[%s6719_s3 + $0x20] sm:$0xff] }
 0x132   :  { %v319_v63 = vpop.f32.mrf.mxu2 }
 0x133   :  { %v396_v41 = vmax.f32 %v388_v38, 0.0  ;;  %v624_v38 = vld [vmem:[%s6721_s5 + $0x28] sm:$0xff] }
 0x134   :  { %v171_v0 = vpop.f32.mrf.mxu0 }
 0x135   :  { %v237_v1 = vadd.f32 %v236_v60, %v171_v0 }
 0x137   :  { %v333_v3 = vadd.f32 %v319_v63, %v237_v1  ;;  %v603_v63 = vld [vmem:[%s6720_s4] sm:$0xff] }
 0x139   :  { %v389_v6 = vadd.f32 %v372_v4, %v333_v3  ;;  %v604_v3 = vld [vmem:[%s6720_s4 + $0x8] sm:$0xff] }
 0x13a   :  { %v322_v7 = vpop.f32.mrf.mxu2 }
 0x13b   :  { %v397_v10 = vmax.f32 %v389_v6, 0.0 }
 0x13c   :  { %v174_v12 = vpop.f32.mrf.mxu0 }
 0x13d   :  { %v240_v13 = vadd.f32 %v239_v5, %v174_v12  ;;  %418 = vrot.lane.b32.xlu0 %v397_v10, %s6738_s27 }
 0x13f   :  { %v334_v16 = vadd.f32 %v322_v7, %v240_v13 }
 0x141   :  { %v390_v17 = vadd.f32 %v377_v8, %v334_v16  ;;  %v3971_v16 = vld [vmem:[%s6719_s3 + $0x10] sm:$0xff] }
 0x142   :  { %v325_v23 = vpop.f32.mrf.mxu2 }
 0x143   :  { %v398_v21 = vmax.f32 %v390_v17, 0.0  ;;  %v3972_v17 = vld [vmem:[%s6719_s3 + $0x18] sm:$0xff] }
 0x144   :  { %v177_v22 = vpop.f32.mrf.mxu0 }
 0x145   :  { %v243_v24 = vadd.f32 %v242_v18, %v177_v22  ;;  %420 = vrot.lane.b32.xlu2 %v398_v21, %s6738_s27  ;;  %412 = vrot.lane.b32.xlu0 %v394_v19, %s6738_s27 }
 0x147   :  { %v335_v29 = vadd.f32 %v325_v23, %v243_v24 }
 0x149   :  { %v391_v30 = vadd.f32 %v382_v61, %v335_v29 }
 0x14b   :  { %v399_v33 = vmax.f32 %v391_v30, 0.0 }
 0x14d   :  { %422 = vrot.lane.b32.xlu1 %v399_v33, %s6738_s27  ;;  %414 = vrot.lane.b32.xlu2 %v395_v34, %s6738_s27  ;;  %v3978_v33 = vld [vmem:[%s6719_s3 + $0x28] sm:$0xff]  ;;  %v626_v34 = vld [vmem:[%s6721_s5 + $0x38] sm:$0xff] }
 0x155   :  { %416 = vrot.lane.b32.xlu1 %v396_v41, %s6738_s27  ;;  %408 = vrot.lane.b32.xlu2 %v392_v39, %s6738_s27  ;;  %v3988_v39 = vld [vmem:[%s6721_s5 + $0x68] sm:$0xff]  ;;  %v3987_v41 = vld [vmem:[%s6721_s5 + $0x60] sm:$0xff] }
 0x156   :  { %675 = vmatpush.msrb.mxu0 %v3988_v39 }
 0x158   :  { %676 = vmatpush.msrb.mxu0 %v3987_v41 }
 0x15d   :  { %410 = vrot.lane.b32.xlu1 %v393_v44, %s6738_s27  ;;  %v3986_v44 = vld [vmem:[%s6721_s5 + $0x58] sm:$0xff] }
 0x15e   :  { %677 = vmatpush.msrb.mxu0 %v3986_v44 }
 0x19f   :  { %v421_v46 = vpop.permute.xlu2 %420 }
 0x1a0   :  { %439 = vst.msk [vmem:[#allocation2 + $0x30] sm:$0xff] %vm432_vm2, %v421_v46  ;;  %v621_v46 = vld [vmem:[%s6721_s5 + $0x10] sm:$0xff] }
 0x1a7   :  { %v415_v47 = vpop.permute.xlu2 %414  ;;  %v449_v56 = vld [vmem:[#allocation2 + $0x30] sm:$0xff] }
 0x1a8   :  { %436 = vst.msk [vmem:[#allocation2 + $0x18] sm:$0xff] %vm432_vm2, %v415_v47  ;;  %v3985_v47 = vld [vmem:[%s6721_s5 + $0x50] sm:$0xff] }
 0x1a9   :  { %678 = vmatpush.msrb.mxu0 %v3985_v47 }
 0x1af   :  { %v419_v48 = vpop.permute.xlu0 %418  ;;  %v409_v49 = vpop.permute.xlu2 %408  ;;  %v446_v53 = vld [vmem:[#allocation2 + $0x18] sm:$0xff] }
 0x1b0   :  { %438 = vst.msk [vmem:[#allocation2 + $0x28] sm:$0xff] %vm432_vm2, %v419_v48  ;;  %v620_v48 = vld [vmem:[%s6721_s5 + $0x8] sm:$0xff] }
 0x1b1   :  { %433 = vst.msk [vmem:[#allocation2] sm:$0xff] %vm432_vm2, %v409_v49  ;;  %v3984_v49 = vld [vmem:[%s6721_s5 + $0x48] sm:$0xff] }
 0x1b2   :  { %679 = vmatpush.msrb.mxu0 %v3984_v49 }
 0x1b7   :  { %v413_v50 = vpop.permute.xlu0 %412  ;;  %v448_v61 = vld [vmem:[#allocation2 + $0x28] sm:$0xff] }
 0x1b8   :  { %435 = vst.msk [vmem:[#allocation2 + $0x10] sm:$0xff] %vm432_vm2, %v413_v50  ;;  %v443_v0 = vld [vmem:[#allocation2] sm:$0xff] }
 0x1b9   :  { %v619_v50 = vld [vmem:[%s6721_s5] sm:$0xff] }
 0x1bf   :  { %v423_v51 = vpop.permute.xlu1 %422  ;;  %v445_v52 = vld [vmem:[#allocation2 + $0x10] sm:$0xff] }
 0x1c0   :  { %440 = vst.msk [vmem:[#allocation2 + $0x38] sm:$0xff] %vm432_vm2, %v423_v51  ;;  %v4486_v54 = vpack.i.bf16 %v445_v52, %v446_v53  ;;  %v3983_v51 = vld [vmem:[%s6721_s5 + $0x40] sm:$0xff] }
 0x1c1   :  { %680 = vmatpush.msrb.mxu0 %v3983_v51 }
 0x1c2   :  { %4487 = vrot.lane.b32.xlu2 %v4486_v54, %s4699_s21 }
 0x1c7   :  { %v417_v55 = vpop.permute.xlu1 %416  ;;  %v450_v57 = vld [vmem:[#allocation2 + $0x38] sm:$0xff] }
 0x1c8   :  { %437 = vst.msk [vmem:[#allocation2 + $0x20] sm:$0xff] %vm432_vm2, %v417_v55  ;;  %v4476_v58 = vpack.i.bf16 %v449_v56, %v450_v57 }
 0x1ca   :  { %4477 = vrot.lane.b32.xlu0 %v4476_v58, %s4699_s21 }
 0x1cf   :  { %v411_v59 = vpop.permute.xlu1 %410  ;;  %v447_v60 = vld [vmem:[#allocation2 + $0x20] sm:$0xff] }
 0x1d0   :  { %434 = vst.msk [vmem:[#allocation2 + $0x8] sm:$0xff] %vm432_vm2, %v411_v59  ;;  %v4481_v62 = vpack.i.bf16 %v447_v60, %v448_v61 }
 0x1d2   :  { %4482 = vrot.lane.b32.xlu1 %v4481_v62, %s4699_s21  ;;  %4502 = vrot.lane.b32.xlu2 %v4481_v62, %s4698_s20 }
 0x1d7   :  { %v444_v1 = vld [vmem:[#allocation2 + $0x8] sm:$0xff] }
 0x1d8   :  { %v4491_v2 = vpack.i.bf16 %v443_v0, %v444_v1 }
 0x1da   :  { %4497 = vrot.lane.b32.xlu1 %v4476_v58, %s4698_s20  ;;  %607 = vperm.xlu2 %4473, %v603_v63  }
 0x1db   :  { %4492 = vrot.lane.b32.xlu0 %v4491_v2, %s4699_s21 }
 0x1e2   :  { %4512 = vrot.lane.b32.xlu1 %v4491_v2, %s4698_s20 }
 0x1e3   :  { %4507 = vrot.lane.b32.xlu0 %v4486_v54, %s4698_s20 }
 0x1eb   :  { %612 = vperm.xlu0 %4474, %v604_v3  }
 0x21c   :  { %v4488_v9 = vpop.permute.xlu2 %4487 }
 0x21d   :  { %v4489_v11 = vunpack.i.l.bf16 %v4488_v9  ;;  %v4490_v12 = vunpack.i.h.bf16 %v4488_v9 }
 0x22c   :  { %v4503_v21 = vpop.permute.xlu2 %4502 }
 0x22d   :  { %v4504_v23 = vunpack.i.l.bf16 %v4503_v21  ;;  %v4505_v25 = vunpack.i.h.bf16 %v4503_v21 }
 0x234   :  { %v608_v58 = vpop.permute.xlu2 %607 }
 0x23c   :  { %v4478_v4 = vpop.permute.xlu0 %4477 }
 0x23d   :  { %v4479_v5 = vunpack.i.l.bf16 %v4478_v4  ;;  %v4480_v6 = vunpack.i.h.bf16 %v4478_v4 }
 0x23f   :  { %501 = vmatpush.msra.mxu3 %v4479_v5 }
 0x241   :  { %502 = vmatpush.msra.mxu3 %v4480_v6 }
 0x244   :  { %v4483_v7 = vpop.permute.xlu1 %4482 }
 0x245   :  { %v4484_v8 = vunpack.i.l.bf16 %v4483_v7  ;;  %v4485_v10 = vunpack.i.h.bf16 %v4483_v7 }
 0x247   :  { %503 = vmatpush.msra.mxu3 %v4484_v8 }
 0x249   :  { %504 = vmatpush.msra.mxu3 %v4485_v10 }
 0x24b   :  { %505 = vmatpush.msra.mxu3 %v4489_v11 }
 0x24c   :  { %v4498_v18 = vpop.permute.xlu1 %4497 }
 0x24d   :  { %v4493_v13 = vpop.permute.xlu0 %4492  ;;  %506 = vmatpush.msra.mxu3 %v4490_v12  ;;  %v4499_v19 = vunpack.i.l.bf16 %v4498_v18  ;;  %v4500_v22 = vunpack.i.h.bf16 %v4498_v18 }
 0x24e   :  { %v4494_v14 = vunpack.i.l.bf16 %v4493_v13  ;;  %v4495_v15 = vunpack.i.h.bf16 %v4493_v13 }
 0x250   :  { %507 = vmatpush.msra.mxu3 %v4494_v14 }
 0x252   :  { %508 = vmatpush.msra.mxu3 %v4495_v15 }
 0x253   :  { %3973 = vmatmul.msk.f32.vlgmr.msra.gmra.mxu3 %vm486_vm3, %v3971_v16  ;;  %v4703_v16 = vmov 40.0  }
 0x254   :  { %530 = vmatpush.msrb.mxu3 %v450_v57  ;;  %v4513_v28 = vpop.permute.xlu1 %4512  ;;  %4606 = vrcp.f32 %v4703_v16 }
 0x255   :  { %v4508_v24 = vpop.permute.xlu0 %4507  ;;  %v4514_v30 = vunpack.i.l.bf16 %v4513_v28  ;;  %v4515_v31 = vunpack.i.h.bf16 %v4513_v28 }
 0x256   :  { %531 = vmatpush.msrb.mxu3 %v449_v56  ;;  %v4509_v26 = vunpack.i.l.bf16 %v4508_v24  ;;  %v4510_v29 = vunpack.i.h.bf16 %v4508_v24 }
 0x258   :  { %532 = vmatpush.msrb.mxu3 %v448_v61 }
 0x25a   :  { %533 = vmatpush.msrb.mxu3 %v447_v60 }
 0x25b   :  { %3974 = vmatmul.msk.f32.gmra.mxu3 %vm486_vm3, %v3972_v17  ;;  %v4607_v17 = vpop.eup %4606 }
 0x25c   :  { %534 = vmatpush.msrb.mxu3 %v446_v53  ;;  %v702_v18 = vmul.f32 40.0, %v4607_v17  ;;  %vm706_vm5 = vweird.f32 %v4607_v17 }
 0x25e   :  { %535 = vmatpush.msrb.mxu3 %v445_v52 }
 0x260   :  { %536 = vmatpush.msrb.mxu3 %v444_v1 }
 0x262   :  { %537 = vmatpush.msrb.mxu3 %v443_v0  ;;  %v613_v0 = vpop.permute.xlu0 %612 }
 0x263   :  { %3975 = vmatmul.msk.f32.vlgmr.msrb.gmra.mxu3 %vm486_vm3, %v441_v20 }
 0x264   :  { %586 = vmatpush.msra.mxu3 %v4499_v19  ;;  %v703_v19 = vsub.f32 1.0, %v702_v18 }
 0x266   :  { %587 = vmatpush.msra.mxu3 %v4500_v22  ;;  %v704_v20 = vmul.f32 %v4607_v17, %v703_v19 }
 0x268   :  { %588 = vmatpush.msra.mxu3 %v4504_v23  ;;  %v705_v21 = vadd.f32 %v4607_v17, %v704_v20  ;;  %v1077_v20 = vld [vmem:[%s6726_s10 + $0x8] sm:$0xff] }
 0x26a   :  { %589 = vmatpush.msra.mxu3 %v4505_v25  ;;  %v5092_v22 = vsel %vm706_vm5, %v4607_v17, %v705_v21  ;;  %vm77_vm5 = vcmask 556032   ;;  %v1076_v21 = vld [vmem:[%s6726_s10] sm:$0xff] }
 0x26b   :  { %3976 = vmatmul.msk.f32.gmra.mxu3 %vm486_vm3, %v442_v27  ;;  %v710_v27 = vld [vmem:[%s6722_s6] sm:$0xf]  ;;  %78 = vst.msk [vmem:[#allocation3] sm:$0xff] %vm77_vm5, %v4702_v45 }
 0x26c   :  { %590 = vmatpush.msra.mxu3 %v4509_v26  ;;  %79 = vst.msk [vmem:[#allocation3 + $0x8] sm:$0xff] %vm77_vm5, %v4702_v45 }
 0x26d   :  { %80 = vst.msk [vmem:[#allocation3 + $0x10] sm:$0xff] %vm77_vm5, %v4702_v45 }
 0x26e   :  { %591 = vmatpush.msra.mxu3 %v4510_v29  ;;  %81 = vst.msk [vmem:[#allocation3 + $0x18] sm:$0xff] %vm77_vm5, %v4702_v45 }
 0x270   :  { %592 = vmatpush.msra.mxu3 %v4514_v30  ;;  %v736_v30 = vld [vmem:[%s6723_s7] sm:$0xff] }
 0x272   :  { %593 = vmatpush.msra.mxu3 %v4515_v31  ;;  %v737_v31 = vld [vmem:[%s6723_s7 + $0x8] sm:$0xff] }
 0x273   :  { %3979 = vmatmul.msk.f32.vlgmr.msra.gmra.mxu3 %vm486_vm3, %v3977_v32 }
 0x274   :  { %641 = vmatpush.msrb.mxu3 %v626_v34 }
 0x276   :  { %642 = vmatpush.msrb.mxu3 %v625_v36 }
 0x278   :  { %643 = vmatpush.msrb.mxu3 %v624_v38 }
 0x27a   :  { %644 = vmatpush.msrb.mxu3 %v623_v40 }
 0x27b   :  { %3980 = vmatmul.msk.f32.gmra.mxu3 %vm486_vm3, %v3978_v33 }
 0x27c   :  { %645 = vmatpush.msrb.mxu3 %v622_v43 }
 0x27e   :  { %646 = vmatpush.msrb.mxu3 %v621_v46 }
 0x280   :  { %647 = vmatpush.msrb.mxu3 %v620_v48 }
 0x282   :  { %648 = vmatpush.msrb.mxu3 %v619_v50 }
 0x2d6   :  { %v510_v42 = vpop.f32.mrf.mxu3 }
 0x2de   :  { %v513_v52 = vpop.f32.mrf.mxu3 }
 0x2e6   :  { %v539_v53 = vpop.f32.mrf.mxu3 }
 0x2e7   :  { %v540_v55 = vadd.f32 %v539_v53, %v510_v42 }
 0x2ee   :  { %v542_v54 = vpop.f32.mrf.mxu3 }
 0x2ef   :  { %v543_v61 = vadd.f32 %v542_v54, %v513_v52 }
 0x2f6   :  { %v595_v56 = vpop.f32.mrf.mxu3 }
 0x2f7   :  { %v601_v57 = vadd.f32 %v595_v56, %v540_v55 }
 0x2f9   :  { %v615_v59 = vadd.f32 %v608_v58, %v601_v57 }
 0x2fb   :  { %v5070_v60 = vmax.f32 %v615_v59, 0.0 }
 0x2fd   :  { %3981 = vmatmul.msk.f32.vlgmr.msrb.gmra.mxu3 %vm486_vm3, %v5070_v60  ;;  %3991 = vmatmul.msk.f32.vlgmr.msrb.gmra.mxu0 %vm486_vm3, %v5070_v60 }
 0x2fe   :  { %v598_v62 = vpop.f32.mrf.mxu3 }
 0x2ff   :  { %v602_v63 = vadd.f32 %v598_v62, %v543_v61 }
 0x301   :  { %v616_v1 = vadd.f32 %v613_v0, %v602_v63 }
 0x303   :  { %v5076_v2 = vmax.f32 %v616_v1, 0.0 }
 0x305   :  { %3982 = vmatmul.msk.f32.gmra.mxu3 %vm486_vm3, %v5076_v2  ;;  %3992 = vmatmul.msk.f32.gmra.mxu0 %vm486_vm3, %v5076_v2 }
 0x37a   :  { %v682_v3 = vpop.f32.mrf.mxu0 }
 0x37b   :  { %v690_v5 = vmul.f32 %v682_v3, %v682_v3 }
 0x380   :  { %v650_v4 = vpop.f32.mrf.mxu3 }
 0x381   :  { %v688_v6 = vmul.f32 %v650_v4, %v650_v4 }
 0x382   :  { %v685_v9 = vpop.f32.mrf.mxu0 }
 0x383   :  { %v5082_v7 = vadd.f32 %v690_v5, %v688_v6  ;;  %v691_v11 = vmul.f32 %v685_v9, %v685_v9 }
 0x385   :  { %v695_v8 = vsel %vm694_vm4, %v5082_v7, 0.0  ;;  %v826_v14 = vsel %vm694_vm4, %v5082_v7, -inf }
 0x386   :  { %696 = vadd.xlane.f32.xlu2 %v695_v8 }
 0x388   :  { %v653_v10 = vpop.f32.mrf.mxu3 }
 0x389   :  { %v689_v12 = vmul.f32 %v653_v10, %v653_v10 }
 0x38b   :  { %v5086_v13 = vadd.f32 %v691_v11, %v689_v12 }
 0x38d   :  { %v698_v15 = vsel %vm694_vm4, %v5086_v13, 0.0  ;;  %v829_v0 = vsel %vm694_vm4, %v5086_v13, -inf }
 0x38e   :  { %827 = vmax.xlane.f32.xlu2 %v826_v14  ;;  %699 = vadd.xlane.f32.xlu1 %v698_v15 }
 0x3f9   :  { %v697_v23 = vpop.xlane.xlu2 %696 }
 0x3fa   :  { %v708_v26 = vmul.f32 %v5092_v22, %v697_v23 }
 0x401   :  { %v700_v24 = vpop.xlane.xlu1 %699  ;;  %v828_v9 = vpop.xlane.xlu2 %827 }
 0x402   :  { %v709_v25 = vmul.f32 %v5092_v22, %v700_v24 }
 0x404   :  { %729 = vmatpush.msrb.mxu1 %v709_v25 }
 0x406   :  { %730 = vmatpush.msrb.mxu1 %v708_v26 }
 0x407   :  { %3993 = vmatmul.msk.f32.vlgmr.msrb.gmra.mxu1 %vm711_vm6, %v710_v27 }
 0x484   :  { %v732_v28 = vpop.f32.mrf.mxu1 }
 0x485   :  { %v735_v29 = vmax.f32 %v732_v28, 0.0 }
 0x487   :  { %3994 = vmatpush.msk.msrb.mxu2 %vm745_vm7, %v735_v29  ;;  %v883_v29 = vld [vmem:[%s6725_s9] sm:$0xff] }
 0x488   :  { %3995 = vmatmul.msk.f32.vlgmr.msrb.gmra.mxu2 %vm738_vm8, %v736_v30  ;;  %v848_v30 = vld [vmem:[%s6724_s8] sm:$0x1] }
 0x490   :  { %3996 = vmatmul.msk.f32.gmra.mxu2 %vm738_vm8, %v737_v31  ;;  %v884_v31 = vld [vmem:[%s6725_s9 + $0x8] sm:$0xff] }
 0x50b   :  { %v766_v32 = vpop.f32.mrf.mxu2 }
 0x50c   :  { %v3997_v33 = vmul.f32 -1.442695, %v766_v32 }
 0x50e   :  { %4608 = vpow2.f32 %v3997_v33 }
 0x513   :  { %v769_v34 = vpop.f32.mrf.mxu2 }
 0x514   :  { %v4609_v35 = vpop.eup %4608  ;;  %v3998_v36 = vmul.f32 -1.442695, %v769_v34 }
 0x515   :  { %v778_v37 = vadd.f32 1.0, %v4609_v35 }
 0x516   :  { %4610 = vpow2.f32 %v3998_v36 }
 0x517   :  { %4612 = vrcp.f32 %v778_v37  ;;  %v791_v56 = vand.u32 2147483648, %v778_v37  ;;  %vm785_vm14 = vweird.f32 %v778_v37  ;;  %v789_v58 = vand.u32 2147483647, %v778_v37 }
 0x519   :  { %v792_v61 = vor.u32 1.1754944e-38, %v791_v56  ;;  %vm790_vm1 = vcmp.eq.f32.partialorder %v789_v58, 8.507059e+37  ;;  %v4036_v56 = vld [vmem:[%s6721_s5 + $0xf0] sm:$0xff]  ;;  %v4035_v58 = vld [vmem:[%s6721_s5 + $0xe8] sm:$0xff] }
 0x51c   :  { %v4611_v38 = vpop.eup %4610 }
 0x51d   :  { %v779_v39 = vadd.f32 1.0, %v4611_v38  ;;  %v4613_v40 = vpop.eup %4612 }
 0x51e   :  { %v781_v41 = vmul.f32 %v4613_v40, %v778_v37  ;;  %vm786_vm13 = vweird.f32 %v4613_v40  ;;  %v4000_v37 = vld [vmem:[%s6725_s9 + $0x10] sm:$0xff] }
 0x51f   :  { %4614 = vrcp.f32 %v779_v39  ;;  %v806_v47 = vand.u32 2147483648, %v779_v39  ;;  %v804_v49 = vand.u32 2147483647, %v779_v39  ;;  %vm800_vm10 = vweird.f32 %v779_v39  ;;  %vm787_vm15 = vmor %vm785_vm14, %vm786_vm13 }
 0x520   :  { %v782_v44 = vsub.f32 1.0, %v781_v41 }
 0x521   :  { %v807_v52 = vor.u32 1.1754944e-38, %v806_v47  ;;  %vm805_vm12 = vcmp.eq.f32.partialorder %v804_v49, 8.507059e+37  ;;  %v4006_v49 = vld [vmem:[%s6725_s9 + $0x20] sm:$0xff] }
 0x522   :  { %v783_v50 = vmul.f32 %v4613_v40, %v782_v44  ;;  %v4011_v44 = vld [vmem:[%s6725_s9 + $0x38] sm:$0xff] }
 0x524   :  { %v784_v54 = vadd.f32 %v4613_v40, %v783_v50  ;;  %v4014_v50 = vld [vmem:[%s6725_s9 + $0x40] sm:$0xff] }
 0x525   :  { %v4615_v42 = vpop.eup %4614 }
 0x526   :  { %v796_v43 = vmul.f32 %v4615_v42, %v779_v39  ;;  %vm801_vm9 = vweird.f32 %v4615_v42  ;;  %v788_v59 = vsel %vm787_vm15, %v4613_v40, %v784_v54  ;;  %v4010_v39 = vld [vmem:[%s6725_s9 + $0x30] sm:$0xff]  ;;  %v4037_v54 = vld [vmem:[%s6721_s5 + $0xf8] sm:$0xff] }
 0x527   :  { %vm802_vm11 = vmor %vm800_vm10, %vm801_vm9  ;;  %v793_v62 = vsel %vm790_vm1, %v792_v61, %v788_v59  ;;  %vm880_vm9 = vcmask 539664   ;;  %v4024_v59 = vld [vmem:[%s6721_s5 + $0xa0] sm:$0xff] }
 0x528   :  { %v797_v46 = vsub.f32 1.0, %v796_v43  ;;  %v810_v63 = vadd.f32 1.0, %v793_v62  ;;  %v4001_v43 = vld [vmem:[%s6725_s9 + $0x18] sm:$0xff]  ;;  %v4034_v61 = vld [vmem:[%s6721_s5 + $0xe0] sm:$0xff] }
 0x529   :  { %v4023_v62 = vld [vmem:[%s6721_s5 + $0x98] sm:$0xff] }
 0x52a   :  { %v798_v48 = vmul.f32 %v4615_v42, %v797_v46 }
 0x52c   :  { %v799_v51 = vadd.f32 %v4615_v42, %v798_v48 }
 0x52e   :  { %v803_v53 = vsel %vm802_vm11, %v4615_v42, %v799_v51  ;;  %v4007_v51 = vld [vmem:[%s6725_s9 + $0x28] sm:$0xff] }
 0x52f   :  { %v808_v55 = vsel %vm805_vm12, %v807_v52, %v803_v53  ;;  %v4015_v52 = vld [vmem:[%s6725_s9 + $0x48] sm:$0xff]  ;;  %v4027_v53 = vld [vmem:[%s6721_s5 + $0xb8] sm:$0xff] }
 0x530   :  { %v811_v57 = vadd.f32 1.0, %v808_v55  ;;  %v4026_v55 = vld [vmem:[%s6721_s5 + $0xb0] sm:$0xff] }
 0x532   :  { %819 = vperm.xlu0 %4474, %v811_v57   ;;  %v4025_v57 = vld [vmem:[%s6721_s5 + $0xa8] sm:$0xff] }
 0x53a   :  { %814 = vperm.xlu0 %4474, %v810_v63   ;;  %v4033_v63 = vld [vmem:[%s6721_s5 + $0xd8] sm:$0xff] }
 0x564   :  { %830 = vmax.xlane.f32.xlu0 %v829_v0  ;;  %v4022_v0 = vld [vmem:[%s6721_s5 + $0x90] sm:$0xff] }
 0x5a4   :  { %v820_v1 = vpop.permute.xlu0 %819 }
 0x5a5   :  { %v823_v3 = vmul.f32 %v820_v1, %v5076_v2  ;;  %v832_v2 = vsub.f32 %v5082_v7, %v828_v9  ;;  %v4032_v1 = vld [vmem:[%s6721_s5 + $0xd0] sm:$0xff] }
 0x5a7   :  { %v825_v4 = vmax.f32 %v823_v3, 0.0  ;;  %v834_v10 = vmul.f32 1.442695, %v832_v2  ;;  %v4021_v3 = vld [vmem:[%s6721_s5 + $0x88] sm:$0xff] }
 0x5a9   :  { %876 = vrot.lane.b32.xlu1 %v825_v4, %s6742_s22  ;;  %4616 = vpow2.f32 %v834_v10  ;;  %v4031_v4 = vld [vmem:[%s6721_s5 + $0xc8] sm:$0xff] }
 0x5ac   :  { %v815_v5 = vpop.permute.xlu0 %814 }
 0x5ad   :  { %v822_v6 = vmul.f32 %v815_v5, %v5070_v60  ;;  %v4020_v5 = vld [vmem:[%s6721_s5 + $0x80] sm:$0xff] }
 0x5af   :  { %v824_v8 = vmax.f32 %v822_v6, 0.0  ;;  %v4617_v11 = vpop.eup %4616  ;;  %v4030_v6 = vld [vmem:[%s6721_s5 + $0xc0] sm:$0xff] }
 0x5b0   :  { %v838_v14 = vsel %vm694_vm4, %v4617_v11, 0.0 }
 0x5b1   :  { %874 = vrot.lane.b32.xlu2 %v824_v8, %s6742_s22  ;;  %s3922_s22 = sshll.u32 %s6734_s18, 4  ;;  %s3923_s22 = int_to_ptr.hbm [resolvable:$true] %s3922_s22 }
 0x5d7   :  { %v831_v12 = vpop.xlane.xlu0 %830 }
 0x5d8   :  { %v833_v60 = vsub.f32 %v5086_v13, %v831_v12 }
 0x5da   :  { %v836_v15 = vmul.f32 1.442695, %v833_v60  ;;  %839 = vadd.xlane.f32.xlu2 %v838_v14 }
 0x5dc   :  { %4618 = vpow2.f32 %v836_v15 }
 0x5e2   :  { %v4619_v16 = vpop.eup %4618 }
 0x5e3   :  { %v841_v17 = vsel %vm694_vm4, %v4619_v16, 0.0 }
 0x5e4   :  { %842 = vadd.xlane.f32.xlu0 %v841_v17 }
 0x60b   :  { %v875_v18 = vpop.permute.xlu2 %874 }
 0x60c   :  { %881 = vst.msk [vmem:[#allocation3] sm:$0xff] %vm880_vm9, %v875_v18 }
 0x613   :  { %v885_v19 = vld [vmem:[#allocation3] sm:$0xff] }
 0x61b   :  { %v877_v45 = vpop.permute.xlu1 %876 }
 0x61c   :  { %882 = vst.msk [vmem:[#allocation3 + $0x8] sm:$0xff] %vm880_vm9, %v877_v45 }
 0x623   :  { %v886_v7 = vld [vmem:[#allocation3 + $0x8] sm:$0xff] }
 0x624   :  { %947 = vmatpush.msra.mxu0 %v886_v7  ;;  %v4516_v13 = vpack.i.bf16 %v885_v19, %v886_v7 }
 0x626   :  { %4517 = vrot.lane.b32.xlu1 %v4516_v13, %s4699_s21  ;;  %948 = vmatpush.msra.mxu0 %v885_v19 }
 0x627   :  { %4522 = vrot.lane.b32.xlu0 %v4516_v13, %s6741_s2  ;;  %4004 = vmatmul.msk.f32.vlgmr.msra.gmra.mxu0 %vm711_vm6, %v883_v29  ;;  %s6752_s2 = smov 125  }
 0x62e   :  { %4527 = vrot.lane.b32.xlu1 %v4516_v13, %s6740_s28 }
 0x62f   :  { %1085 = vperm.xlu0 %4474, %v1077_v20   ;;  %4005 = vmatmul.msk.f32.gmra.mxu0 %vm711_vm6, %v884_v31 }
 0x636   :  { %4532 = vrot.lane.b32.xlu1 %v4516_v13, %s4698_s20 }
 0x63e   :  { %1080 = vperm.xlu1 %4475, %v1076_v21  }
 0x64d   :  { %v840_v23 = vpop.xlane.xlu2 %839 }
 0x64e   :  { %4620 = vrcp.f32 %v840_v23 }
 0x654   :  { %v4621_v25 = vpop.eup %4620 }
 0x655   :  { %v846_v28 = vmul.f32 %v4621_v25, %v4617_v11 }
 0x657   :  { %v843_v24 = vpop.xlane.xlu0 %842 }
 0x658   :  { %4622 = vrcp.f32 %v843_v24 }
 0x65e   :  { %v4623_v26 = vpop.eup %4622 }
 0x65f   :  { %v847_v27 = vmul.f32 %v4623_v26, %v4619_v16 }
 0x661   :  { %866 = vmatpush.msra.mxu1 %v847_v27 }
 0x663   :  { %867 = vmatpush.msra.mxu1 %v846_v28 }
 0x664   :  { %3999 = vmatmul.msk.f32.vlgmr.msra.gmra.mxu1 %vm711_vm6, %v848_v30 }
 0x698   :  { %v4518_v32 = vpop.permute.xlu1 %4517 }
 0x699   :  { %v4519_v33 = vunpack.i.l.bf16 %v4518_v32  ;;  %v4523_v34 = vpop.permute.xlu0 %4522  ;;  %v4520_v36 = vunpack.i.h.bf16 %v4518_v32 }
 0x69a   :  { %v4524_v35 = vunpack.i.l.bf16 %v4523_v34  ;;  %v4525_v38 = vunpack.i.h.bf16 %v4523_v34 }
 0x69b   :  { %918 = vmatpush.msra.mxu3 %v4519_v33 }
 0x69c   :  { %1025 = vmatpush.msra.mxu2 %v4524_v35 }
 0x69d   :  { %919 = vmatpush.msra.mxu3 %v4520_v36 }
 0x69e   :  { %1026 = vmatpush.msra.mxu2 %v4525_v38  ;;  %4002 = vmatmul.msk.f32.vlgmr.msra.gmra.mxu3 %vm711_vm6, %v4000_v37 }
 0x69f   :  { %4012 = vmatmul.msk.f32.vlgmr.msra.gmra.mxu2 %vm711_vm6, %v4010_v39 }
 0x6a0   :  { %v4528_v40 = vpop.permute.xlu1 %4527  ;;  %1178 = vmatpush.msrb.mxu2 %v4037_v54 }
 0x6a1   :  { %v4529_v41 = vunpack.i.l.bf16 %v4528_v40  ;;  %v4530_v42 = vunpack.i.h.bf16 %v4528_v40  ;;  %v1086_v27 = vpop.permute.xlu0 %1085 }
 0x6a2   :  { %1179 = vmatpush.msrb.mxu2 %v4036_v56 }
 0x6a3   :  { %1065 = vmatpush.msrb.mxu3 %v4529_v41 }
 0x6a4   :  { %1180 = vmatpush.msrb.mxu2 %v4035_v58  ;;  %v950_v2 = vpop.f32.mrf.mxu0 }
 0x6a5   :  { %1066 = vmatpush.msrb.mxu3 %v4530_v42 }
 0x6a6   :  { %4003 = vmatmul.msk.f32.gmra.mxu3 %vm711_vm6, %v4001_v43  ;;  %1181 = vmatpush.msrb.mxu2 %v4034_v61  ;;  %v1092_v61 = vld [vmem:[%s6727_s11] sm:$0xff] }
 0x6a7   :  { %4013 = vmatmul.msk.f32.gmra.mxu2 %vm711_vm6, %v4011_v44 }
 0x6a8   :  { %v4533_v46 = vpop.permute.xlu1 %4532  ;;  %1182 = vmatpush.msrb.mxu2 %v4033_v63  ;;  %v5264_v63 = vld [vmem:[%s6747_s29 + $0x28] sm:$0xff] }
 0x6a9   :  { %v4534_v47 = vunpack.i.l.bf16 %v4533_v46  ;;  %v4535_v48 = vunpack.i.h.bf16 %v4533_v46 }
 0x6aa   :  { %1183 = vmatpush.msrb.mxu2 %v4032_v1  ;;  %v5276_v1 = vld [vmem:[%s6747_s29 + $0x18] sm:$0xff] }
 0x6ab   :  { %985 = vmatpush.msrb.mxu1 %v4534_v47  ;;  %1114 = vmatpush.msrb.mxu0 %v4534_v47 }
 0x6ac   :  { %1184 = vmatpush.msrb.mxu2 %v4031_v4  ;;  %v953_v15 = vpop.f32.mrf.mxu0  ;;  %v2273_v4 = vld [vmem:[%s6749_s26 + $0x10] sm:$0xff] }
 0x6ad   :  { %986 = vmatpush.msrb.mxu1 %v4535_v48  ;;  %1115 = vmatpush.msrb.mxu0 %v4535_v48 }
 0x6ae   :  { %4008 = vmatmul.msk.f32.vlgmr.msrb.gmra.mxu1 %vm711_vm6, %v4006_v49  ;;  %4016 = vmatmul.msk.f32.vlgmr.msrb.gmra.mxu3 %vm711_vm6, %v4014_v50 }
 0x6af   :  { %1146 = vmatpush.msra.mxu1 %v4027_v53  ;;  %1185 = vmatpush.msrb.mxu2 %v4030_v6 }
 0x6b0   :  { %v1081_v7 = vpop.permute.xlu1 %1080  ;;  %4018 = vmatmul.msk.f32.vlgmr.msrb.gmra.mxu0 %vm711_vm6, %v1092_v61  ;;  %v4066_v61 = vld [vmem:[%s6728_s12 + $0xa8] sm:$0xff] }
 0x6b1   :  { %1147 = vmatpush.msra.mxu1 %v4026_v55 }
 0x6b3   :  { %1148 = vmatpush.msra.mxu1 %v4025_v57 }
 0x6b5   :  { %1149 = vmatpush.msra.mxu1 %v4024_v59 }
 0x6b6   :  { %4009 = vmatmul.msk.f32.gmra.mxu1 %vm711_vm6, %v4007_v51  ;;  %4017 = vmatmul.msk.f32.gmra.mxu3 %vm711_vm6, %v4015_v52  ;;  %v4040_v52 = vld [vmem:[%s6722_s6 + $0x4] sm:$0xf] }
 0x6b7   :  { %1150 = vmatpush.msra.mxu1 %v4023_v62  ;;  %v5259_v62 = vld [vmem:[%s6747_s29 + $0x20] sm:$0xff] }
 0x6b9   :  { %1151 = vmatpush.msra.mxu1 %v4022_v0  ;;  %v5269_v0 = vpack.i.bf16 %v5259_v62, %v5264_v63 }
 0x6bb   :  { %1152 = vmatpush.msra.mxu1 %v4021_v3  ;;  %v2276_v3 = vld [vmem:[%s6749_s26 + $0x28] sm:$0xff] }
 0x6bd   :  { %1153 = vmatpush.msra.mxu1 %v4020_v5  ;;  %v1093_v5 = vld [vmem:[%s6727_s11 + $0x8] sm:$0xff] }
 0x6be   :  { %4019 = vmatmul.msk.f32.gmra.mxu0 %vm711_vm6, %v1093_v5  ;;  %v1373_v5 = vld [vmem:[%s6728_s12 + $0x18] sm:$0xff] }
 0x6e1   :  { %v5227_v9 = vpop.f32.mrf.mxu1 }
 0x721   :  { %v921_v8 = vpop.f32.mrf.mxu3 }
 0x722   :  { %v951_v11 = vadd.f32 %v950_v2, %v921_v8  ;;  %v1028_v60 = vpop.f32.mrf.mxu2 }
 0x729   :  { %v924_v10 = vpop.f32.mrf.mxu3 }
 0x72a   :  { %v954_v18 = vadd.f32 %v953_v15, %v924_v10  ;;  %v1031_v21 = vpop.f32.mrf.mxu2 }
 0x72b   :  { %v988_v12 = vpop.f32.mrf.mxu1 }
 0x72c   :  { %v994_v14 = vadd.f32 %v988_v12, %v951_v11 }
 0x72e   :  { %v1034_v16 = vadd.f32 %v1028_v60, %v994_v14  ;;  %v4042_v60 = vld [vmem:[%s6723_s7 + $0x10] sm:$0xff] }
 0x731   :  { %v1068_v17 = vpop.f32.mrf.mxu3 }
 0x732   :  { %v1074_v45 = vadd.f32 %v1068_v17, %v1034_v16  ;;  %v4043_v16 = vld [vmem:[%s6723_s7 + $0x18] sm:$0xff]  ;;  %v5299_v17 = vpop.f32.mrf.mxu0 }
 0x733   :  { %v991_v19 = vpop.f32.mrf.mxu1 }
 0x734   :  { %v1088_v13 = vadd.f32 %v1081_v7, %v1074_v45  ;;  %v995_v20 = vadd.f32 %v991_v19, %v954_v18 }
 0x736   :  { %v5229_v23 = vmax.f32 %v1088_v13, 0.0  ;;  %v1035_v24 = vadd.f32 %v1031_v21, %v995_v20 }
 0x738   :  { %4028 = vmatmul.msk.f32.vlgmr.msra.gmra.mxu1 %vm486_vm3, %v5229_v23  ;;  %4038 = vmatmul.msk.f32.vlgmr.msrb.gmra.mxu2 %vm486_vm3, %v5229_v23 }
 0x739   :  { %v1071_v25 = vpop.f32.mrf.mxu3 }
 0x73a   :  { %v1075_v26 = vadd.f32 %v1071_v25, %v1035_v24 }
 0x73b   :  { %v5301_v18 = vpop.f32.mrf.mxu0 }
 0x73c   :  { %v1089_v28 = vadd.f32 %v1086_v27, %v1075_v26 }
 0x73e   :  { %v5235_v29 = vmax.f32 %v1089_v28, 0.0 }
 0x740   :  { %4029 = vmatmul.msk.f32.gmra.mxu1 %vm486_vm3, %v5235_v29  ;;  %4039 = vmatmul.msk.f32.gmra.mxu2 %vm486_vm3, %v5235_v29 }
 0x7b5   :  { %v1155_v30 = vpop.f32.mrf.mxu1 }
 0x7b6   :  { %v1193_v32 = vmul.f32 %v1155_v30, %v1155_v30 }
 0x7bb   :  { %v1187_v31 = vpop.f32.mrf.mxu2 }
 0x7bc   :  { %v1195_v33 = vmul.f32 %v1187_v31, %v1187_v31 }
 0x7bd   :  { %v1158_v36 = vpop.f32.mrf.mxu1 }
 0x7be   :  { %v1197_v34 = vadd.f32 %v1195_v33, %v1193_v32  ;;  %v1194_v38 = vmul.f32 %v1158_v36, %v1158_v36 }
 0x7c0   :  { %v1199_v35 = vsel %vm694_vm4, %v1197_v34, 0.0  ;;  %v1306_v43 = vsel %vm694_vm4, %v1197_v34, -inf }
 0x7c1   :  { %1200 = vadd.xlane.f32.xlu0 %v1199_v35 }
 0x7c3   :  { %v1190_v37 = vpop.f32.mrf.mxu2 }
 0x7c4   :  { %v1196_v39 = vmul.f32 %v1190_v37, %v1190_v37 }
 0x7c6   :  { %v1198_v40 = vadd.f32 %v1196_v39, %v1194_v38 }
 0x7c8   :  { %v1309_v41 = vsel %vm694_vm4, %v1198_v40, -inf  ;;  %v1202_v42 = vsel %vm694_vm4, %v1198_v40, 0.0 }
 0x7c9   :  { %1310 = vmax.xlane.f32.xlu2 %v1309_v41  ;;  %1203 = vadd.xlane.f32.xlu1 %v1202_v42 }
 0x7d1   :  { %1307 = vmax.xlane.f32.xlu2 %v1306_v43 }
 0x834   :  { %v1201_v44 = vpop.xlane.xlu0 %1200 }
 0x835   :  { %v1205_v50 = vmul.f32 %v1201_v44, %v5092_v22 }
 0x83c   :  { %v1311_v46 = vpop.xlane.xlu2 %1310  ;;  %v1204_v47 = vpop.xlane.xlu1 %1203 }
 0x83d   :  { %v1313_v48 = vsub.f32 %v1198_v40, %v1311_v46  ;;  %v1206_v49 = vmul.f32 %v1204_v47, %v5092_v22 }
 0x83f   :  { %v1316_v51 = vmul.f32 1.442695, %v1313_v48  ;;  %1226 = vmatpush.msra.mxu3 %v1206_v49  ;;  %v4049_v48 = vld [vmem:[%s6724_s8 + $0x1] sm:$0x1]  ;;  %v1377_v49 = vld [vmem:[%s6728_s12 + $0x38] sm:$0xff] }
 0x840   :  { %1389 = vmatpush.msra.mxu2 %v1377_v49  ;;  %v4081_v49 = vld [vmem:[%s6728_s12 + $0x110] sm:$0xff] }
 0x841   :  { %4624 = vpow2.f32 %v1316_v51  ;;  %1227 = vmatpush.msra.mxu3 %v1205_v50  ;;  %v1376_v50 = vld [vmem:[%s6728_s12 + $0x30] sm:$0xff]  ;;  %v4059_v51 = vld [vmem:[%s6728_s12 + $0x78] sm:$0xff] }
 0x842   :  { %4041 = vmatmul.msk.f32.vlgmr.msra.gmra.mxu3 %vm711_vm6, %v4040_v52  ;;  %v4068_v52 = vld [vmem:[%s6728_s12 + $0xb8] sm:$0xff]  ;;  %1390 = vmatpush.msra.mxu2 %v1376_v50 }
 0x843   :  { %1422 = vmatpush.msrb.mxu3 %v4059_v51  ;;  %v4091_v50 = vld [vmem:[%s6728_s12 + $0x158] sm:$0xff] }
 0x844   :  { %v1308_v53 = vpop.xlane.xlu2 %1307  ;;  %v4100_v51 = vld [vmem:[%s6728_s12 + $0x198] sm:$0xff] }
 0x845   :  { %v1312_v54 = vsub.f32 %v1197_v34, %v1308_v53  ;;  %v4077_v53 = vld [vmem:[%s6728_s12 + $0xf8] sm:$0xff] }
 0x847   :  { %v4625_v55 = vpop.eup %4624  ;;  %v1314_v56 = vmul.f32 1.442695, %v1312_v54  ;;  %v1375_v54 = vld [vmem:[%s6728_s12 + $0x28] sm:$0xff] }
 0x848   :  { %v1321_v57 = vsel %vm694_vm4, %v4625_v55, 0.0  ;;  %1391 = vmatpush.msra.mxu2 %v1375_v54  ;;  %v4090_v54 = vld [vmem:[%s6728_s12 + $0x150] sm:$0xff] }
 0x849   :  { %4626 = vpow2.f32 %v1314_v56  ;;  %1322 = vadd.xlane.f32.xlu2 %v1321_v57  ;;  %v4067_v56 = vld [vmem:[%s6728_s12 + $0xb0] sm:$0xff] }
 0x84a   :  { %v4076_v57 = vld [vmem:[%s6728_s12 + $0xf0] sm:$0xff] }
 0x84f   :  { %v4627_v58 = vpop.eup %4626 }
 0x850   :  { %v1318_v59 = vsel %vm694_vm4, %v4627_v58, 0.0 }
 0x851   :  { %1319 = vadd.xlane.f32.xlu2 %v1318_v59  ;;  %v1374_v59 = vld [vmem:[%s6728_s12 + $0x20] sm:$0xff] }
 0x852   :  { %1392 = vmatpush.msra.mxu2 %v1374_v59  ;;  %v4098_v59 = vld [vmem:[%s6728_s12 + $0x188] sm:$0xff] }
 0x854   :  { %1393 = vmatpush.msra.mxu2 %v1373_v5  ;;  %v4106_v5 = vld [vmem:[%s6728_s12 + $0x1c0] sm:$0xff] }
 0x869   :  { %4537 = vrot.lane.b32.xlu2 %v5269_v0, %s4698_s20 }
 0x871   :  { %2042 = vrot.lane.b32.xlu2 %v5276_v1, %s4699_s21 }
 0x879   :  { %2306 = vperm.xlu2 %4473, %v2276_v3   ;;  %v4075_v3 = vld [vmem:[%s6728_s12 + $0xe8] sm:$0xff] }
 0x881   :  { %2291 = vperm.xlu2 %4473, %v2273_v4   ;;  %v2277_v4 = vld [vmem:[%s6749_s26 + $0x30] sm:$0xff] }
 0x8bc   :  { %v1323_v6 = vpop.xlane.xlu2 %1322 }
 0x8bd   :  { %4628 = vrcp.f32 %v1323_v6  ;;  %v4056_v6 = vld [vmem:[%s6728_s12 + $0x60] sm:$0xff] }
 0x8c3   :  { %v4629_v8 = vpop.eup %4628 }
 0x8c4   :  { %v1320_v2 = vpop.xlane.xlu2 %1319  ;;  %v1327_v10 = vmul.f32 %v4629_v8, %v4625_v55  ;;  %v4058_v55 = vld [vmem:[%s6728_s12 + $0x70] sm:$0xff]  ;;  %v4065_v8 = vld [vmem:[%s6728_s12 + $0xa0] sm:$0xff] }
 0x8c5   :  { %4630 = vrcp.f32 %v1320_v2  ;;  %v1229_v11 = vpop.f32.mrf.mxu3  ;;  %1423 = vmatpush.msrb.mxu3 %v4058_v55  ;;  %v4074_v2 = vld [vmem:[%s6728_s12 + $0xe0] sm:$0xff]  ;;  %v4099_v55 = vld [vmem:[%s6728_s12 + $0x190] sm:$0xff] }
 0x8c6   :  { %v1232_v12 = vmax.f32 %v1229_v11, 0.0  ;;  %1347 = vmatpush.msrb.mxu1 %v1327_v10  ;;  %v1372_v10 = vld [vmem:[%s6728_s12 + $0x10] sm:$0xff]  ;;  %v4055_v11 = vld [vmem:[%s6728_s12 + $0x58] sm:$0xff] }
 0x8c7   :  { %1394 = vmatpush.msra.mxu2 %v1372_v10 }
 0x8c8   :  { %4044 = vmatpush.msk.msra.mxu0 %vm745_vm7, %v1232_v12  ;;  %v4064_v12 = vld [vmem:[%s6728_s12 + $0x98] sm:$0xff] }
 0x8c9   :  { %4045 = vmatmul.msk.f32.vlgmr.msra.gmra.mxu0 %vm738_vm8, %v4042_v60  ;;  %v4073_v60 = vld [vmem:[%s6728_s12 + $0xd8] sm:$0xff] }
 0x8ca   :  { %1455 = vmatpush.msrb.mxu0 %v4068_v52  ;;  %v4109_v52 = vld [vmem:[%s6728_s12 + $0x1d8] sm:$0xff] }
 0x8cb   :  { %v4631_v14 = vpop.eup %4630 }
 0x8cc   :  { %v1326_v15 = vmul.f32 %v4631_v14, %v4627_v58  ;;  %v4057_v58 = vld [vmem:[%s6728_s12 + $0x68] sm:$0xff]  ;;  %1456 = vmatpush.msrb.mxu0 %v4067_v56  ;;  %v4054_v14 = vld [vmem:[%s6728_s12 + $0x50] sm:$0xff] }
 0x8cd   :  { %1424 = vmatpush.msrb.mxu3 %v4057_v58  ;;  %v4108_v56 = vld [vmem:[%s6728_s12 + $0x1d0] sm:$0xff]  ;;  %v4089_v58 = vld [vmem:[%s6728_s12 + $0x148] sm:$0xff] }
 0x8ce   :  { %1348 = vmatpush.msrb.mxu1 %v1326_v15  ;;  %1457 = vmatpush.msrb.mxu0 %v4066_v61  ;;  %v4063_v15 = vld [vmem:[%s6728_s12 + $0x90] sm:$0xff]  ;;  %v4107_v61 = vld [vmem:[%s6728_s12 + $0x1c8] sm:$0xff] }
 0x8cf   :  { %4050 = vmatmul.msk.f32.vlgmr.msrb.gmra.mxu1 %vm711_vm6, %v4049_v48  ;;  %1425 = vmatpush.msrb.mxu3 %v4056_v6  ;;  %v2272_v48 = vld [vmem:[%s6749_s26 + $0x8] sm:$0xff] }
 0x8d0   :  { %1488 = vmatpush.msra.mxu1 %v4077_v53  ;;  %1458 = vmatpush.msrb.mxu0 %v4065_v8  ;;  %v4080_v53 = vld [vmem:[%s6728_s12 + $0x108] sm:$0xff] }
 0x8d1   :  { %4046 = vmatmul.msk.f32.gmra.mxu0 %vm738_vm8, %v4043_v16  ;;  %1426 = vmatpush.msrb.mxu3 %v4055_v11  ;;  %v4072_v16 = vld [vmem:[%s6728_s12 + $0xd0] sm:$0xff]  ;;  %v4122_v11 = vld [vmem:[%s6728_s12 + $0x238] sm:$0xff] }
 0x8d2   :  { %1489 = vmatpush.msra.mxu1 %v4076_v57  ;;  %1459 = vmatpush.msrb.mxu0 %v4064_v12  ;;  %v4079_v57 = vld [vmem:[%s6728_s12 + $0x100] sm:$0xff] }
 0x8d3   :  { %1427 = vmatpush.msrb.mxu3 %v4054_v14  ;;  %v4121_v14 = vld [vmem:[%s6728_s12 + $0x230] sm:$0xff] }
 0x8d4   :  { %1490 = vmatpush.msra.mxu1 %v4075_v3  ;;  %1460 = vmatpush.msrb.mxu0 %v4063_v15  ;;  %v4088_v3 = vld [vmem:[%s6728_s12 + $0x140] sm:$0xff]  ;;  %v4149_v15 = vld [vmem:[%s6728_s12 + $0x2f8] sm:$0xff] }
 0x8d6   :  { %1491 = vmatpush.msra.mxu1 %v4074_v2 }
 0x8d8   :  { %1492 = vmatpush.msra.mxu1 %v4073_v60 }
 0x8da   :  { %1493 = vmatpush.msra.mxu1 %v4072_v16  ;;  %v4120_v16 = vld [vmem:[%s6728_s12 + $0x228] sm:$0xff] }
 0x946   :  { %v1262_v45 = vpop.f32.mrf.mxu0 }
 0x947   :  { %v4047_v7 = vmul.f32 -1.442695, %v1262_v45  ;;  %v1370_v45 = vld [vmem:[%s6728_s12] sm:$0xff] }
 0x949   :  { %4632 = vpow2.f32 %v4047_v7  ;;  %v4053_v7 = vld [vmem:[%s6728_s12 + $0x48] sm:$0xff] }
 0x94a   :  { %1428 = vmatpush.msrb.mxu3 %v4053_v7  ;;  %v4139_v7 = vld [vmem:[%s6728_s12 + $0x2b0] sm:$0xff] }
 0x94e   :  { %v1265_v19 = vpop.f32.mrf.mxu0 }
 0x94f   :  { %v4633_v13 = vpop.eup %4632  ;;  %v4048_v20 = vmul.f32 -1.442695, %v1265_v19  ;;  %v2274_v19 = vld [vmem:[%s6749_s26 + $0x18] sm:$0xff] }
 0x950   :  { %v1274_v21 = vadd.f32 1.0, %v4633_v13  ;;  %v2278_v13 = vld [vmem:[%s6749_s26 + $0x38] sm:$0xff] }
 0x951   :  { %4634 = vpow2.f32 %v4048_v20  ;;  %v4062_v20 = vld [vmem:[%s6728_s12 + $0x88] sm:$0xff] }
 0x952   :  { %4636 = vrcp.f32 %v1274_v21  ;;  %v1287_v30 = vand.u32 2147483648, %v1274_v21  ;;  %v1285_v32 = vand.u32 2147483647, %v1274_v21  ;;  %vm1281_vm11 = vweird.f32 %v1274_v21  ;;  %1461 = vmatpush.msrb.mxu0 %v4062_v20  ;;  %v4129_v20 = vld [vmem:[%s6728_s12 + $0x268] sm:$0xff] }
 0x954   :  { %v1288_v35 = vor.u32 1.1754944e-38, %v1287_v30  ;;  %vm1286_vm13 = vcmp.eq.f32.partialorder %v1285_v32, 8.507059e+37  ;;  %v4095_v30 = vld [vmem:[%s6728_s12 + $0x178] sm:$0xff] }
 0x955   :  { %v4113_v32 = vld [vmem:[%s6728_s12 + $0x1f8] sm:$0xff] }
 0x957   :  { %v4635_v24 = vpop.eup %4634 }
 0x958   :  { %v4637_v25 = vpop.eup %4636  ;;  %v1275_v26 = vadd.f32 1.0, %v4635_v24  ;;  %v4086_v24 = vld [vmem:[%s6728_s12 + $0x138] sm:$0xff] }
 0x959   :  { %v1277_v27 = vmul.f32 %v4637_v25, %v1274_v21  ;;  %vm1282_vm10 = vweird.f32 %v4637_v25  ;;  %v4071_v21 = vld [vmem:[%s6728_s12 + $0xc8] sm:$0xff] }
 0x95a   :  { %4638 = vrcp.f32 %v1275_v26  ;;  %vm1283_vm12 = vmor %vm1281_vm11, %vm1282_vm10  ;;  %v1302_v39 = vand.u32 2147483648, %v1275_v26  ;;  %vm1296_vm14 = vweird.f32 %v1275_v26  ;;  %v1300_v41 = vand.u32 2147483647, %v1275_v26  ;;  %1494 = vmatpush.msra.mxu1 %v4071_v21  ;;  %v4138_v21 = vld [vmem:[%s6728_s12 + $0x2a8] sm:$0xff] }
 0x95b   :  { %v1278_v28 = vsub.f32 1.0, %v1277_v27  ;;  %v4070_v27 = vld [vmem:[%s6728_s12 + $0xc0] sm:$0xff]  ;;  %vm1964_vm10 = vcmask 261120   ;;  %vm2018_vm11 = vcmask 319488  }
 0x95c   :  { %v1303_v43 = vor.u32 1.1754944e-38, %v1302_v39  ;;  %vm1301_vm5 = vcmp.eq.f32.partialorder %v1300_v41, 8.507059e+37  ;;  %1495 = vmatpush.msra.mxu1 %v4070_v27  ;;  %v4083_v39 = vld [vmem:[%s6728_s12 + $0x120] sm:$0xff]  ;;  %v4102_v41 = vld [vmem:[%s6728_s12 + $0x1a8] sm:$0xff]  ;;  %v4118_v27 = vld [vmem:[%s6728_s12 + $0x218] sm:$0xff] }
 0x95d   :  { %v1279_v31 = vmul.f32 %v4637_v25, %v1278_v28  ;;  %v4085_v28 = vld [vmem:[%s6728_s12 + $0x130] sm:$0xff] }
 0x95e   :  { %1620 = vmatpush.msrb.mxu1 %v4113_v32 }
 0x95f   :  { %v1280_v33 = vadd.f32 %v4637_v25, %v1279_v31  ;;  %v4104_v31 = vld [vmem:[%s6728_s12 + $0x1b8] sm:$0xff] }
 0x960   :  { %v4639_v34 = vpop.eup %4638 }
 0x961   :  { %v1284_v36 = vsel %vm1283_vm12, %v4637_v25, %v1280_v33  ;;  %v1292_v37 = vmul.f32 %v4639_v34, %v1275_v26  ;;  %vm1297_vm15 = vweird.f32 %v4639_v34  ;;  %v4052_v25 = vld [vmem:[%s6728_s12 + $0x40] sm:$0xff]  ;;  %v4084_v33 = vld [vmem:[%s6728_s12 + $0x128] sm:$0xff] }
 0x962   :  { %v1289_v38 = vsel %vm1286_vm13, %v1288_v35, %v1284_v36  ;;  %vm1298_vm1 = vmor %vm1296_vm14, %vm1297_vm15  ;;  %v4061_v26 = vld [vmem:[%s6728_s12 + $0x80] sm:$0xff]  ;;  %1429 = vmatpush.msrb.mxu3 %v4052_v25  ;;  %v4103_v35 = vld [vmem:[%s6728_s12 + $0x1b0] sm:$0xff] }
 0x963   :  { %1355 = vperm.xlu1 %4475, %v1289_v38   ;;  %v1293_v40 = vsub.f32 1.0, %v1292_v37  ;;  %1462 = vmatpush.msrb.mxu0 %v4061_v26  ;;  %v4112_v36 = vld [vmem:[%s6728_s12 + $0x1f0] sm:$0xff]  ;;  %v2271_v37 = vld [vmem:[%s6749_s26] sm:$0xff] }
 0x964   :  { %1554 = vmatpush.msra.mxu3 %v4095_v30  ;;  %v2275_v38 = vld [vmem:[%s6749_s26 + $0x20] sm:$0xff]  ;;  %1621 = vmatpush.msrb.mxu1 %v4112_v36 }
 0x965   :  { %v1294_v42 = vmul.f32 %v4639_v34, %v1293_v40  ;;  %1587 = vmatpush.msra.mxu0 %v4104_v31  ;;  %v4093_v40 = vld [vmem:[%s6728_s12 + $0x168] sm:$0xff]  ;;  %v4137_v30 = vld [vmem:[%s6728_s12 + $0x2a0] sm:$0xff] }
 0x966   :  { %v4146_v31 = vld [vmem:[%s6728_s12 + $0x2e0] sm:$0xff] }
 0x967   :  { %v1295_v44 = vadd.f32 %v4639_v34, %v1294_v42  ;;  %1588 = vmatpush.msra.mxu0 %v4103_v35  ;;  %v4111_v42 = vld [vmem:[%s6728_s12 + $0x1e8] sm:$0xff]  ;;  %v4117_v35 = vld [vmem:[%s6728_s12 + $0x210] sm:$0xff] }
 0x968   :  { %1622 = vmatpush.msrb.mxu1 %v4111_v42 }
 0x969   :  { %v1299_v46 = vsel %vm1298_vm1, %v4639_v34, %v1295_v44  ;;  %v4094_v34 = vld [vmem:[%s6728_s12 + $0x170] sm:$0xff]  ;;  %v4092_v44 = vld [vmem:[%s6728_s12 + $0x160] sm:$0xff]  ;;  %1589 = vmatpush.msra.mxu0 %v4102_v41 }
 0x96a   :  { %v1304_v47 = vsel %vm1301_vm5, %v1303_v43, %v1299_v46  ;;  %1555 = vmatpush.msra.mxu3 %v4094_v34  ;;  %v4082_v43 = vld [vmem:[%s6728_s12 + $0x118] sm:$0xff]  ;;  %v4101_v46 = vld [vmem:[%s6728_s12 + $0x1a0] sm:$0xff]  ;;  %v4135_v41 = vld [vmem:[%s6728_s12 + $0x290] sm:$0xff] }
 0x96b   :  { %2189 = vrot.lane.b32.xlu1 %v5276_v1, %s4698_s20  ;;  %1360 = vperm.xlu0 %4474, %v1304_v47   ;;  %v4110_v47 = vld [vmem:[%s6728_s12 + $0x1e0] sm:$0xff] }
 0x96c   :  { %1556 = vmatpush.msra.mxu3 %v4093_v40  ;;  %1590 = vmatpush.msra.mxu0 %v4101_v46  ;;  %v4126_v40 = vld [vmem:[%s6728_s12 + $0x250] sm:$0xff]  ;;  %v4125_v46 = vld [vmem:[%s6728_s12 + $0x248] sm:$0xff] }
 0x96d   :  { %1623 = vmatpush.msrb.mxu1 %v4110_v47  ;;  %v4143_v47 = vld [vmem:[%s6728_s12 + $0x2c8] sm:$0xff] }
 0x96e   :  { %1557 = vmatpush.msra.mxu3 %v4092_v44  ;;  %1591 = vmatpush.msra.mxu0 %v4100_v51  ;;  %v4115_v44 = vld [vmem:[%s6728_s12 + $0x200] sm:$0xff] }
 0x96f   :  { %1624 = vmatpush.msrb.mxu1 %v4109_v52  ;;  %v4133_v51 = vld [vmem:[%s6728_s12 + $0x280] sm:$0xff] }
 0x970   :  { %1558 = vmatpush.msra.mxu3 %v4091_v50  ;;  %1592 = vmatpush.msra.mxu0 %v4099_v55  ;;  %v4142_v52 = vld [vmem:[%s6728_s12 + $0x2c0] sm:$0xff]  ;;  %v4176_v55 = vld [vmem:[%s6728_s12 + $0x3b8] sm:$0xff] }
 0x971   :  { %1625 = vmatpush.msrb.mxu1 %v4108_v56  ;;  %v4185_v56 = vld [vmem:[%s6728_s12 + $0x3f8] sm:$0xff] }
 0x972   :  { %1559 = vmatpush.msra.mxu3 %v4090_v54  ;;  %1593 = vmatpush.msra.mxu0 %v4098_v59  ;;  %v4167_v54 = vld [vmem:[%s6728_s12 + $0x378] sm:$0xff]  ;;  %v4156_v59 = vld [vmem:[%s6728_s12 + $0x328] sm:$0xff] }
 0x973   :  { %2311 = vperm.xlu1 %4475, %v2277_v4   ;;  %4542 = vrot.lane.b32.xlu0 %v5269_v0, %s4699_s21  ;;  %v1371_v0 = vld [vmem:[%s6728_s12 + $0x8] sm:$0xff]  ;;  %v4097_v4 = vld [vmem:[%s6728_s12 + $0x180] sm:$0xff] }
 0x974   :  { %1395 = vmatpush.msra.mxu2 %v1371_v0  ;;  %1560 = vmatpush.msra.mxu3 %v4089_v58 }
 0x975   :  { %1626 = vmatpush.msrb.mxu1 %v4107_v61  ;;  %1594 = vmatpush.msra.mxu0 %v4097_v4  ;;  %v4175_v4 = vld [vmem:[%s6728_s12 + $0x3b0] sm:$0xff] }
 0x976   :  { %1396 = vmatpush.msra.mxu2 %v1370_v45  ;;  %1561 = vmatpush.msra.mxu3 %v4088_v3  ;;  %v4130_v45 = vld [vmem:[%s6728_s12 + $0x270] sm:$0xff] }
 0x977   :  { %1627 = vmatpush.msrb.mxu1 %v4106_v5  ;;  %v4166_v3 = vld [vmem:[%s6728_s12 + $0x370] sm:$0xff] }
 0x978   :  { %1521 = vmatpush.msrb.mxu2 %v4086_v24  ;;  %v4147_v24 = vld [vmem:[%s6728_s12 + $0x2e8] sm:$0xff]  ;;  %v4184_v5 = vld [vmem:[%s6728_s12 + $0x3f0] sm:$0xff] }
 0x97a   :  { %1522 = vmatpush.msrb.mxu2 %v4085_v28  ;;  %v4128_v28 = vld [vmem:[%s6728_s12 + $0x260] sm:$0xff] }
 0x97b   :  { %2296 = vperm.xlu1 %4475, %v2274_v19   ;;  %2316 = vperm.xlu0 %4474, %v2278_v13   ;;  %v4148_v19 = vld [vmem:[%s6728_s12 + $0x2f0] sm:$0xff]  ;;  %v4119_v13 = vld [vmem:[%s6728_s12 + $0x220] sm:$0xff] }
 0x97c   :  { %1523 = vmatpush.msrb.mxu2 %v4084_v33 }
 0x97e   :  { %1524 = vmatpush.msrb.mxu2 %v4083_v39  ;;  %v4116_v39 = vld [vmem:[%s6728_s12 + $0x208] sm:$0xff] }
 0x980   :  { %1525 = vmatpush.msrb.mxu2 %v4082_v43  ;;  %v4144_v43 = vld [vmem:[%s6728_s12 + $0x2d0] sm:$0xff] }
 0x982   :  { %1526 = vmatpush.msrb.mxu2 %v4081_v49  ;;  %v4124_v49 = vld [vmem:[%s6728_s12 + $0x240] sm:$0xff] }
 0x983   :  { %2281 = vperm.xlu1 %4475, %v2271_v37   ;;  %2301 = vperm.xlu0 %4474, %v2275_v38   ;;  %v4127_v37 = vld [vmem:[%s6728_s12 + $0x258] sm:$0xff] }
 0x984   :  { %1527 = vmatpush.msrb.mxu2 %v4080_v53  ;;  %v4136_v38 = vld [vmem:[%s6728_s12 + $0x298] sm:$0xff]  ;;  %v4157_v53 = vld [vmem:[%s6728_s12 + $0x330] sm:$0xff] }
 0x986   :  { %1528 = vmatpush.msrb.mxu2 %v4079_v57 }
 0x98b   :  { %2286 = vperm.xlu0 %4474, %v2272_v48   ;;  %v4158_v48 = vld [vmem:[%s6728_s12 + $0x338] sm:$0xff] }
 0x9d5   :  { %v1356_v6 = vpop.permute.xlu1 %1355 }
 0x9d6   :  { %v1363_v8 = vmul.f32 %v1356_v6, %v5229_v23  ;;  %v4131_v23 = vld [vmem:[%s6728_s12 + $0x278] sm:$0xff]  ;;  %v4155_v6 = vld [vmem:[%s6728_s12 + $0x320] sm:$0xff] }
 0x9d8   :  { %v1365_v2 = vadd.f32 %v1363_v8, %v5299_v17  ;;  %v4140_v17 = vld [vmem:[%s6728_s12 + $0x2b8] sm:$0xff]  ;;  %v4165_v8 = vld [vmem:[%s6728_s12 + $0x368] sm:$0xff] }
 0x9da   :  { %v1367_v10 = vmax.f32 %v1365_v2, 0.0  ;;  %v4174_v2 = vld [vmem:[%s6728_s12 + $0x3a8] sm:$0xff] }
 0x9dc   :  { %4051 = vmatmul.msk.f32.vlgmr.msra.gmra.mxu2 %vm486_vm3, %v1367_v10  ;;  %v1411_v12 = vrot.slane %v1367_v10, 1  ;;  %v1444_v60 = vrot.slane %v1367_v10, 2  ;;  %v1477_v0 = vrot.slane %v1367_v10, 3  ;;  %v1510_v26 = vrot.slane %v1367_v10, 4 }
 0x9dd   :  { %1653 = vmatpush.msra.mxu2 %v4122_v11  ;;  %v1361_v25 = vpop.permute.xlu0 %1360  ;;  %v1543_v33 = vrot.slane %v1367_v10, 5  ;;  %v1576_v34 = vrot.slane %v1367_v10, 6  ;;  %v1609_v36 = vrot.slane %v1367_v10, 7  ;;  %v4183_v10 = vld [vmem:[%s6728_s12 + $0x3e8] sm:$0xff]  ;;  %v4154_v11 = vld [vmem:[%s6728_s12 + $0x318] sm:$0xff] }
 0x9de   :  { %4060 = vmatmul.msk.f32.vlgmr.msrb.gmra.mxu3 %vm486_vm3, %v1411_v12  ;;  %4069 = vmatmul.msk.f32.vlgmr.msrb.gmra.mxu0 %vm486_vm3, %v1444_v60  ;;  %v1364_v32 = vmul.f32 %v1361_v25, %v5235_v29  ;;  %v4145_v29 = vld [vmem:[%s6728_s12 + $0x2d8] sm:$0xff]  ;;  %v4164_v12 = vld [vmem:[%s6728_s12 + $0x360] sm:$0xff]  ;;  %v4538_v25 = vpop.permute.xlu2 %4537 }
 0x9df   :  { %4078 = vmatmul.msk.f32.vlgmr.msra.gmra.mxu1 %vm486_vm3, %v1477_v0  ;;  %1654 = vmatpush.msra.mxu2 %v4121_v14  ;;  %v4173_v60 = vld [vmem:[%s6728_s12 + $0x3a0] sm:$0xff]  ;;  %v4153_v14 = vld [vmem:[%s6728_s12 + $0x310] sm:$0xff] }
 0x9e0   :  { %1686 = vmatpush.msrb.mxu3 %v4131_v23  ;;  %1719 = vmatpush.msrb.mxu0 %v4140_v17  ;;  %v1366_v42 = vadd.f32 %v1364_v32, %v5301_v18  ;;  %v4134_v18 = vld [vmem:[%s6728_s12 + $0x288] sm:$0xff]  ;;  %v4182_v0 = vld [vmem:[%s6728_s12 + $0x3e0] sm:$0xff]  ;;  %v4163_v23 = vld [vmem:[%s6728_s12 + $0x358] sm:$0xff] }
 0x9e1   :  { %1752 = vmatpush.msra.mxu1 %v4149_v15  ;;  %1655 = vmatpush.msra.mxu2 %v4120_v16  ;;  %v4172_v17 = vld [vmem:[%s6728_s12 + $0x398] sm:$0xff]  ;;  %v4152_v16 = vld [vmem:[%s6728_s12 + $0x308] sm:$0xff] }
 0x9e2   :  { %1687 = vmatpush.msrb.mxu3 %v4130_v45  ;;  %1720 = vmatpush.msrb.mxu0 %v4139_v7  ;;  %v5626_v50 = vmax.f32 %v1366_v42, 0.0  ;;  %v4181_v15 = vld [vmem:[%s6728_s12 + $0x3d8] sm:$0xff]  ;;  %v4162_v45 = vld [vmem:[%s6728_s12 + $0x350] sm:$0xff]  ;;  %v1898_v42 = vmax.f32 %v5227_v9, 0.0 }
 0x9e3   :  { %1753 = vmatpush.msra.mxu1 %v4148_v19  ;;  %1656 = vmatpush.msra.mxu2 %v4119_v13  ;;  %v4171_v7 = vld [vmem:[%s6728_s12 + $0x390] sm:$0xff]  ;;  %v4151_v13 = vld [vmem:[%s6728_s12 + $0x300] sm:$0xff] }
 0x9e4   :  { %1688 = vmatpush.msrb.mxu3 %v4129_v20  ;;  %1721 = vmatpush.msrb.mxu0 %v4138_v21  ;;  %v1675_v57 = vrot.slane %v5626_v50, 1  ;;  %v1708_v58 = vrot.slane %v5626_v50, 2  ;;  %v1741_v61 = vrot.slane %v5626_v50, 3  ;;  %v4180_v19 = vld [vmem:[%s6728_s12 + $0x3d0] sm:$0xff]  ;;  %v4161_v20 = vld [vmem:[%s6728_s12 + $0x348] sm:$0xff] }
 0x9e5   :  { %1754 = vmatpush.msra.mxu1 %v4147_v24  ;;  %4087 = vmatmul.msk.f32.vlgmr.msrb.gmra.mxu2 %vm486_vm3, %v1510_v26  ;;  %v4170_v21 = vld [vmem:[%s6728_s12 + $0x388] sm:$0xff]  ;;  %v1774_v26 = vrot.slane %v5626_v50, 4  ;;  %v4543_v32 = vpop.permute.xlu0 %4542  ;;  %v1930_v9 = vld [vmem:[%s6730_s14 + $0x30] sm:$0xff] }
 0x9e6   :  { %1657 = vmatpush.msra.mxu2 %v4118_v27  ;;  %1689 = vmatpush.msrb.mxu3 %v4128_v28  ;;  %v4179_v24 = vld [vmem:[%s6728_s12 + $0x3c8] sm:$0xff]  ;;  %v1903_v27 = vld [vmem:[%s6730_s14 + $0x20] sm:$0xff] }
 0x9e7   :  { %1722 = vmatpush.msrb.mxu0 %v4137_v30  ;;  %1755 = vmatpush.msra.mxu1 %v4146_v31  ;;  %v4160_v28 = vld [vmem:[%s6728_s12 + $0x340] sm:$0xff] }
 0x9e8   :  { %4096 = vmatmul.msk.f32.vlgmr.msra.gmra.mxu3 %vm486_vm3, %v1543_v33  ;;  %4105 = vmatmul.msk.f32.vlgmr.msra.gmra.mxu0 %vm486_vm3, %v1576_v34  ;;  %v4169_v30 = vld [vmem:[%s6728_s12 + $0x380] sm:$0xff]  ;;  %v4544_v33 = vunpack.i.l.bf16 %v4543_v32  ;;  %v1807_v34 = vrot.slane %v5626_v50, 5 }
 0x9e9   :  { %4114 = vmatmul.msk.f32.vlgmr.msrb.gmra.mxu1 %vm486_vm3, %v1609_v36  ;;  %1658 = vmatpush.msra.mxu2 %v4117_v35  ;;  %v4178_v31 = vld [vmem:[%s6728_s12 + $0x3c0] sm:$0xff]  ;;  %v1840_v35 = vrot.slane %v5626_v50, 6  ;;  %v1902_v36 = vld [vmem:[%s6730_s14 + $0x18] sm:$0xff] }
 0x9ea   :  { %1690 = vmatpush.msrb.mxu3 %v4127_v37  ;;  %1723 = vmatpush.msrb.mxu0 %v4136_v38  ;;  %v1873_v37 = vrot.slane %v5626_v50, 7  ;;  %v4545_v38 = vunpack.i.h.bf16 %v4543_v32 }
 0x9eb   :  { %1756 = vmatpush.msra.mxu1 %v4145_v29  ;;  %1659 = vmatpush.msra.mxu2 %v4116_v39  ;;  %v1901_v29 = vld [vmem:[%s6730_s14 + $0x10] sm:$0xff]  ;;  %v1900_v39 = vld [vmem:[%s6730_s14 + $0x8] sm:$0xff] }
 0x9ec   :  { %1691 = vmatpush.msrb.mxu3 %v4126_v40  ;;  %1724 = vmatpush.msrb.mxu0 %v4135_v41  ;;  %v1899_v40 = vld [vmem:[%s6730_s14] sm:$0xff]  ;;  %v2043_v41 = vpop.permute.xlu2 %2042 }
 0x9ed   :  { %1757 = vmatpush.msra.mxu1 %v4144_v43  ;;  %1660 = vmatpush.msra.mxu2 %v4115_v44  ;;  %v1933_v43 = vld [vmem:[%s6730_s14 + $0x48] sm:$0xff]  ;;  %v1932_v44 = vld [vmem:[%s6730_s14 + $0x40] sm:$0xff] }
 0x9ee   :  { %1692 = vmatpush.msrb.mxu3 %v4125_v46  ;;  %1725 = vmatpush.msrb.mxu0 %v4134_v18  ;;  %v1931_v46 = vld [vmem:[%s6730_s14 + $0x38] sm:$0xff]  ;;  %v1350_v18 = vpop.f32.mrf.mxu1 }
 0x9ef   :  { %1758 = vmatpush.msra.mxu1 %v4143_v47  ;;  %1785 = vmatpush.msrb.mxu2 %v4158_v48  ;;  %v1928_v47 = vmax.f32 %v1350_v18, 0.0  ;;  %v1929_v48 = vld [vmem:[%s6730_s14 + $0x28] sm:$0xff] }
 0x9f0   :  { %4123 = vmatmul.msk.f32.vlgmr.msra.gmra.mxu2 %vm486_vm3, %v5626_v50  ;;  %1693 = vmatpush.msrb.mxu3 %v4124_v49  ;;  %v4539_v49 = vunpack.i.l.bf16 %v4538_v25  ;;  %v4540_v50 = vunpack.i.h.bf16 %v4538_v25 }
 0x9f1   :  { %1726 = vmatpush.msrb.mxu0 %v4133_v51  ;;  %1759 = vmatpush.msra.mxu1 %v4142_v52  ;;  %v2190_v51 = vpop.permute.xlu1 %2189  ;;  %v1369_v52 = vld [vmem:[%s6729_s13] sm:$0x1] }
 0x9f2   :  { %1786 = vmatpush.msrb.mxu2 %v4157_v53  ;;  %1818 = vmatpush.msra.mxu3 %v4167_v54 }
 0x9f3   :  { %1851 = vmatpush.msra.mxu0 %v4176_v55  ;;  %1884 = vmatpush.msrb.mxu1 %v4185_v56 }
 0x9f4   :  { %4132 = vmatmul.msk.f32.vlgmr.msrb.gmra.mxu3 %vm486_vm3, %v1675_v57  ;;  %4141 = vmatmul.msk.f32.vlgmr.msrb.gmra.mxu0 %vm486_vm3, %v1708_v58 }
 0x9f5   :  { %4150 = vmatmul.msk.f32.vlgmr.msra.gmra.mxu1 %vm486_vm3, %v1741_v61  ;;  %1787 = vmatpush.msrb.mxu2 %v4156_v59 }
 0x9f6   :  { %1819 = vmatpush.msra.mxu3 %v4166_v3  ;;  %1852 = vmatpush.msra.mxu0 %v4175_v4 }
 0x9f7   :  { %1885 = vmatpush.msrb.mxu1 %v4184_v5  ;;  %1788 = vmatpush.msrb.mxu2 %v4155_v6  ;;  %v1963_v5 = vld [vmem:[%s6732_s16 + $0x18] sm:$0xff] }
 0x9f8   :  { %1820 = vmatpush.msra.mxu3 %v4165_v8  ;;  %1853 = vmatpush.msra.mxu0 %v4174_v2  ;;  %v1962_v2 = vld [vmem:[%s6732_s16 + $0x10] sm:$0xff] }
 0x9f9   :  { %1886 = vmatpush.msrb.mxu1 %v4183_v10  ;;  %1789 = vmatpush.msrb.mxu2 %v4154_v11  ;;  %v1961_v11 = vld [vmem:[%s6732_s16 + $0x8] sm:$0xff] }
 0x9fa   :  { %1821 = vmatpush.msra.mxu3 %v4164_v12  ;;  %1854 = vmatpush.msra.mxu0 %v4173_v60  ;;  %v1960_v60 = vld [vmem:[%s6732_s16] sm:$0xff] }
 0x9fb   :  { %1887 = vmatpush.msrb.mxu1 %v4182_v0  ;;  %1790 = vmatpush.msrb.mxu2 %v4153_v14  ;;  %v1993_v0 = vld [vmem:[%s6732_s16 + $0x38] sm:$0xff] }
 0x9fc   :  { %1822 = vmatpush.msra.mxu3 %v4163_v23  ;;  %1855 = vmatpush.msra.mxu0 %v4172_v17 }
 0x9fd   :  { %1888 = vmatpush.msrb.mxu1 %v4181_v15  ;;  %1791 = vmatpush.msrb.mxu2 %v4152_v16 }
 0x9fe   :  { %1823 = vmatpush.msra.mxu3 %v4162_v45  ;;  %1856 = vmatpush.msra.mxu0 %v4171_v7  ;;  %v1992_v45 = vld [vmem:[%s6732_s16 + $0x30] sm:$0xff]  ;;  %v1991_v7 = vld [vmem:[%s6732_s16 + $0x28] sm:$0xff] }
 0x9ff   :  { %1889 = vmatpush.msrb.mxu1 %v4180_v19  ;;  %1792 = vmatpush.msrb.mxu2 %v4151_v13  ;;  %v4191_v13 = vld [vmem:[%s6748_s23 + $0x40] sm:$0xff] }
 0xa00   :  { %1824 = vmatpush.msra.mxu3 %v4161_v20  ;;  %1857 = vmatpush.msra.mxu0 %v4170_v21  ;;  %v4216_v21 = vld [vmem:[%s6748_s23 + $0x88] sm:$0xff] }
 0xa01   :  { %1890 = vmatpush.msrb.mxu1 %v4179_v24  ;;  %4159 = vmatmul.msk.f32.vlgmr.msrb.gmra.mxu2 %vm486_vm3, %v1774_v26 }
 0xa02   :  { %1918 = vmatpush.msra.mxu2 %v1903_v27  ;;  %1825 = vmatpush.msra.mxu3 %v4160_v28  ;;  %v4192_v27 = vld [vmem:[%s6748_s23 + $0x48] sm:$0xff] }
 0xa03   :  { %1858 = vmatpush.msra.mxu0 %v4169_v30  ;;  %1891 = vmatpush.msrb.mxu1 %v4178_v31 }
 0xa04   :  { %4168 = vmatmul.msk.f32.vlgmr.msra.gmra.mxu3 %vm486_vm3, %v1807_v34  ;;  %4177 = vmatmul.msk.f32.vlgmr.msra.gmra.mxu0 %vm486_vm3, %v1840_v35 }
 0xa05   :  { %4186 = vmatmul.msk.f32.vlgmr.msrb.gmra.mxu1 %vm486_vm3, %v1873_v37  ;;  %1919 = vmatpush.msra.mxu2 %v1902_v36  ;;  %v4193_v37 = vld [vmem:[%s6748_s23 + $0x50] sm:$0xff] }
 0xa06   :  { %2088 = vmatpush.msra.mxu1 %v4544_v33  ;;  %1980 = vmatpush.msrb.mxu3 %v1963_v5  ;;  %v4217_v33 = vld [vmem:[%s6748_s23 + $0x90] sm:$0xff] }
 0xa07   :  { %1920 = vmatpush.msra.mxu2 %v1901_v29  ;;  %2009 = vmatpush.msrb.mxu0 %v1993_v0 }
 0xa08   :  { %2089 = vmatpush.msra.mxu1 %v4545_v38  ;;  %1981 = vmatpush.msrb.mxu3 %v1962_v2 }
 0xa09   :  { %1921 = vmatpush.msra.mxu2 %v1900_v39  ;;  %2010 = vmatpush.msrb.mxu0 %v1992_v45  ;;  %v4218_v39 = vld [vmem:[%s6748_s23 + $0x98] sm:$0xff] }
 0xa0a   :  { %2090 = vmatpush.msra.mxu1 %v2043_v41  ;;  %1982 = vmatpush.msrb.mxu3 %v1961_v11  ;;  %v1897_v41 = vld [vmem:[%s6731_s15] sm:$0x1] }
 0xa0b   :  { %1922 = vmatpush.msra.mxu2 %v1899_v40  ;;  %2011 = vmatpush.msrb.mxu0 %v1991_v7  ;;  %v4194_v40 = vld [vmem:[%s6748_s23 + $0x58] sm:$0xff] }
 0xa0c   :  { %4187 = vmatmul.msk.f32.vlgmr.msra.gmra.mxu2 %vm694_vm4, %v1898_v42  ;;  %1983 = vmatpush.msrb.mxu3 %v1960_v60  ;;  %v2020_v42 = vld [vmem:[%s6748_s23] sm:$0xff] }
 0xa0d   :  { %1948 = vmatpush.msrb.mxu2 %v1933_v43  ;;  %4199 = vmatmul.msk.f32.vlgmr.msra.gmra.mxu1 %vm114_vm0, %v4191_v13 }
 0xa0e   :  { %2153 = vmatpush.msra.mxu3 %v5264_v63  ;;  %v4215_v63 = vld [vmem:[%s6748_s23 + $0x80] sm:$0xff] }
 0xa0f   :  { %1949 = vmatpush.msrb.mxu2 %v1932_v44 }
 0xa10   :  { %2154 = vmatpush.msra.mxu3 %v5259_v62  ;;  %v1990_v62 = vld [vmem:[%s6732_s16 + $0x20] sm:$0xff] }
 0xa11   :  { %1950 = vmatpush.msrb.mxu2 %v1931_v46  ;;  %2012 = vmatpush.msrb.mxu0 %v1990_v62  ;;  %v4219_v46 = vld [vmem:[%s6748_s23 + $0xa0] sm:$0xff] }
 0xa12   :  { %2155 = vmatpush.msra.mxu3 %v5276_v1 }
 0xa13   :  { %1951 = vmatpush.msrb.mxu2 %v1930_v9 }
 0xa15   :  { %1952 = vmatpush.msrb.mxu2 %v1929_v48  ;;  %4200 = vmatmul.msk.f32.gmra.mxu1 %vm114_vm0, %v4192_v27  ;;  %v2021_v48 = vld [vmem:[%s6748_s23 + $0x8] sm:$0xff] }
 0xa16   :  { %4188 = vmatmul.msk.f32.vlgmr.msrb.gmra.mxu2 %vm694_vm4, %v1928_v47  ;;  %v4195_v47 = vld [vmem:[%s6748_s23 + $0x60] sm:$0xff] }
 0xa17   :  { %2235 = vmatpush.msra.mxu2 %v4539_v49  ;;  %v4220_v49 = vld [vmem:[%s6748_s23 + $0xa8] sm:$0xff] }
 0xa19   :  { %2236 = vmatpush.msra.mxu2 %v4540_v50  ;;  %v4196_v50 = vld [vmem:[%s6748_s23 + $0x68] sm:$0xff] }
 0xa1b   :  { %2237 = vmatpush.msra.mxu2 %v2190_v51  ;;  %v2022_v51 = vld [vmem:[%s6748_s23 + $0x10] sm:$0xff] }
 0xa1d   :  { %4201 = vmatmul.msk.f32.gmra.mxu1 %vm114_vm0, %v4193_v37 }
 0xa1e   :  { %4223 = vmatmul.msk.f32.vlgmr.msra.gmra.mxu2 %vm114_vm0, %v4215_v63 }
 0xa25   :  { %4202 = vmatmul.msk.f32.gmra.mxu1 %vm114_vm0, %v4194_v40 }
 0xa26   :  { %4224 = vmatmul.msk.f32.gmra.mxu2 %vm114_vm0, %v4216_v21 }
 0xa2d   :  { %4203 = vmatmul.msk.f32.gmra.mxu1 %vm114_vm0, %v4195_v47 }
 0xa2e   :  { %4225 = vmatmul.msk.f32.gmra.mxu2 %vm114_vm0, %v4217_v33 }
 0xa35   :  { %4204 = vmatmul.msk.f32.gmra.mxu1 %vm114_vm0, %v4196_v50 }
 0xa36   :  { %4226 = vmatmul.msk.f32.gmra.mxu2 %vm114_vm0, %v4218_v39 }
 0xa3e   :  { %4227 = vmatmul.msk.f32.gmra.mxu2 %vm114_vm0, %v4219_v46 }
 0xa46   :  { %4228 = vmatmul.msk.f32.gmra.mxu2 %vm114_vm0, %v4220_v49 }
 0xa5b   :  { %v1464_v57 = vpop.f32.mrf.mxu0 }
 0xa5c   :  { %v1497_v59 = vpop.f32.mrf.mxu1 }
 0xa5f   :  { %v1398_v53 = vpop.f32.mrf.mxu2 }
 0xa60   :  { %v1401_v54 = vadd.f32 %v1398_v53, %v1369_v52  ;;  %v4221_v52 = vld [vmem:[%s6748_s23 + $0xb0] sm:$0xff] }
 0xa61   :  { %v1431_v55 = vpop.f32.mrf.mxu3  ;;  %4229 = vmatmul.msk.f32.gmra.mxu2 %vm114_vm0, %v4221_v52  ;;  %v4197_v53 = vld [vmem:[%s6748_s23 + $0x70] sm:$0xff] }
 0xa62   :  { %v1434_v56 = vadd.f32 %v1431_v55, %v1401_v54  ;;  %v2023_v54 = vld [vmem:[%s6748_s23 + $0x18] sm:$0xff]  ;;  %4205 = vmatmul.msk.f32.gmra.mxu1 %vm114_vm0, %v4197_v53 }
 0xa63   :  { %v4222_v55 = vld [vmem:[%s6748_s23 + $0xb8] sm:$0xff] }
 0xa64   :  { %v1467_v58 = vadd.f32 %v1464_v57, %v1434_v56  ;;  %v4198_v56 = vld [vmem:[%s6748_s23 + $0x78] sm:$0xff]  ;;  %v2024_v57 = vld [vmem:[%s6748_s23 + $0x20] sm:$0xff] }
 0xa65   :  { %v1596_v10 = vpop.f32.mrf.mxu0 }
 0xa66   :  { %v1500_v61 = vadd.f32 %v1497_v59, %v1467_v58  ;;  %v1629_v14 = vpop.f32.mrf.mxu1  ;;  %v2025_v58 = vld [vmem:[%s6748_s23 + $0x28] sm:$0xff]  ;;  %v2026_v59 = vld [vmem:[%s6748_s23 + $0x30] sm:$0xff] }
 0xa68   :  { %v1530_v3 = vpop.f32.mrf.mxu2 }
 0xa69   :  { %v1533_v4 = vadd.f32 %v1530_v3, %v1500_v61  ;;  %4230 = vmatmul.msk.f32.gmra.mxu2 %vm114_vm0, %v4222_v55  ;;  %v2027_v61 = vld [vmem:[%s6748_s23 + $0x38] sm:$0xff]  ;;  %s6750_s23 = smov 1  }
 0xa6a   :  { %4206 = vmatmul.msk.f32.gmra.mxu1 %vm114_vm0, %v4198_v56 }
 0xa6b   :  { %v1563_v6 = vpop.f32.mrf.mxu3 }
 0xa6c   :  { %v1566_v8 = vadd.f32 %v1563_v6, %v1533_v4 }
 0xa6e   :  { %v1599_v12 = vadd.f32 %v1596_v10, %v1566_v8  ;;  %v1958_v8 = vld [vmem:[%s6733_s17] sm:$0x1] }
 0xa70   :  { %v1632_v23 = vadd.f32 %v1629_v14, %v1599_v12 }
 0xa71   :  { %v1728_v1 = vpop.f32.mrf.mxu0 }
 0xa72   :  { %v1761_v24 = vpop.f32.mrf.mxu1 }
 0xa73   :  { %v1662_v17 = vpop.f32.mrf.mxu2 }
 0xa74   :  { %v1665_v15 = vadd.f32 %v1662_v17, %v1632_v23 }
 0xa77   :  { %v1695_v16 = vpop.f32.mrf.mxu3 }
 0xa78   :  { %v1698_v19 = vadd.f32 %v1695_v16, %v1665_v15 }
 0xa7a   :  { %v1731_v20 = vadd.f32 %v1728_v1, %v1698_v19 }
 0xa7c   :  { %v1764_v25 = vadd.f32 %v1761_v24, %v1731_v20 }
 0xa81   :  { %v1860_v32 = vpop.f32.mrf.mxu0 }
 0xa82   :  { %v1893_v35 = vpop.f32.mrf.mxu1 }
 0xa84   :  { %v1794_v26 = vpop.f32.mrf.mxu2 }
 0xa85   :  { %v1797_v28 = vadd.f32 %v1794_v26, %v1764_v25  ;;  %v2307_v25 = vpop.permute.xlu2 %2306 }
 0xa87   :  { %v1827_v30 = vpop.f32.mrf.mxu3 }
 0xa88   :  { %v1830_v31 = vadd.f32 %v1827_v30, %v1797_v28 }
 0xa8a   :  { %v1863_v34 = vadd.f32 %v1860_v32, %v1830_v31  ;;  %v2092_v3 = vpop.f32.mrf.mxu1  ;;  %v2312_v32 = vpop.permute.xlu1 %2311 }
 0xa8c   :  { %v1896_v36 = vadd.f32 %v1893_v35, %v1863_v34 }
 0xa8e   :  { %v1959_v38 = vmax.f32 %v1896_v36, 0.0 }
 0xa8f   :  { %v1924_v29 = vpop.f32.mrf.mxu2 }
 0xa90   :  { %4189 = vmatmul.msk.f32.vlgmr.msrb.gmra.mxu3 %vm1964_vm10, %v1959_v38  ;;  %v1927_v43 = vadd.f32 %v1924_v29, %v1897_v41  ;;  %v2292_v29 = vpop.permute.xlu2 %2291 }
 0xa92   :  { %v2095_v6 = vpop.f32.mrf.mxu1  ;;  %v2297_v46 = vpop.permute.xlu1 %2296 }
 0xa98   :  { %4207 = vmatmul.msk.f32.vlgmr.msra.gmra.mxu3 %vm114_vm0, %v2020_v42 }
 0xa99   :  { %v1954_v44 = vpop.f32.mrf.mxu2 }
 0xa9a   :  { %v1957_v18 = vadd.f32 %v1954_v44, %v1927_v43  ;;  %v2098_v23 = vpop.f32.mrf.mxu1  ;;  %v2317_v43 = vpop.permute.xlu0 %2316 }
 0xa9c   :  { %v1989_v9 = vmax.f32 %v1957_v18, 0.0 }
 0xa9e   :  { %4190 = vmatmul.msk.f32.vlgmr.msrb.gmra.mxu0 %vm1964_vm10, %v1989_v9 }
 0xaa0   :  { %4208 = vmatmul.msk.f32.gmra.mxu3 %vm114_vm0, %v2021_v48 }
 0xaa1   :  { %v2239_v4 = vpop.f32.mrf.mxu2 }
 0xaa2   :  { %v2101_v7 = vpop.f32.mrf.mxu1 }
 0xaa8   :  { %4209 = vmatmul.msk.f32.gmra.mxu3 %vm114_vm0, %v2022_v51 }
 0xaa9   :  { %v2242_v2 = vpop.f32.mrf.mxu2 }
 0xaaa   :  { %v2104_v1 = vpop.f32.mrf.mxu1 }
 0xab0   :  { %4210 = vmatmul.msk.f32.gmra.mxu3 %vm114_vm0, %v2023_v54 }
 0xab1   :  { %v2245_v17 = vpop.f32.mrf.mxu2 }
 0xab2   :  { %v2107_v21 = vpop.f32.mrf.mxu1 }
 0xab8   :  { %4211 = vmatmul.msk.f32.gmra.mxu3 %vm114_vm0, %v2024_v57 }
 0xab9   :  { %v2248_v63 = vpop.f32.mrf.mxu2 }
 0xac0   :  { %4212 = vmatmul.msk.f32.gmra.mxu3 %vm114_vm0, %v2025_v58  ;;  %v2302_v58 = vpop.permute.xlu0 %2301 }
 0xac1   :  { %v2251_v13 = vpop.f32.mrf.mxu2 }
 0xac8   :  { %4213 = vmatmul.msk.f32.gmra.mxu3 %vm114_vm0, %v2026_v59  ;;  %v2282_v59 = vpop.permute.xlu1 %2281 }
 0xac9   :  { %v2254_v24 = vpop.f32.mrf.mxu2 }
 0xad0   :  { %4214 = vmatmul.msk.f32.gmra.mxu3 %vm114_vm0, %v2027_v61 }
 0xadf   :  { %v2110_v31 = vpop.f32.mrf.mxu1 }
 0xae4   :  { %v2257_v34 = vpop.f32.mrf.mxu2 }
 0xae7   :  { %v2113_v44 = vpop.f32.mrf.mxu1 }
 0xaec   :  { %v2260_v49 = vpop.f32.mrf.mxu2 }
 0xb13   :  { %v1985_v5 = vpop.f32.mrf.mxu3 }
 0xb14   :  { %v1988_v10 = vadd.f32 %v1985_v5, %v1958_v8 }
 0xb1b   :  { %v2014_v11 = vpop.f32.mrf.mxu0  ;;  %v2157_v12 = vpop.f32.mrf.mxu3 }
 0xb1c   :  { %v2017_v60 = vadd.f32 %v2014_v11, %v1988_v10  ;;  %v2158_v0 = vadd.f32 %v2157_v12, %v2092_v3 }
 0xb1e   :  { %2019 = vst.msk [vmem:[#allocation4] sm:$0x1] %vm2018_vm11, %v2017_v60  ;;  %v2263_v14 = vadd.f32 %v2239_v4, %v2158_v0 }
 0xb20   :  { %v2319_v61 = vadd.f32 %v2282_v59, %v2263_v14  ;;  %v4251_v59 = vld [vmem:[%s6721_s5 + $0x70] sm:$0xff] }
 0xb22   :  { %v2327_v4 = vmax.f32 %v2319_v61, 0.0  ;;  %v2558_v61 = vld [vmem:[%s6721_s5 + $0x28] sm:$0xff] }
 0xb23   :  { %v2160_v15 = vpop.f32.mrf.mxu3 }
 0xb24   :  { %v2161_v16 = vadd.f32 %v2160_v15, %v2095_v6  ;;  %v2287_v6 = vpop.permute.xlu0 %2286 }
 0xb26   :  { %v2264_v45 = vadd.f32 %v2242_v2, %v2161_v16 }
 0xb28   :  { %v2320_v8 = vadd.f32 %v2287_v6, %v2264_v45 }
 0xb2a   :  { %v2328_v2 = vmax.f32 %v2320_v8, 0.0  ;;  %v2556_v8 = vld [vmem:[%s6721_s5 + $0x18] sm:$0xff] }
 0xb2b   :  { %v2163_v19 = vpop.f32.mrf.mxu3 }
 0xb2c   :  { %v2164_v28 = vadd.f32 %v2163_v19, %v2098_v23 }
 0xb2e   :  { %v2265_v35 = vadd.f32 %v2245_v17, %v2164_v28 }
 0xb30   :  { %v2321_v39 = vadd.f32 %v2292_v29, %v2265_v35 }
 0xb32   :  { %v2329_v18 = vmax.f32 %v2321_v39, 0.0  ;;  %v4233_v39 = vld [vmem:[%s6719_s3 + $0x40] sm:$0xff] }
 0xb33   :  { %v2166_v62 = vpop.f32.mrf.mxu3 }
 0xb34   :  { %v2167_v40 = vadd.f32 %v2166_v62, %v2101_v7 }
 0xb36   :  { %v2266_v9 = vadd.f32 %v2248_v63, %v2167_v40  ;;  %v4234_v40 = vld [vmem:[%s6719_s3 + $0x48] sm:$0xff] }
 0xb38   :  { %v2322_v51 = vadd.f32 %v2297_v46, %v2266_v9 }
 0xb3a   :  { %v2330_v55 = vmax.f32 %v2322_v51, 0.0 }
 0xb3b   :  { %v2169_v20 = vpop.f32.mrf.mxu3 }
 0xb3c   :  { %v2170_v52 = vadd.f32 %v2169_v20, %v2104_v1 }
 0xb3e   :  { %v2267_v56 = vadd.f32 %v2251_v13, %v2170_v52 }
 0xb40   :  { %v2323_v3 = vadd.f32 %v2302_v58, %v2267_v56  ;;  %v2560_v56 = vld [vmem:[%s6721_s5 + $0x38] sm:$0xff]  ;;  %v2559_v58 = vld [vmem:[%s6721_s5 + $0x30] sm:$0xff] }
 0xb42   :  { %v2331_v5 = vmax.f32 %v2323_v3, 0.0  ;;  %v4250_v3 = vld [vmem:[%s6721_s5 + $0x68] sm:$0xff] }
 0xb43   :  { %v2172_v26 = vpop.f32.mrf.mxu3 }
 0xb44   :  { %v2173_v27 = vadd.f32 %v2172_v26, %v2107_v21  ;;  %v2538_v26 = vld [vmem:[%s6720_s4 + $0x8] sm:$0xff] }
 0xb46   :  { %v2268_v30 = vadd.f32 %v2254_v24, %v2173_v27 }
 0xb48   :  { %v2324_v33 = vadd.f32 %v2307_v25, %v2268_v30  ;;  %v2537_v25 = vld [vmem:[%s6720_s4] sm:$0xff] }
 0xb4a   :  { %v2332_v36 = vmax.f32 %v2324_v33, 0.0 }
 0xb4b   :  { %v2175_v37 = vpop.f32.mrf.mxu3 }
 0xb4c   :  { %v2176_v38 = vadd.f32 %v2175_v37, %v2110_v31  ;;  %2353 = vrot.lane.b32.xlu1 %v2332_v36, %s6750_s23 }
 0xb4e   :  { %v2269_v41 = vadd.f32 %v2257_v34, %v2176_v38 }
 0xb50   :  { %v2325_v42 = vadd.f32 %v2312_v32, %v2269_v41 }
 0xb52   :  { %v2333_v47 = vmax.f32 %v2325_v42, 0.0 }
 0xb53   :  { %v2178_v48 = vpop.f32.mrf.mxu3 }
 0xb54   :  { %v2179_v50 = vadd.f32 %v2178_v48, %v2113_v44  ;;  %2347 = vrot.lane.b32.xlu1 %v2329_v18, %s6750_s23  ;;  %2355 = vrot.lane.b32.xlu0 %v2333_v47, %s6750_s23 }
 0xb56   :  { %v2270_v53 = vadd.f32 %v2260_v49, %v2179_v50  ;;  %v4232_v49 = vld [vmem:[%s6719_s3 + $0x38] sm:$0xff] }
 0xb58   :  { %v2326_v54 = vadd.f32 %v2317_v43, %v2270_v53  ;;  %v4231_v43 = vld [vmem:[%s6719_s3 + $0x30] sm:$0xff] }
 0xb5a   :  { %v2334_v57 = vmax.f32 %v2326_v54, 0.0  ;;  %v4239_v54 = vld [vmem:[%s6719_s3 + $0x50] sm:$0xff] }
 0xb5c   :  { %2349 = vrot.lane.b32.xlu0 %v2330_v55, %s6750_s23  ;;  %2357 = vrot.lane.b32.xlu2 %v2334_v57, %s6750_s23  ;;  %v4240_v55 = vld [vmem:[%s6719_s3 + $0x58] sm:$0xff]  ;;  %s6751_s3 = smov 2  }
 0xb5d   :  { %v4252_v57 = vld [vmem:[%s6721_s5 + $0x78] sm:$0xff] }
 0xb5e   :  { %2606 = vmatpush.msrb.mxu1 %v4252_v57 }
 0xb60   :  { %2607 = vmatpush.msrb.mxu1 %v4251_v59 }
 0xb62   :  { %2608 = vmatpush.msrb.mxu1 %v4250_v3 }
 0xb64   :  { %2343 = vrot.lane.b32.xlu0 %v2327_v4, %s6750_s23  ;;  %2351 = vrot.lane.b32.xlu2 %v2331_v5, %s6750_s23  ;;  %v2557_v4 = vld [vmem:[%s6721_s5 + $0x20] sm:$0xff] }
 0xb65   :  { %v4249_v5 = vld [vmem:[%s6721_s5 + $0x60] sm:$0xff] }
 0xb66   :  { %2609 = vmatpush.msrb.mxu1 %v4249_v5 }
 0xb6c   :  { %2345 = vrot.lane.b32.xlu2 %v2328_v2, %s6750_s23  ;;  %v4248_v2 = vld [vmem:[%s6721_s5 + $0x58] sm:$0xff]  ;;  %s6753_s23 = smov 124  }
 0xb6d   :  { %2610 = vmatpush.msrb.mxu1 %v4248_v2 }
 0xbb6   :  { %v2358_v10 = vpop.permute.xlu2 %2357 }
 0xbb7   :  { %2374 = vst.msk [vmem:[#allocation2 + $0x78] sm:$0xff] %vm432_vm2, %v2358_v10  ;;  %v2555_v10 = vld [vmem:[%s6721_s5 + $0x10] sm:$0xff] }
 0xbbe   :  { %v2354_v11 = vpop.permute.xlu1 %2353  ;;  %v2352_v12 = vpop.permute.xlu2 %2351  ;;  %v2385_v7 = vld [vmem:[#allocation2 + $0x78] sm:$0xff] }
 0xbbf   :  { %2372 = vst.msk [vmem:[#allocation2 + $0x68] sm:$0xff] %vm432_vm2, %v2354_v11  ;;  %v4247_v11 = vld [vmem:[%s6721_s5 + $0x50] sm:$0xff] }
 0xbc0   :  { %2371 = vst.msk [vmem:[#allocation2 + $0x60] sm:$0xff] %vm432_vm2, %v2352_v12  ;;  %2611 = vmatpush.msrb.mxu1 %v4247_v11  ;;  %v2554_v12 = vld [vmem:[%s6721_s5 + $0x8] sm:$0xff] }
 0xbc6   :  { %v2348_v60 = vpop.permute.xlu1 %2347  ;;  %v2356_v0 = vpop.permute.xlu0 %2355  ;;  %v2383_v14 = vld [vmem:[#allocation2 + $0x68] sm:$0xff] }
 0xbc7   :  { %2369 = vst.msk [vmem:[#allocation2 + $0x50] sm:$0xff] %vm432_vm2, %v2348_v60  ;;  %v2346_v23 = vpop.permute.xlu2 %2345  ;;  %v2382_v17 = vld [vmem:[#allocation2 + $0x60] sm:$0xff]  ;;  %v4246_v60 = vld [vmem:[%s6721_s5 + $0x48] sm:$0xff] }
 0xbc8   :  { %2373 = vst.msk [vmem:[#allocation2 + $0x70] sm:$0xff] %vm432_vm2, %v2356_v0  ;;  %v4551_v15 = vpack.i.bf16 %v2382_v17, %v2383_v14  ;;  %2612 = vmatpush.msrb.mxu1 %v4246_v60  ;;  %v2553_v0 = vld [vmem:[%s6721_s5] sm:$0xff] }
 0xbc9   :  { %2368 = vst.msk [vmem:[#allocation2 + $0x48] sm:$0xff] %vm432_vm2, %v2346_v23 }
 0xbca   :  { %4552 = vrot.lane.b32.xlu2 %v4551_v15, %s4699_s21 }
 0xbce   :  { %v2350_v16 = vpop.permute.xlu0 %2349  ;;  %v2380_v62 = vld [vmem:[#allocation2 + $0x50] sm:$0xff] }
 0xbcf   :  { %2370 = vst.msk [vmem:[#allocation2 + $0x58] sm:$0xff] %vm432_vm2, %v2350_v16  ;;  %v2384_v45 = vld [vmem:[#allocation2 + $0x70] sm:$0xff] }
 0xbd0   :  { %v4546_v19 = vpack.i.bf16 %v2384_v45, %v2385_v7  ;;  %v2379_v21 = vld [vmem:[#allocation2 + $0x48] sm:$0xff] }
 0xbd2   :  { %4547 = vrot.lane.b32.xlu1 %v4546_v19, %s4699_s21  ;;  %4567 = vrot.lane.b32.xlu2 %v4546_v19, %s4698_s20 }
 0xbd6   :  { %v2344_v63 = vpop.permute.xlu0 %2343  ;;  %v2381_v1 = vld [vmem:[#allocation2 + $0x58] sm:$0xff] }
 0xbd7   :  { %2367 = vst.msk [vmem:[#allocation2 + $0x40] sm:$0xff] %vm432_vm2, %v2344_v63  ;;  %v4556_v13 = vpack.i.bf16 %v2380_v62, %v2381_v1 }
 0xbd9   :  { %4557 = vrot.lane.b32.xlu0 %v4556_v13, %s4699_s21 }
 0xbde   :  { %v2378_v20 = vld [vmem:[#allocation2 + $0x40] sm:$0xff] }
 0xbdf   :  { %v4581_v24 = vpack.i.bf16 %v2378_v20, %v2379_v21 }
 0xbe1   :  { %4572 = vrot.lane.b32.xlu0 %v4551_v15, %s4698_s20  ;;  %4582 = vrot.lane.b32.xlu2 %v4581_v24, %s4698_s20 }
 0xbe2   :  { %4562 = vrot.lane.b32.xlu1 %v4581_v24, %s4699_s21 }
 0xbe9   :  { %2541 = vperm.xlu0 %4474, %v2537_v25  }
 0xbea   :  { %4577 = vrot.lane.b32.xlu1 %v4556_v13, %s4698_s20 }
 0xbf2   :  { %2546 = vperm.xlu1 %4475, %v2538_v26  }
 0xc24   :  { %v4553_v30 = vpop.permute.xlu2 %4552 }
 0xc25   :  { %v4554_v32 = vunpack.i.l.bf16 %v4553_v30  ;;  %v4555_v33 = vunpack.i.h.bf16 %v4553_v30 }
 0xc2c   :  { %v4568_v41 = vpop.permute.xlu2 %4567 }
 0xc2d   :  { %v4569_v42 = vunpack.i.l.bf16 %v4568_v41  ;;  %v4570_v46 = vunpack.i.h.bf16 %v4568_v41 }
 0xc3b   :  { %v4583_v50 = vpop.permute.xlu2 %4582 }
 0xc3c   :  { %v4584_v52 = vunpack.i.l.bf16 %v4583_v50  ;;  %v4585_v53 = vunpack.i.h.bf16 %v4583_v50 }
 0xc44   :  { %v4548_v27 = vpop.permute.xlu1 %4547 }
 0xc45   :  { %v4549_v28 = vunpack.i.l.bf16 %v4548_v27  ;;  %v4550_v31 = vunpack.i.h.bf16 %v4548_v27 }
 0xc47   :  { %2435 = vmatpush.msra.mxu0 %v4549_v28 }
 0xc49   :  { %2436 = vmatpush.msra.mxu0 %v4550_v31 }
 0xc4b   :  { %2437 = vmatpush.msra.mxu0 %v4554_v32  ;;  %v4558_v34 = vpop.permute.xlu0 %4557 }
 0xc4c   :  { %v4559_v35 = vunpack.i.l.bf16 %v4558_v34  ;;  %v4560_v36 = vunpack.i.h.bf16 %v4558_v34 }
 0xc4d   :  { %2438 = vmatpush.msra.mxu0 %v4555_v33 }
 0xc4f   :  { %2439 = vmatpush.msra.mxu0 %v4559_v35 }
 0xc51   :  { %2440 = vmatpush.msra.mxu0 %v4560_v36 }
 0xc53   :  { %v4573_v44 = vpop.permute.xlu0 %4572 }
 0xc54   :  { %v4563_v37 = vpop.permute.xlu1 %4562  ;;  %v4574_v18 = vunpack.i.l.bf16 %v4573_v44  ;;  %v4575_v47 = vunpack.i.h.bf16 %v4573_v44 }
 0xc55   :  { %v4564_v38 = vunpack.i.l.bf16 %v4563_v37  ;;  %v4565_v29 = vunpack.i.h.bf16 %v4563_v37 }
 0xc57   :  { %2441 = vmatpush.msra.mxu0 %v4564_v38 }
 0xc59   :  { %2442 = vmatpush.msra.mxu0 %v4565_v29 }
 0xc5a   :  { %4235 = vmatmul.msk.f32.vlgmr.msra.gmra.mxu0 %vm486_vm3, %v4233_v39 }
 0xc5b   :  { %2464 = vmatpush.msrb.mxu0 %v2385_v7  ;;  %v2542_v19 = vpop.permute.xlu0 %2541 }
 0xc5c   :  { %v4578_v9 = vpop.permute.xlu1 %4577 }
 0xc5d   :  { %2465 = vmatpush.msrb.mxu0 %v2384_v45  ;;  %v4579_v48 = vunpack.i.l.bf16 %v4578_v9  ;;  %v4580_v51 = vunpack.i.h.bf16 %v4578_v9  ;;  %v2661_v9 = vld [vmem:[%s6723_s7 + $0x8] sm:$0xff] }
 0xc5f   :  { %2466 = vmatpush.msrb.mxu0 %v2383_v14  ;;  %v4245_v14 = vld [vmem:[%s6721_s5 + $0x40] sm:$0xff] }
 0xc60   :  { %2613 = vmatpush.msrb.mxu1 %v4245_v14 }
 0xc61   :  { %2467 = vmatpush.msrb.mxu0 %v2382_v17 }
 0xc62   :  { %4236 = vmatmul.msk.f32.gmra.mxu0 %vm486_vm3, %v4234_v40 }
 0xc63   :  { %2468 = vmatpush.msrb.mxu0 %v2381_v1 }
 0xc65   :  { %2469 = vmatpush.msrb.mxu0 %v2380_v62 }
 0xc67   :  { %2470 = vmatpush.msrb.mxu0 %v2379_v21  ;;  %v2547_v21 = vpop.permute.xlu1 %2546 }
 0xc69   :  { %2471 = vmatpush.msrb.mxu0 %v2378_v20 }
 0xc6a   :  { %4237 = vmatmul.msk.f32.vlgmr.msrb.gmra.mxu0 %vm486_vm3, %v4231_v43  ;;  %v2635_v43 = vld [vmem:[%s6722_s6] sm:$0xf] }
 0xc6b   :  { %2520 = vmatpush.msra.mxu0 %v4569_v42 }
 0xc6d   :  { %2521 = vmatpush.msra.mxu0 %v4570_v46 }
 0xc6f   :  { %2522 = vmatpush.msra.mxu0 %v4574_v18  ;;  %v2660_v18 = vld [vmem:[%s6723_s7] sm:$0xff] }
 0xc71   :  { %2523 = vmatpush.msra.mxu0 %v4575_v47 }
 0xc72   :  { %4238 = vmatmul.msk.f32.gmra.mxu0 %vm486_vm3, %v4232_v49 }
 0xc73   :  { %2524 = vmatpush.msra.mxu0 %v4579_v48 }
 0xc75   :  { %2525 = vmatpush.msra.mxu0 %v4580_v51 }
 0xc77   :  { %2526 = vmatpush.msra.mxu0 %v4584_v52 }
 0xc79   :  { %2527 = vmatpush.msra.mxu0 %v4585_v53 }
 0xc7a   :  { %4241 = vmatmul.msk.f32.vlgmr.msra.gmra.mxu0 %vm486_vm3, %v4239_v54 }
 0xc7b   :  { %2575 = vmatpush.msrb.mxu0 %v2560_v56 }
 0xc7d   :  { %2576 = vmatpush.msrb.mxu0 %v2559_v58 }
 0xc7f   :  { %2577 = vmatpush.msrb.mxu0 %v2558_v61 }
 0xc81   :  { %2578 = vmatpush.msrb.mxu0 %v2557_v4 }
 0xc82   :  { %4242 = vmatmul.msk.f32.gmra.mxu0 %vm486_vm3, %v4240_v55 }
 0xc83   :  { %2579 = vmatpush.msrb.mxu0 %v2556_v8 }
 0xc85   :  { %2580 = vmatpush.msrb.mxu0 %v2555_v10 }
 0xc87   :  { %2581 = vmatpush.msrb.mxu0 %v2554_v12 }
 0xc89   :  { %2582 = vmatpush.msrb.mxu0 %v2553_v0 }
 0xcd7   :  { %v2444_v6 = vpop.f32.mrf.mxu0 }
 0xcdf   :  { %v2447_v23 = vpop.f32.mrf.mxu0 }
 0xce7   :  { %v2473_v17 = vpop.f32.mrf.mxu0 }
 0xce8   :  { %v2474_v16 = vadd.f32 %v2473_v17, %v2444_v6 }
 0xcef   :  { %v2476_v15 = vpop.f32.mrf.mxu0 }
 0xcf0   :  { %v2477_v1 = vadd.f32 %v2476_v15, %v2447_v23 }
 0xcf7   :  { %v2529_v45 = vpop.f32.mrf.mxu0 }
 0xcf8   :  { %v2535_v7 = vadd.f32 %v2529_v45, %v2474_v16 }
 0xcfa   :  { %v2549_v63 = vadd.f32 %v2542_v19, %v2535_v7 }
 0xcfc   :  { %v6013_v62 = vmax.f32 %v2549_v63, 0.0 }
 0xcfe   :  { %4243 = vmatmul.msk.f32.vlgmr.msrb.gmra.mxu0 %vm486_vm3, %v6013_v62  ;;  %4253 = vmatmul.msk.f32.vlgmr.msrb.gmra.mxu1 %vm486_vm3, %v6013_v62 }
 0xcff   :  { %v2532_v13 = vpop.f32.mrf.mxu0 }
 0xd00   :  { %v2536_v20 = vadd.f32 %v2532_v13, %v2477_v1 }
 0xd02   :  { %v2550_v24 = vadd.f32 %v2547_v21, %v2536_v20 }
 0xd04   :  { %v6019_v25 = vmax.f32 %v2550_v24, 0.0 }
 0xd06   :  { %4244 = vmatmul.msk.f32.gmra.mxu0 %vm486_vm3, %v6019_v25  ;;  %4254 = vmatmul.msk.f32.gmra.mxu1 %vm486_vm3, %v6019_v25 }
 0xd7b   :  { %v2584_v26 = vpop.f32.mrf.mxu0  ;;  %v2615_v27 = vpop.f32.mrf.mxu1 }
 0xd7c   :  { %v2621_v28 = vmul.f32 %v2584_v26, %v2584_v26  ;;  %v2623_v30 = vmul.f32 %v2615_v27, %v2615_v27 }
 0xd7e   :  { %v6025_v31 = vadd.f32 %v2623_v30, %v2621_v28 }
 0xd80   :  { %v2627_v32 = vsel %vm694_vm4, %v6025_v31, 0.0  ;;  %v2748_v29 = vsel %vm694_vm4, %v6025_v31, -inf }
 0xd81   :  { %2628 = vadd.xlane.f32.xlu0 %v2627_v32 }
 0xd83   :  { %v2587_v33 = vpop.f32.mrf.mxu0  ;;  %v2618_v34 = vpop.f32.mrf.mxu1 }
 0xd84   :  { %v2622_v35 = vmul.f32 %v2587_v33, %v2587_v33  ;;  %v2624_v36 = vmul.f32 %v2618_v34, %v2618_v34 }
 0xd86   :  { %v6029_v37 = vadd.f32 %v2624_v36, %v2622_v35 }
 0xd88   :  { %v2630_v38 = vsel %vm694_vm4, %v6029_v37, 0.0  ;;  %v2751_v45 = vsel %vm694_vm4, %v6029_v37, -inf }
 0xd89   :  { %2631 = vadd.xlane.f32.xlu2 %v2630_v38 }
 0xd91   :  { %2749 = vmax.xlane.f32.xlu2 %v2748_v29  ;;  %v2994_v29 = vld [vmem:[%s6726_s10 + $0x8] sm:$0xff] }
 0xdf4   :  { %v2629_v39 = vpop.xlane.xlu0 %2628 }
 0xdf5   :  { %v2633_v42 = vmul.f32 %v2629_v39, %v5092_v22 }
 0xdfc   :  { %v2632_v40 = vpop.xlane.xlu2 %2631 }
 0xdfd   :  { %v2634_v41 = vmul.f32 %v2632_v40, %v5092_v22 }
 0xdff   :  { %2653 = vmatpush.msrb.mxu3 %v2634_v41 }
 0xe01   :  { %2654 = vmatpush.msrb.mxu3 %v2633_v42 }
 0xe02   :  { %4255 = vmatmul.msk.f32.vlgmr.msrb.gmra.mxu3 %vm711_vm6, %v2635_v43 }
 0xe04   :  { %v2750_v21 = vpop.xlane.xlu2 %2749 }
 0xe05   :  { %v2754_v24 = vsub.f32 %v6025_v31, %v2750_v21 }
 0xe07   :  { %v2756_v26 = vmul.f32 1.442695, %v2754_v24 }
 0xe85   :  { %v2656_v44 = vpop.f32.mrf.mxu3 }
 0xe86   :  { %v2659_v46 = vmax.f32 %v2656_v44, 0.0 }
 0xe88   :  { %4256 = vmatpush.msk.msrb.mxu2 %vm745_vm7, %v2659_v46  ;;  %v2770_v46 = vld [vmem:[%s6724_s8] sm:$0x1] }
 0xe89   :  { %4257 = vmatmul.msk.f32.vlgmr.msrb.gmra.mxu2 %vm738_vm8, %v2660_v18  ;;  %v2804_v18 = vld [vmem:[%s6725_s9] sm:$0xff] }
 0xe91   :  { %4258 = vmatmul.msk.f32.gmra.mxu2 %vm738_vm8, %v2661_v9 }
 0xf0c   :  { %v2688_v47 = vpop.f32.mrf.mxu2 }
 0xf0d   :  { %v4259_v48 = vmul.f32 -1.442695, %v2688_v47 }
 0xf0f   :  { %4640 = vpow2.f32 %v4259_v48 }
 0xf14   :  { %v2691_v49 = vpop.f32.mrf.mxu2 }
 0xf15   :  { %v4641_v50 = vpop.eup %4640  ;;  %v4260_v51 = vmul.f32 -1.442695, %v2691_v49  ;;  %v4268_v49 = vld [vmem:[%s6725_s9 + $0x20] sm:$0xff] }
 0xf16   :  { %v2700_v52 = vadd.f32 1.0, %v4641_v50  ;;  %v2805_v50 = vld [vmem:[%s6725_s9 + $0x8] sm:$0xff] }
 0xf17   :  { %4642 = vpow2.f32 %v4260_v51 }
 0xf18   :  { %4644 = vrcp.f32 %v2700_v52  ;;  %v2713_v60 = vand.u32 2147483648, %v2700_v52  ;;  %vm2707_vm15 = vweird.f32 %v2700_v52  ;;  %v2711_v14 = vand.u32 2147483647, %v2700_v52 }
 0xf1a   :  { %v2714_v17 = vor.u32 1.1754944e-38, %v2713_v60  ;;  %vm2712_vm5 = vcmp.eq.f32.partialorder %v2711_v14, 8.507059e+37  ;;  %v4298_v60 = vld [vmem:[%s6721_s5 + $0xf0] sm:$0xff]  ;;  %v4297_v14 = vld [vmem:[%s6721_s5 + $0xe8] sm:$0xff] }
 0xf1d   :  { %v4643_v53 = vpop.eup %4642 }
 0xf1e   :  { %v2701_v54 = vadd.f32 1.0, %v4643_v53  ;;  %v4645_v55 = vpop.eup %4644 }
 0xf1f   :  { %v2703_v56 = vmul.f32 %v4645_v55, %v2700_v52  ;;  %vm2708_vm14 = vweird.f32 %v4645_v55 }
 0xf20   :  { %4646 = vrcp.f32 %v2701_v54  ;;  %v2728_v3 = vand.u32 2147483648, %v2701_v54  ;;  %v2726_v5 = vand.u32 2147483647, %v2701_v54  ;;  %vm2722_vm2 = vweird.f32 %v2701_v54  ;;  %vm2709_vm1 = vmor %vm2707_vm15, %vm2708_vm14 }
 0xf21   :  { %v2704_v59 = vsub.f32 1.0, %v2703_v56  ;;  %4648 = vpow2.f32 %v2756_v26  ;;  %v4273_v56 = vld [vmem:[%s6725_s9 + $0x38] sm:$0xff] }
 0xf22   :  { %v2729_v2 = vor.u32 1.1754944e-38, %v2728_v3  ;;  %vm2727_vm13 = vcmp.eq.f32.partialorder %v2726_v5, 8.507059e+37  ;;  %v4262_v3 = vld [vmem:[%s6725_s9 + $0x10] sm:$0xff] }
 0xf23   :  { %v2705_v6 = vmul.f32 %v4645_v55, %v2704_v59 }
 0xf25   :  { %v2706_v11 = vadd.f32 %v4645_v55, %v2705_v6  ;;  %v4263_v6 = vld [vmem:[%s6725_s9 + $0x18] sm:$0xff] }
 0xf26   :  { %v4647_v57 = vpop.eup %4646 }
 0xf27   :  { %v2718_v58 = vmul.f32 %v4647_v57, %v2701_v54  ;;  %vm2723_vm0 = vweird.f32 %v4647_v57  ;;  %v2710_v23 = vsel %vm2709_vm1, %v4645_v55, %v2706_v11  ;;  %v4649_v27 = vpop.eup %4648  ;;  %v4272_v54 = vld [vmem:[%s6725_s9 + $0x30] sm:$0xff]  ;;  %v4269_v55 = vld [vmem:[%s6725_s9 + $0x28] sm:$0xff]  ;;  %v4299_v11 = vld [vmem:[%s6721_s5 + $0xf8] sm:$0xff] }
 0xf28   :  { %vm2724_vm12 = vmor %vm2722_vm2, %vm2723_vm0  ;;  %v2715_v15 = vsel %vm2712_vm5, %v2714_v17, %v2710_v23  ;;  %v2760_v28 = vsel %vm694_vm4, %v4649_v27, 0.0  ;;  %v4286_v23 = vld [vmem:[%s6721_s5 + $0xa0] sm:$0xff] }
 0xf29   :  { %v2719_v61 = vsub.f32 1.0, %v2718_v58  ;;  %v2732_v16 = vadd.f32 1.0, %v2715_v15  ;;  %v4296_v17 = vld [vmem:[%s6721_s5 + $0xe0] sm:$0xff]  ;;  %v4285_v15 = vld [vmem:[%s6721_s5 + $0x98] sm:$0xff] }
 0xf2b   :  { %v2720_v4 = vmul.f32 %v4647_v57, %v2719_v61 }
 0xf2d   :  { %v2721_v8 = vadd.f32 %v4647_v57, %v2720_v4 }
 0xf2f   :  { %v2725_v10 = vsel %vm2724_vm12, %v4647_v57, %v2721_v8  ;;  %v4276_v8 = vld [vmem:[%s6725_s9 + $0x40] sm:$0xff] }
 0xf30   :  { %v2730_v12 = vsel %vm2727_vm13, %v2729_v2, %v2725_v10  ;;  %v4277_v2 = vld [vmem:[%s6725_s9 + $0x48] sm:$0xff]  ;;  %v4289_v10 = vld [vmem:[%s6721_s5 + $0xb8] sm:$0xff] }
 0xf31   :  { %v2733_v0 = vadd.f32 1.0, %v2730_v12  ;;  %v4288_v12 = vld [vmem:[%s6721_s5 + $0xb0] sm:$0xff] }
 0xf33   :  { %2741 = vperm.xlu1 %4475, %v2733_v0   ;;  %v4287_v0 = vld [vmem:[%s6721_s5 + $0xa8] sm:$0xff] }
 0xf3b   :  { %2736 = vperm.xlu1 %4475, %v2732_v16   ;;  %v4295_v16 = vld [vmem:[%s6721_s5 + $0xd8] sm:$0xff] }
 0xf65   :  { %2752 = vmax.xlane.f32.xlu1 %v2751_v45  ;;  %v4284_v45 = vld [vmem:[%s6721_s5 + $0x90] sm:$0xff] }
 0xfa5   :  { %v2742_v7 = vpop.permute.xlu1 %2741 }
 0xfa6   :  { %v2745_v19 = vmul.f32 %v2742_v7, %v6019_v25  ;;  %v4294_v7 = vld [vmem:[%s6721_s5 + $0xd0] sm:$0xff] }
 0xfa8   :  { %v2747_v63 = vmax.f32 %v2745_v19, 0.0  ;;  %v4283_v19 = vld [vmem:[%s6721_s5 + $0x88] sm:$0xff] }
 0xfaa   :  { %2798 = vrot.lane.b32.xlu0 %v2747_v63, %s6751_s3  ;;  %v4293_v63 = vld [vmem:[%s6721_s5 + $0xc8] sm:$0xff] }
 0xfad   :  { %v2737_v1 = vpop.permute.xlu1 %2736 }
 0xfae   :  { %v2744_v13 = vmul.f32 %v2737_v1, %v6013_v62  ;;  %v4282_v1 = vld [vmem:[%s6721_s5 + $0x80] sm:$0xff] }
 0xfb0   :  { %v2746_v20 = vmax.f32 %v2744_v13, 0.0  ;;  %v4292_v13 = vld [vmem:[%s6721_s5 + $0xc0] sm:$0xff] }
 0xfb2   :  { %2796 = vrot.lane.b32.xlu2 %v2746_v20, %s6751_s3  ;;  %s4707_s3 = smov [#allocation4]  }
 0xfb3   :  { %s3920_s9 = sshll.u32 %s4707_s3, 4  ;;  %s3921_s9 = int_to_ptr.vmem [resolvable:$true] %s3920_s9 }
 0xfd4   :  { %2761 = vadd.xlane.f32.xlu0 %v2760_v28 }
 0xfd8   :  { %v2753_v30 = vpop.xlane.xlu1 %2752 }
 0xfd9   :  { %v2755_v25 = vsub.f32 %v6029_v37, %v2753_v30  ;;  %v2993_v37 = vld [vmem:[%s6726_s10] sm:$0xff] }
 0xfdb   :  { %v2758_v32 = vmul.f32 1.442695, %v2755_v25 }
 0xfdd   :  { %4650 = vpow2.f32 %v2758_v32 }
 0xfe3   :  { %v4651_v33 = vpop.eup %4650 }
 0xfe4   :  { %v2763_v62 = vsel %vm694_vm4, %v4651_v33, 0.0 }
 0xfe5   :  { %2764 = vadd.xlane.f32.xlu1 %v2763_v62 }
0x100c   :  { %v2797_v34 = vpop.permute.xlu2 %2796 }
0x100d   :  { %2802 = vst.msk [vmem:[#allocation3 + $0x10] sm:$0xff] %vm880_vm9, %v2797_v34 }
0x1014   :  { %v2806_v36 = vld [vmem:[#allocation3 + $0x10] sm:$0xff] }
0x101c   :  { %v2799_v35 = vpop.permute.xlu0 %2798 }
0x101d   :  { %2803 = vst.msk [vmem:[#allocation3 + $0x18] sm:$0xff] %vm880_vm9, %v2799_v35 }
0x1024   :  { %v2807_v31 = vld [vmem:[#allocation3 + $0x18] sm:$0xff] }
0x1025   :  { %2867 = vmatpush.msra.mxu1 %v2807_v31  ;;  %v4591_v38 = vpack.i.bf16 %v2806_v36, %v2807_v31 }
0x1027   :  { %4592 = vrot.lane.b32.xlu2 %v4591_v38, %s4698_s20  ;;  %4587 = vrot.lane.b32.xlu1 %v4591_v38, %s4699_s21 }
0x1028   :  { %2868 = vmatpush.msra.mxu1 %v2806_v36 }
0x1029   :  { %4266 = vmatmul.msk.f32.vlgmr.msra.gmra.mxu1 %vm711_vm6, %v2804_v18 }
0x102f   :  { %4597 = vrot.lane.b32.xlu2 %v4591_v38, %s6752_s2  ;;  %2997 = vperm.xlu1 %4475, %v2993_v37  }
0x1031   :  { %4267 = vmatmul.msk.f32.gmra.mxu1 %vm711_vm6, %v2805_v50 }
0x1037   :  { %4602 = vrot.lane.b32.xlu2 %v4591_v38, %s6753_s23 }
0x103f   :  { %3002 = vperm.xlu2 %4473, %v2994_v29  }
0x1047   :  { %v2762_v39 = vpop.xlane.xlu0 %2761 }
0x1048   :  { %4652 = vrcp.f32 %v2762_v39 }
0x104e   :  { %v4653_v41 = vpop.eup %4652 }
0x104f   :  { %v2768_v44 = vmul.f32 %v4653_v41, %v4649_v27 }
0x1058   :  { %v2765_v40 = vpop.xlane.xlu1 %2764 }
0x1059   :  { %4654 = vrcp.f32 %v2765_v40 }
0x105f   :  { %v4655_v42 = vpop.eup %4654 }
0x1060   :  { %v2769_v43 = vmul.f32 %v4655_v42, %v4651_v33 }
0x1062   :  { %2788 = vmatpush.msra.mxu3 %v2769_v43 }
0x1064   :  { %2789 = vmatpush.msra.mxu3 %v2768_v44 }
0x1065   :  { %4261 = vmatmul.msk.f32.vlgmr.msra.gmra.mxu3 %vm711_vm6, %v2770_v46 }
0x1081   :  { %v4593_v9 = vpop.permute.xlu2 %4592 }
0x1082   :  { %v4594_v47 = vunpack.i.l.bf16 %v4593_v9  ;;  %v4595_v48 = vunpack.i.h.bf16 %v4593_v9 }
0x1084   :  { %2904 = vmatpush.msrb.mxu3 %v4594_v47  ;;  %3031 = vmatpush.msrb.mxu1 %v4594_v47 }
0x1086   :  { %2905 = vmatpush.msrb.mxu3 %v4595_v48  ;;  %3032 = vmatpush.msrb.mxu1 %v4595_v48 }
0x1087   :  { %4270 = vmatmul.msk.f32.vlgmr.msrb.gmra.mxu3 %vm711_vm6, %v4268_v49 }
0x1088   :  { %3062 = vmatpush.msra.mxu3 %v4289_v10 }
0x1089   :  { %v4598_v51 = vpop.permute.xlu2 %4597 }
0x108a   :  { %v4599_v52 = vunpack.i.l.bf16 %v4598_v51  ;;  %v4600_v53 = vunpack.i.h.bf16 %v4598_v51  ;;  %3063 = vmatpush.msra.mxu3 %v4288_v12 }
0x108c   :  { %2943 = vmatpush.msra.mxu2 %v4599_v52  ;;  %3064 = vmatpush.msra.mxu3 %v4287_v0 }
0x108e   :  { %2944 = vmatpush.msra.mxu2 %v4600_v53  ;;  %3065 = vmatpush.msra.mxu3 %v4286_v23 }
0x108f   :  { %4274 = vmatmul.msk.f32.vlgmr.msra.gmra.mxu2 %vm711_vm6, %v4272_v54  ;;  %4271 = vmatmul.msk.f32.gmra.mxu3 %vm711_vm6, %v4269_v55 }
0x1090   :  { %3093 = vmatpush.msrb.mxu2 %v4299_v11  ;;  %3066 = vmatpush.msra.mxu3 %v4285_v15  ;;  %v4302_v11 = vld [vmem:[%s6722_s6 + $0x4] sm:$0xf] }
0x1091   :  { %v4603_v59 = vpop.permute.xlu2 %4602 }
0x1092   :  { %v4604_v4 = vunpack.i.l.bf16 %v4603_v59  ;;  %v4605_v5 = vunpack.i.h.bf16 %v4603_v59  ;;  %3094 = vmatpush.msrb.mxu2 %v4298_v60  ;;  %3067 = vmatpush.msra.mxu3 %v4284_v45  ;;  %v3009_v59 = vld [vmem:[%s6727_s11] sm:$0xff] }
0x1093   :  { %4280 = vmatmul.msk.f32.vlgmr.msrb.gmra.mxu1 %vm711_vm6, %v3009_v59  ;;  %v4315_v59 = vld [vmem:[%s6728_s12 + $0x48] sm:$0xff] }
0x1094   :  { %3095 = vmatpush.msrb.mxu2 %v4297_v14  ;;  %3068 = vmatpush.msra.mxu3 %v4283_v19 }
0x1096   :  { %3096 = vmatpush.msrb.mxu2 %v4296_v17  ;;  %3069 = vmatpush.msra.mxu3 %v4282_v1 }
0x1097   :  { %4275 = vmatmul.msk.f32.gmra.mxu2 %vm711_vm6, %v4273_v56 }
0x1098   :  { %3097 = vmatpush.msrb.mxu2 %v4295_v16 }
0x1099   :  { %v4588_v57 = vpop.permute.xlu1 %4587  ;;  %v3003_v43 = vpop.permute.xlu2 %3002 }
0x109a   :  { %v4589_v58 = vunpack.i.l.bf16 %v4588_v57  ;;  %v4590_v61 = vunpack.i.h.bf16 %v4588_v57  ;;  %3098 = vmatpush.msrb.mxu2 %v4294_v7  ;;  %v4304_v7 = vld [vmem:[%s6723_s7 + $0x10] sm:$0xff] }
0x109c   :  { %2838 = vmatpush.msra.mxu0 %v4589_v58  ;;  %3099 = vmatpush.msrb.mxu2 %v4293_v63 }
0x109e   :  { %2839 = vmatpush.msra.mxu0 %v4590_v61  ;;  %3100 = vmatpush.msrb.mxu2 %v4292_v13  ;;  %v3010_v61 = vld [vmem:[%s6727_s11 + $0x8] sm:$0xff]  ;;  %v4305_v13 = vld [vmem:[%s6723_s7 + $0x18] sm:$0xff] }
0x109f   :  { %4264 = vmatmul.msk.f32.vlgmr.msra.gmra.mxu0 %vm711_vm6, %v4262_v3  ;;  %4281 = vmatmul.msk.f32.gmra.mxu1 %vm711_vm6, %v3010_v61  ;;  %v4324_v61 = vld [vmem:[%s6728_s12 + $0x88] sm:$0xff] }
0x10a0   :  { %2982 = vmatpush.msrb.mxu0 %v4604_v4 }
0x10a1   :  { %v2998_v36 = vpop.permute.xlu1 %2997 }
0x10a2   :  { %2983 = vmatpush.msrb.mxu0 %v4605_v5 }
0x10a6   :  { %v2870_v24 = vpop.f32.mrf.mxu1 }
0x10a7   :  { %4265 = vmatmul.msk.f32.gmra.mxu0 %vm711_vm6, %v4263_v6 }
0x10ae   :  { %v2873_v32 = vpop.f32.mrf.mxu1 }
0x10af   :  { %4278 = vmatmul.msk.f32.vlgmr.msrb.gmra.mxu0 %vm711_vm6, %v4276_v8 }
0x10b7   :  { %4279 = vmatmul.msk.f32.gmra.mxu0 %vm711_vm6, %v4277_v2 }
0x10e8   :  { %v6164_v20 = vpop.f32.mrf.mxu3 }
0x110a   :  { %v2907_v26 = vpop.f32.mrf.mxu3 }
0x1112   :  { %v2946_v30 = vpop.f32.mrf.mxu2  ;;  %v2910_v35 = vpop.f32.mrf.mxu3 }
0x111a   :  { %v2949_v29 = vpop.f32.mrf.mxu2 }
0x111c   :  { %v2841_v21 = vpop.f32.mrf.mxu0 }
0x111d   :  { %v2871_v27 = vadd.f32 %v2870_v24, %v2841_v21 }
0x111f   :  { %v2913_v25 = vadd.f32 %v2907_v26, %v2871_v27  ;;  %v6207_v26 = vpop.f32.mrf.mxu1 }
0x1121   :  { %v2952_v33 = vadd.f32 %v2946_v30, %v2913_v25  ;;  %v4311_v25 = vld [vmem:[%s6724_s8 + $0x1] sm:$0x1] }
0x1124   :  { %v2844_v28 = vpop.f32.mrf.mxu0 }
0x1125   :  { %v2874_v62 = vadd.f32 %v2873_v32, %v2844_v28  ;;  %v3289_v32 = vld [vmem:[%s6728_s12 + $0x38] sm:$0xff] }
0x1126   :  { %3301 = vmatpush.msra.mxu2 %v3289_v32 }
0x1127   :  { %v2914_v37 = vadd.f32 %v2910_v35, %v2874_v62  ;;  %v6209_v27 = vpop.f32.mrf.mxu1  ;;  %v4321_v62 = vld [vmem:[%s6728_s12 + $0x78] sm:$0xff] }
0x1128   :  { %v4339_v35 = vld [vmem:[%s6728_s12 + $0xf8] sm:$0xff] }
0x1129   :  { %v2953_v40 = vadd.f32 %v2949_v29, %v2914_v37  ;;  %v4338_v29 = vld [vmem:[%s6728_s12 + $0xf0] sm:$0xff] }
0x112c   :  { %v2985_v34 = vpop.f32.mrf.mxu0 }
0x112d   :  { %v2991_v31 = vadd.f32 %v2985_v34, %v2952_v33  ;;  %v3288_v33 = vld [vmem:[%s6728_s12 + $0x30] sm:$0xff]  ;;  %v4330_v34 = vld [vmem:[%s6728_s12 + $0xb8] sm:$0xff] }
0x112e   :  { %3302 = vmatpush.msra.mxu2 %v3288_v33  ;;  %v4344_v33 = vld [vmem:[%s6728_s12 + $0x118] sm:$0xff] }
0x112f   :  { %v3005_v38 = vadd.f32 %v2998_v36, %v2991_v31  ;;  %v3287_v31 = vld [vmem:[%s6728_s12 + $0x28] sm:$0xff]  ;;  %v4320_v36 = vld [vmem:[%s6728_s12 + $0x70] sm:$0xff] }
0x1130   :  { %3303 = vmatpush.msra.mxu2 %v3287_v31  ;;  %v4363_v31 = vld [vmem:[%s6728_s12 + $0x1a0] sm:$0xff] }
0x1131   :  { %v6166_v39 = vmax.f32 %v3005_v38, 0.0  ;;  %v4329_v38 = vld [vmem:[%s6728_s12 + $0xb0] sm:$0xff] }
0x1133   :  { %4290 = vmatmul.msk.f32.vlgmr.msra.gmra.mxu3 %vm486_vm3, %v6166_v39  ;;  %4300 = vmatmul.msk.f32.vlgmr.msrb.gmra.mxu2 %vm486_vm3, %v6166_v39 }
0x1134   :  { %v2988_v41 = vpop.f32.mrf.mxu0 }
0x1135   :  { %v2992_v42 = vadd.f32 %v2988_v41, %v2953_v40  ;;  %v4319_v40 = vld [vmem:[%s6728_s12 + $0x68] sm:$0xff] }
0x1137   :  { %v3006_v44 = vadd.f32 %v3003_v43, %v2992_v42  ;;  %v3286_v43 = vld [vmem:[%s6728_s12 + $0x20] sm:$0xff] }
0x1138   :  { %3304 = vmatpush.msra.mxu2 %v3286_v43 }
0x1139   :  { %v6172_v46 = vmax.f32 %v3006_v44, 0.0  ;;  %v4328_v44 = vld [vmem:[%s6728_s12 + $0xa8] sm:$0xff] }
0x113b   :  { %4291 = vmatmul.msk.f32.gmra.mxu3 %vm486_vm3, %v6172_v46  ;;  %4301 = vmatmul.msk.f32.gmra.mxu2 %vm486_vm3, %v6172_v46 }
0x11b6   :  { %v3071_v18 = vpop.f32.mrf.mxu3  ;;  %v3102_v9 = vpop.f32.mrf.mxu2 }
0x11b7   :  { %v3108_v47 = vmul.f32 %v3071_v18, %v3071_v18  ;;  %v3110_v48 = vmul.f32 %v3102_v9, %v3102_v9  ;;  %v4337_v18 = vld [vmem:[%s6728_s12 + $0xe8] sm:$0xff] }
0x11b9   :  { %v3112_v49 = vadd.f32 %v3110_v48, %v3108_v47  ;;  %v4318_v47 = vld [vmem:[%s6728_s12 + $0x60] sm:$0xff] }
0x11ba   :  { %v4327_v48 = vld [vmem:[%s6728_s12 + $0xa0] sm:$0xff] }
0x11bb   :  { %v3114_v50 = vsel %vm694_vm4, %v3112_v49, 0.0  ;;  %v3219_v58 = vsel %vm694_vm4, %v3112_v49, -inf }
0x11bc   :  { %3115 = vadd.xlane.f32.xlu2 %v3114_v50  ;;  %v4336_v50 = vld [vmem:[%s6728_s12 + $0xe0] sm:$0xff] }
0x11be   :  { %v3074_v51 = vpop.f32.mrf.mxu3  ;;  %v3105_v52 = vpop.f32.mrf.mxu2 }
0x11bf   :  { %v3109_v53 = vmul.f32 %v3074_v51, %v3074_v51  ;;  %v3111_v54 = vmul.f32 %v3105_v52, %v3105_v52  ;;  %v4317_v51 = vld [vmem:[%s6728_s12 + $0x58] sm:$0xff] }
0x11c0   :  { %v4326_v52 = vld [vmem:[%s6728_s12 + $0x98] sm:$0xff] }
0x11c1   :  { %v3113_v55 = vadd.f32 %v3111_v54, %v3109_v53  ;;  %v3284_v53 = vld [vmem:[%s6728_s12 + $0x10] sm:$0xff]  ;;  %v4335_v54 = vld [vmem:[%s6728_s12 + $0xd8] sm:$0xff] }
0x11c3   :  { %v3222_v56 = vsel %vm694_vm4, %v3113_v55, -inf  ;;  %v3117_v57 = vsel %vm694_vm4, %v3113_v55, 0.0 }
0x11c4   :  { %3223 = vmax.xlane.f32.xlu0 %v3222_v56  ;;  %3118 = vadd.xlane.f32.xlu1 %v3117_v57  ;;  %v4325_v56 = vld [vmem:[%s6728_s12 + $0x90] sm:$0xff]  ;;  %v3283_v57 = vld [vmem:[%s6728_s12 + $0x8] sm:$0xff] }
0x11cc   :  { %3220 = vmax.xlane.f32.xlu0 %v3219_v58  ;;  %v4334_v58 = vld [vmem:[%s6728_s12 + $0xd0] sm:$0xff] }
0x122f   :  { %v3116_v3 = vpop.xlane.xlu2 %3115 }
0x1230   :  { %v3120_v2 = vmul.f32 %v3116_v3, %v5092_v22 }
0x1237   :  { %v3224_v4 = vpop.xlane.xlu0 %3223  ;;  %v3119_v5 = vpop.xlane.xlu1 %3118 }
0x1238   :  { %v3226_v6 = vsub.f32 %v3113_v55, %v3224_v4  ;;  %v3121_v8 = vmul.f32 %v3119_v5, %v5092_v22  ;;  %v4316_v55 = vld [vmem:[%s6728_s12 + $0x50] sm:$0xff]  ;;  %v3282_v4 = vld [vmem:[%s6728_s12] sm:$0xff]  ;;  %v4333_v5 = vld [vmem:[%s6728_s12 + $0xc8] sm:$0xff] }
0x123a   :  { %v3229_v10 = vmul.f32 1.442695, %v3226_v6  ;;  %3140 = vmatpush.msra.mxu0 %v3121_v8 }
0x123c   :  { %4656 = vpow2.f32 %v3229_v10  ;;  %3141 = vmatpush.msra.mxu0 %v3120_v2  ;;  %v4348_v2 = vld [vmem:[%s6728_s12 + $0x138] sm:$0xff]  ;;  %v4314_v10 = vld [vmem:[%s6728_s12 + $0x40] sm:$0xff] }
0x123d   :  { %4303 = vmatmul.msk.f32.vlgmr.msra.gmra.mxu0 %vm711_vm6, %v4302_v11 }
0x123e   :  { %3333 = vmatpush.msrb.mxu0 %v4321_v62 }
0x123f   :  { %v3221_v12 = vpop.xlane.xlu0 %3220 }
0x1240   :  { %v3225_v60 = vsub.f32 %v3112_v49, %v3221_v12  ;;  %3334 = vmatpush.msrb.mxu0 %v4320_v36  ;;  %v3285_v49 = vld [vmem:[%s6728_s12 + $0x18] sm:$0xff]  ;;  %v4323_v12 = vld [vmem:[%s6728_s12 + $0x80] sm:$0xff] }
0x1241   :  { %3305 = vmatpush.msra.mxu2 %v3285_v49  ;;  %v4371_v49 = vld [vmem:[%s6728_s12 + $0x1d8] sm:$0xff] }
0x1242   :  { %v4657_v0 = vpop.eup %4656  ;;  %v3227_v14 = vmul.f32 1.442695, %v3225_v60  ;;  %3335 = vmatpush.msrb.mxu0 %v4319_v40  ;;  %v4332_v60 = vld [vmem:[%s6728_s12 + $0xc0] sm:$0xff] }
0x1243   :  { %v3234_v23 = vsel %vm694_vm4, %v4657_v0, 0.0  ;;  %3306 = vmatpush.msra.mxu2 %v3284_v53  ;;  %v4370_v53 = vld [vmem:[%s6728_s12 + $0x1d0] sm:$0xff] }
0x1244   :  { %4658 = vpow2.f32 %v3227_v14  ;;  %3235 = vadd.xlane.f32.xlu0 %v3234_v23  ;;  %3336 = vmatpush.msrb.mxu0 %v4318_v47  ;;  %v4357_v14 = vld [vmem:[%s6728_s12 + $0x178] sm:$0xff] }
0x1245   :  { %3307 = vmatpush.msra.mxu2 %v3283_v57  ;;  %v4353_v47 = vld [vmem:[%s6728_s12 + $0x158] sm:$0xff]  ;;  %v4369_v57 = vld [vmem:[%s6728_s12 + $0x1c8] sm:$0xff] }
0x1246   :  { %3337 = vmatpush.msrb.mxu0 %v4317_v51  ;;  %v4352_v51 = vld [vmem:[%s6728_s12 + $0x150] sm:$0xff] }
0x1247   :  { %3308 = vmatpush.msra.mxu2 %v3282_v4 }
0x1248   :  { %3338 = vmatpush.msrb.mxu0 %v4316_v55  ;;  %v4351_v55 = vld [vmem:[%s6728_s12 + $0x148] sm:$0xff] }
0x1249   :  { %3429 = vmatpush.msrb.mxu2 %v4348_v2 }
0x124a   :  { %v4659_v17 = vpop.eup %4658  ;;  %3339 = vmatpush.msrb.mxu0 %v4315_v59  ;;  %v4359_v59 = vld [vmem:[%s6728_s12 + $0x180] sm:$0xff] }
0x124b   :  { %v3231_v22 = vsel %vm694_vm4, %v4659_v17, 0.0 }
0x124c   :  { %3232 = vadd.xlane.f32.xlu0 %v3231_v22  ;;  %3340 = vmatpush.msrb.mxu0 %v4314_v10  ;;  %v4375_v22 = vld [vmem:[%s6728_s12 + $0x1f8] sm:$0xff] }
0x124e   :  { %3461 = vmatpush.msra.mxu0 %v4357_v14  ;;  %v4392_v14 = vld [vmem:[%s6728_s12 + $0x270] sm:$0xff] }
0x12b7   :  { %v3236_v15 = vpop.xlane.xlu0 %3235 }
0x12b8   :  { %4660 = vrcp.f32 %v3236_v15 }
0x12ba   :  { %v3143_v16 = vpop.f32.mrf.mxu0 }
0x12bb   :  { %v3146_v45 = vmax.f32 %v3143_v16, 0.0  ;;  %v4346_v16 = vld [vmem:[%s6728_s12 + $0x128] sm:$0xff] }
0x12bd   :  { %4306 = vmatpush.msk.msra.mxu1 %vm745_vm7, %v3146_v45  ;;  %v4356_v45 = vld [vmem:[%s6728_s12 + $0x170] sm:$0xff] }
0x12be   :  { %v4661_v19 = vpop.eup %4660  ;;  %4307 = vmatmul.msk.f32.vlgmr.msra.gmra.mxu1 %vm738_vm8, %v4304_v7  ;;  %3462 = vmatpush.msra.mxu0 %v4356_v45  ;;  %v4409_v45 = vld [vmem:[%s6728_s12 + $0x2e8] sm:$0xff] }
0x12bf   :  { %v3233_v63 = vpop.xlane.xlu0 %3232  ;;  %v3240_v1 = vmul.f32 %v4661_v19, %v4657_v0  ;;  %3365 = vmatpush.msrb.mxu1 %v4330_v34  ;;  %v4347_v0 = vld [vmem:[%s6728_s12 + $0x130] sm:$0xff] }
0x12c0   :  { %4662 = vrcp.f32 %v3233_v63  ;;  %3430 = vmatpush.msrb.mxu2 %v4347_v0  ;;  %v4365_v63 = vld [vmem:[%s6728_s12 + $0x1b0] sm:$0xff]  ;;  %v4382_v0 = vld [vmem:[%s6728_s12 + $0x228] sm:$0xff] }
0x12c1   :  { %3259 = vmatpush.msrb.mxu3 %v3240_v1  ;;  %3366 = vmatpush.msrb.mxu1 %v4329_v38  ;;  %v4374_v1 = vld [vmem:[%s6728_s12 + $0x1f0] sm:$0xff] }
0x12c2   :  { %3431 = vmatpush.msrb.mxu2 %v4346_v16  ;;  %v4400_v16 = vld [vmem:[%s6728_s12 + $0x2a8] sm:$0xff] }
0x12c3   :  { %3367 = vmatpush.msrb.mxu1 %v4328_v44 }
0x12c5   :  { %3368 = vmatpush.msrb.mxu1 %v4327_v48  ;;  %v4362_v48 = vld [vmem:[%s6728_s12 + $0x198] sm:$0xff] }
0x12c6   :  { %v4663_v21 = vpop.eup %4662  ;;  %4308 = vmatmul.msk.f32.gmra.mxu1 %vm738_vm8, %v4305_v13  ;;  %v4345_v13 = vld [vmem:[%s6728_s12 + $0x120] sm:$0xff] }
0x12c7   :  { %v3239_v24 = vmul.f32 %v4663_v21, %v4659_v17  ;;  %3369 = vmatpush.msrb.mxu1 %v4326_v52  ;;  %v4366_v17 = vld [vmem:[%s6728_s12 + $0x1b8] sm:$0xff]  ;;  %v4355_v21 = vld [vmem:[%s6728_s12 + $0x168] sm:$0xff]  ;;  %3432 = vmatpush.msrb.mxu2 %v4345_v13  ;;  %v4361_v52 = vld [vmem:[%s6728_s12 + $0x190] sm:$0xff] }
0x12c8   :  { %3463 = vmatpush.msra.mxu0 %v4355_v21  ;;  %v4399_v13 = vld [vmem:[%s6728_s12 + $0x2a0] sm:$0xff] }
0x12c9   :  { %3260 = vmatpush.msrb.mxu3 %v3239_v24  ;;  %3370 = vmatpush.msrb.mxu1 %v4325_v56  ;;  %v4360_v56 = vld [vmem:[%s6728_s12 + $0x188] sm:$0xff]  ;;  %v4408_v21 = vld [vmem:[%s6728_s12 + $0x2e0] sm:$0xff] }
0x12ca   :  { %4312 = vmatmul.msk.f32.vlgmr.msrb.gmra.mxu3 %vm711_vm6, %v4311_v25  ;;  %3433 = vmatpush.msrb.mxu2 %v4344_v33  ;;  %v4389_v33 = vld [vmem:[%s6728_s12 + $0x258] sm:$0xff] }
0x12cb   :  { %3397 = vmatpush.msra.mxu3 %v4339_v35  ;;  %3371 = vmatpush.msrb.mxu1 %v4324_v61  ;;  %v4354_v35 = vld [vmem:[%s6728_s12 + $0x160] sm:$0xff] }
0x12cc   :  { %3464 = vmatpush.msra.mxu0 %v4354_v35  ;;  %v4368_v61 = vld [vmem:[%s6728_s12 + $0x1c0] sm:$0xff]  ;;  %v4388_v35 = vld [vmem:[%s6728_s12 + $0x250] sm:$0xff] }
0x12cd   :  { %3398 = vmatpush.msra.mxu3 %v4338_v29  ;;  %3372 = vmatpush.msrb.mxu1 %v4323_v12  ;;  %v4383_v12 = vld [vmem:[%s6728_s12 + $0x230] sm:$0xff] }
0x12ce   :  { %3465 = vmatpush.msra.mxu0 %v4353_v47  ;;  %v4429_v47 = vld [vmem:[%s6728_s12 + $0x378] sm:$0xff] }
0x12cf   :  { %3399 = vmatpush.msra.mxu3 %v4337_v18  ;;  %3493 = vmatpush.msra.mxu1 %v4366_v17  ;;  %v4410_v17 = vld [vmem:[%s6728_s12 + $0x2f0] sm:$0xff] }
0x12d0   :  { %3466 = vmatpush.msra.mxu0 %v4352_v51 }
0x12d1   :  { %3400 = vmatpush.msra.mxu3 %v4336_v50  ;;  %3494 = vmatpush.msra.mxu1 %v4365_v63  ;;  %v4342_v50 = vld [vmem:[%s6728_s12 + $0x108] sm:$0xff]  ;;  %v4380_v63 = vld [vmem:[%s6728_s12 + $0x218] sm:$0xff] }
0x12d2   :  { %3467 = vmatpush.msra.mxu0 %v4351_v55  ;;  %v4437_v55 = vld [vmem:[%s6728_s12 + $0x3b0] sm:$0xff] }
0x12d3   :  { %3401 = vmatpush.msra.mxu3 %v4335_v54  ;;  %v4341_v54 = vld [vmem:[%s6728_s12 + $0x100] sm:$0xff] }
0x12d5   :  { %3402 = vmatpush.msra.mxu3 %v4334_v58  ;;  %v4350_v58 = vld [vmem:[%s6728_s12 + $0x140] sm:$0xff] }
0x12d6   :  { %3468 = vmatpush.msra.mxu0 %v4350_v58  ;;  %v4427_v58 = vld [vmem:[%s6728_s12 + $0x368] sm:$0xff] }
0x12d7   :  { %3403 = vmatpush.msra.mxu3 %v4333_v5 }
0x12d9   :  { %3404 = vmatpush.msra.mxu3 %v4332_v60  ;;  %v4411_v60 = vld [vmem:[%s6728_s12 + $0x2f8] sm:$0xff] }
0x12db   :  { %3525 = vmatpush.msrb.mxu3 %v4375_v22  ;;  %v4381_v22 = vld [vmem:[%s6728_s12 + $0x220] sm:$0xff] }
0x12dd   :  { %3526 = vmatpush.msrb.mxu3 %v4374_v1  ;;  %v4390_v1 = vld [vmem:[%s6728_s12 + $0x260] sm:$0xff] }
0x133b   :  { %v3175_v28 = vpop.f32.mrf.mxu1 }
0x133c   :  { %v4309_v30 = vmul.f32 -1.442695, %v3175_v28  ;;  %v4364_v28 = vld [vmem:[%s6728_s12 + $0x1a8] sm:$0xff] }
0x133d   :  { %3495 = vmatpush.msra.mxu1 %v4364_v28 }
0x133e   :  { %4664 = vpow2.f32 %v4309_v30  ;;  %v4373_v30 = vld [vmem:[%s6728_s12 + $0x1e8] sm:$0xff] }
0x133f   :  { %3527 = vmatpush.msrb.mxu3 %v4373_v30  ;;  %3496 = vmatpush.msra.mxu1 %v4363_v31  ;;  %v4397_v31 = vld [vmem:[%s6728_s12 + $0x290] sm:$0xff] }
0x1341   :  { %3497 = vmatpush.msra.mxu1 %v4362_v48  ;;  %v4438_v48 = vld [vmem:[%s6728_s12 + $0x3b8] sm:$0xff] }
0x1343   :  { %v3178_v37 = vpop.f32.mrf.mxu1  ;;  %3498 = vmatpush.msra.mxu1 %v4361_v52  ;;  %v4418_v52 = vld [vmem:[%s6728_s12 + $0x328] sm:$0xff] }
0x1344   :  { %v4665_v41 = vpop.eup %4664  ;;  %v4310_v42 = vmul.f32 -1.442695, %v3178_v37  ;;  %v4372_v37 = vld [vmem:[%s6728_s12 + $0x1e0] sm:$0xff] }
0x1345   :  { %v6254_v9 = vadd.f32 1.0, %v4665_v41  ;;  %3528 = vmatpush.msrb.mxu3 %v4372_v37  ;;  %3499 = vmatpush.msra.mxu1 %v4360_v56  ;;  %v4377_v37 = vld [vmem:[%s6728_s12 + $0x200] sm:$0xff]  ;;  %v4446_v56 = vld [vmem:[%s6728_s12 + $0x3f0] sm:$0xff] }
0x1346   :  { %4666 = vpow2.f32 %v4310_v42 }
0x1347   :  { %4668 = vrcp.f32 %v6254_v9  ;;  %v3200_v15 = vand.u32 2147483648, %v6254_v9  ;;  %v3198_v19 = vand.u32 2147483647, %v6254_v9  ;;  %vm3194_vm7 = vweird.f32 %v6254_v9  ;;  %3529 = vmatpush.msrb.mxu3 %v4371_v49  ;;  %3500 = vmatpush.msra.mxu1 %v4359_v59  ;;  %v4447_v49 = vld [vmem:[%s6728_s12 + $0x3f8] sm:$0xff]  ;;  %v4436_v59 = vld [vmem:[%s6728_s12 + $0x3a8] sm:$0xff] }
0x1349   :  { %v3201_v32 = vor.u32 1.1754944e-38, %v3200_v15  ;;  %vm3199_vm9 = vcmp.eq.f32.partialorder %v3198_v19, 8.507059e+37  ;;  %3530 = vmatpush.msrb.mxu3 %v4370_v53  ;;  %v4391_v15 = vld [vmem:[%s6728_s12 + $0x268] sm:$0xff] }
0x134b   :  { %3531 = vmatpush.msrb.mxu3 %v4369_v57  ;;  %v4417_v57 = vld [vmem:[%s6728_s12 + $0x320] sm:$0xff] }
0x134c   :  { %v4667_v3 = vpop.eup %4666 }
0x134d   :  { %v4669_v6 = vpop.eup %4668  ;;  %v6305_v8 = vadd.f32 1.0, %v4667_v3  ;;  %3532 = vmatpush.msrb.mxu3 %v4368_v61  ;;  %v4445_v61 = vld [vmem:[%s6728_s12 + $0x3e8] sm:$0xff] }
0x134e   :  { %v3190_v11 = vmul.f32 %v4669_v6, %v6254_v9  ;;  %vm3195_vm6 = vweird.f32 %v4669_v6  ;;  %v4343_v9 = vld [vmem:[%s6728_s12 + $0x110] sm:$0xff] }
0x134f   :  { %4670 = vrcp.f32 %v6305_v8  ;;  %vm3196_vm8 = vmor %vm3194_vm7, %vm3195_vm6  ;;  %v3215_v38 = vand.u32 2147483648, %v6305_v8  ;;  %vm3209_vm0 = vweird.f32 %v6305_v8  ;;  %v3213_v40 = vand.u32 2147483647, %v6305_v8  ;;  %3434 = vmatpush.msrb.mxu2 %v4343_v9  ;;  %v4419_v9 = vld [vmem:[%s6728_s12 + $0x330] sm:$0xff] }
0x1350   :  { %v3191_v23 = vsub.f32 1.0, %v3190_v11 }
0x1351   :  { %v3216_v42 = vor.u32 1.1754944e-38, %v3215_v38  ;;  %vm3214_vm13 = vcmp.eq.f32.partialorder %v3213_v40, 8.507059e+37  ;;  %3435 = vmatpush.msrb.mxu2 %v4342_v50  ;;  %v4406_v38 = vld [vmem:[%s6728_s12 + $0x2d0] sm:$0xff]  ;;  %v4405_v40 = vld [vmem:[%s6728_s12 + $0x2c8] sm:$0xff] }
0x1352   :  { %v3192_v7 = vmul.f32 %v4669_v6, %v3191_v23  ;;  %v4401_v23 = vld [vmem:[%s6728_s12 + $0x2b0] sm:$0xff] }
0x1353   :  { %3436 = vmatpush.msrb.mxu2 %v4341_v54  ;;  %v4428_v54 = vld [vmem:[%s6728_s12 + $0x370] sm:$0xff] }
0x1354   :  { %v3193_v24 = vadd.f32 %v4669_v6, %v3192_v7 }
0x1355   :  { %v4671_v25 = vpop.eup %4670 }
0x1356   :  { %v3197_v62 = vsel %vm3196_vm8, %v4669_v6, %v3193_v24  ;;  %v3205_v34 = vmul.f32 %v4671_v25, %v6305_v8  ;;  %vm3210_vm2 = vweird.f32 %v4671_v25  ;;  %v4384_v8 = vld [vmem:[%s6728_s12 + $0x238] sm:$0xff] }
0x1357   :  { %v3202_v36 = vsel %vm3199_vm9, %v3201_v32, %v3197_v62  ;;  %vm3211_vm12 = vmor %vm3209_vm0, %vm3210_vm2  ;;  %v4398_v62 = vld [vmem:[%s6728_s12 + $0x298] sm:$0xff] }
0x1358   :  { %3267 = vperm.xlu0 %4474, %v3202_v36   ;;  %v3206_v29 = vsub.f32 1.0, %v3205_v34  ;;  %v4378_v34 = vld [vmem:[%s6728_s12 + $0x208] sm:$0xff] }
0x135a   :  { %v3207_v41 = vmul.f32 %v4671_v25, %v3206_v29  ;;  %v4387_v29 = vld [vmem:[%s6728_s12 + $0x248] sm:$0xff] }
0x135c   :  { %v3208_v43 = vadd.f32 %v4671_v25, %v3207_v41  ;;  %v4420_v41 = vld [vmem:[%s6728_s12 + $0x338] sm:$0xff] }
0x135e   :  { %v3212_v44 = vsel %vm3211_vm12, %v4671_v25, %v3208_v43  ;;  %v4379_v25 = vld [vmem:[%s6728_s12 + $0x210] sm:$0xff] }
0x135f   :  { %v3217_v18 = vsel %vm3214_vm13, %v3216_v42, %v3212_v44  ;;  %v4386_v42 = vld [vmem:[%s6728_s12 + $0x240] sm:$0xff] }
0x1360   :  { %3272 = vperm.xlu1 %4475, %v3217_v18   ;;  %v4395_v44 = vld [vmem:[%s6728_s12 + $0x280] sm:$0xff] }
0x1361   :  { %v4404_v18 = vld [vmem:[%s6728_s12 + $0x2c0] sm:$0xff] }
0x13ca   :  { %v3268_v3 = vpop.permute.xlu0 %3267 }
0x13cb   :  { %v3275_v4 = vmul.f32 %v3268_v3, %v6166_v39  ;;  %v4393_v39 = vld [vmem:[%s6728_s12 + $0x278] sm:$0xff] }
0x13cc   :  { %v4416_v3 = vld [vmem:[%s6728_s12 + $0x318] sm:$0xff] }
0x13cd   :  { %v3277_v5 = vadd.f32 %v3275_v4, %v6207_v26  ;;  %v4402_v26 = vld [vmem:[%s6728_s12 + $0x2b8] sm:$0xff]  ;;  %v4426_v4 = vld [vmem:[%s6728_s12 + $0x360] sm:$0xff] }
0x13cf   :  { %v3279_v6 = vmax.f32 %v3277_v5, 0.0  ;;  %v4435_v5 = vld [vmem:[%s6728_s12 + $0x3a0] sm:$0xff] }
0x13d1   :  { %4313 = vmatmul.msk.f32.vlgmr.msra.gmra.mxu2 %vm486_vm3, %v3279_v6  ;;  %v3322_v2 = vrot.slane %v3279_v6, 1  ;;  %v3354_v10 = vrot.slane %v3279_v6, 2  ;;  %v3386_v11 = vrot.slane %v3279_v6, 3  ;;  %v3418_v19 = vrot.slane %v3279_v6, 4 }
0x13d2   :  { %3557 = vmatpush.msra.mxu2 %v4384_v8  ;;  %v3273_v7 = vpop.permute.xlu1 %3272  ;;  %v3450_v28 = vrot.slane %v3279_v6, 5  ;;  %v3482_v30 = vrot.slane %v3279_v6, 6  ;;  %v3514_v32 = vrot.slane %v3279_v6, 7  ;;  %v4444_v6 = vld [vmem:[%s6728_s12 + $0x3e0] sm:$0xff]  ;;  %v4415_v8 = vld [vmem:[%s6728_s12 + $0x310] sm:$0xff] }
0x13d3   :  { %4322 = vmatmul.msk.f32.vlgmr.msrb.gmra.mxu0 %vm486_vm3, %v3322_v2  ;;  %4331 = vmatmul.msk.f32.vlgmr.msrb.gmra.mxu1 %vm486_vm3, %v3354_v10  ;;  %v3276_v24 = vmul.f32 %v3273_v7, %v6172_v46  ;;  %v4407_v46 = vld [vmem:[%s6728_s12 + $0x2d8] sm:$0xff]  ;;  %v4440_v7 = vld [vmem:[%s6728_s12 + $0x3c0] sm:$0xff] }
0x13d4   :  { %4340 = vmatmul.msk.f32.vlgmr.msra.gmra.mxu3 %vm486_vm3, %v3386_v11  ;;  %3558 = vmatpush.msra.mxu2 %v4383_v12  ;;  %v4425_v2 = vld [vmem:[%s6728_s12 + $0x358] sm:$0xff]  ;;  %v4414_v12 = vld [vmem:[%s6728_s12 + $0x308] sm:$0xff] }
0x13d5   :  { %3589 = vmatpush.msrb.mxu0 %v4393_v39  ;;  %3621 = vmatpush.msrb.mxu1 %v4402_v26  ;;  %v3278_v36 = vadd.f32 %v3276_v24, %v6209_v27  ;;  %v4396_v27 = vld [vmem:[%s6728_s12 + $0x288] sm:$0xff]  ;;  %v4434_v10 = vld [vmem:[%s6728_s12 + $0x398] sm:$0xff]  ;;  %v4424_v39 = vld [vmem:[%s6728_s12 + $0x350] sm:$0xff] }
0x13d6   :  { %3653 = vmatpush.msra.mxu3 %v4411_v60  ;;  %3559 = vmatpush.msra.mxu2 %v4382_v0  ;;  %v4443_v11 = vld [vmem:[%s6728_s12 + $0x3d8] sm:$0xff]  ;;  %v4433_v26 = vld [vmem:[%s6728_s12 + $0x390] sm:$0xff]  ;;  %v4413_v0 = vld [vmem:[%s6728_s12 + $0x300] sm:$0xff] }
0x13d7   :  { %3590 = vmatpush.msrb.mxu0 %v4392_v14  ;;  %3622 = vmatpush.msrb.mxu1 %v4401_v23  ;;  %v6527_v43 = vmax.f32 %v3278_v36, 0.0  ;;  %v4442_v60 = vld [vmem:[%s6728_s12 + $0x3d0] sm:$0xff]  ;;  %v4423_v14 = vld [vmem:[%s6728_s12 + $0x348] sm:$0xff] }
0x13d8   :  { %3654 = vmatpush.msra.mxu3 %v4410_v17  ;;  %3560 = vmatpush.msra.mxu2 %v4381_v22  ;;  %v4432_v23 = vld [vmem:[%s6728_s12 + $0x388] sm:$0xff] }
0x13d9   :  { %3591 = vmatpush.msrb.mxu0 %v4391_v15  ;;  %3623 = vmatpush.msrb.mxu1 %v4400_v16  ;;  %v3578_v50 = vrot.slane %v6527_v43, 1  ;;  %v3610_v51 = vrot.slane %v6527_v43, 2  ;;  %v3642_v53 = vrot.slane %v6527_v43, 3  ;;  %v4441_v17 = vld [vmem:[%s6728_s12 + $0x3c8] sm:$0xff]  ;;  %v3674_v22 = vrot.slane %v6527_v43, 4  ;;  %v3800_v15 = vld [vmem:[%s6730_s14 + $0x20] sm:$0xff] }
0x13da   :  { %3655 = vmatpush.msra.mxu3 %v4409_v45  ;;  %4349 = vmatmul.msk.f32.vlgmr.msrb.gmra.mxu2 %vm486_vm3, %v3418_v19  ;;  %v4422_v16 = vld [vmem:[%s6728_s12 + $0x340] sm:$0xff]  ;;  %v3706_v19 = vrot.slane %v6527_v43, 5  ;;  %v3797_v24 = vld [vmem:[%s6730_s14 + $0x8] sm:$0xff] }
0x13db   :  { %3561 = vmatpush.msra.mxu2 %v4380_v63  ;;  %3592 = vmatpush.msrb.mxu0 %v4390_v1  ;;  %v4431_v45 = vld [vmem:[%s6728_s12 + $0x380] sm:$0xff]  ;;  %v3738_v63 = vrot.slane %v6527_v43, 6  ;;  %v3799_v1 = vld [vmem:[%s6730_s14 + $0x18] sm:$0xff] }
0x13dc   :  { %3624 = vmatpush.msrb.mxu1 %v4399_v13  ;;  %3656 = vmatpush.msra.mxu3 %v4408_v21  ;;  %v3770_v13 = vrot.slane %v6527_v43, 7  ;;  %v3798_v21 = vld [vmem:[%s6730_s14 + $0x10] sm:$0xff] }
0x13dd   :  { %4358 = vmatmul.msk.f32.vlgmr.msra.gmra.mxu0 %vm486_vm3, %v3450_v28  ;;  %4367 = vmatmul.msk.f32.vlgmr.msra.gmra.mxu1 %vm486_vm3, %v3482_v30  ;;  %v3796_v28 = vld [vmem:[%s6730_s14] sm:$0xff]  ;;  %v3795_v30 = vmax.f32 %v6164_v20, 0.0  ;;  %v3827_v20 = vld [vmem:[%s6730_s14 + $0x30] sm:$0xff] }
0x13de   :  { %4376 = vmatmul.msk.f32.vlgmr.msrb.gmra.mxu3 %vm486_vm3, %v3514_v32  ;;  %3562 = vmatpush.msra.mxu2 %v4379_v25  ;;  %v3830_v25 = vld [vmem:[%s6730_s14 + $0x48] sm:$0xff]  ;;  %v3829_v32 = vld [vmem:[%s6730_s14 + $0x40] sm:$0xff] }
0x13df   :  { %3593 = vmatpush.msrb.mxu0 %v4389_v33  ;;  %3625 = vmatpush.msrb.mxu1 %v4398_v62  ;;  %v3828_v33 = vld [vmem:[%s6730_s14 + $0x38] sm:$0xff]  ;;  %v3262_v62 = vpop.f32.mrf.mxu3 }
0x13e0   :  { %3657 = vmatpush.msra.mxu3 %v4407_v46  ;;  %3563 = vmatpush.msra.mxu2 %v4378_v34  ;;  %v3825_v46 = vmax.f32 %v3262_v62, 0.0  ;;  %v3826_v34 = vld [vmem:[%s6730_s14 + $0x28] sm:$0xff] }
0x13e1   :  { %3594 = vmatpush.msrb.mxu0 %v4388_v35  ;;  %3626 = vmatpush.msrb.mxu1 %v4397_v31  ;;  %v3281_v35 = vld [vmem:[%s6729_s13] sm:$0x1] }
0x13e2   :  { %3658 = vmatpush.msra.mxu3 %v4406_v38  ;;  %3564 = vmatpush.msra.mxu2 %v4377_v37 }
0x13e3   :  { %3595 = vmatpush.msrb.mxu0 %v4387_v29  ;;  %3627 = vmatpush.msrb.mxu1 %v4396_v27 }
0x13e4   :  { %3659 = vmatpush.msra.mxu3 %v4405_v40  ;;  %3685 = vmatpush.msrb.mxu2 %v4420_v41 }
0x13e5   :  { %4385 = vmatmul.msk.f32.vlgmr.msra.gmra.mxu2 %vm486_vm3, %v6527_v43  ;;  %3596 = vmatpush.msrb.mxu0 %v4386_v42 }
0x13e6   :  { %3628 = vmatpush.msrb.mxu1 %v4395_v44  ;;  %3660 = vmatpush.msra.mxu3 %v4404_v18  ;;  %v3860_v18 = vld [vmem:[%s6732_s16 + $0x18] sm:$0xff] }
0x13e7   :  { %3686 = vmatpush.msrb.mxu2 %v4419_v9  ;;  %3717 = vmatpush.msra.mxu0 %v4429_v47  ;;  %v3859_v47 = vld [vmem:[%s6732_s16 + $0x10] sm:$0xff] }
0x13e8   :  { %3749 = vmatpush.msra.mxu1 %v4438_v48  ;;  %3781 = vmatpush.msrb.mxu3 %v4447_v49  ;;  %v3858_v48 = vld [vmem:[%s6732_s16 + $0x8] sm:$0xff] }
0x13e9   :  { %4394 = vmatmul.msk.f32.vlgmr.msrb.gmra.mxu0 %vm486_vm3, %v3578_v50  ;;  %4403 = vmatmul.msk.f32.vlgmr.msrb.gmra.mxu1 %vm486_vm3, %v3610_v51  ;;  %v3857_v51 = vld [vmem:[%s6732_s16] sm:$0xff] }
0x13ea   :  { %4412 = vmatmul.msk.f32.vlgmr.msra.gmra.mxu3 %vm486_vm3, %v3642_v53  ;;  %3687 = vmatpush.msrb.mxu2 %v4418_v52  ;;  %v3889_v52 = vld [vmem:[%s6732_s16 + $0x38] sm:$0xff] }
0x13eb   :  { %3718 = vmatpush.msra.mxu0 %v4428_v54  ;;  %3750 = vmatpush.msra.mxu1 %v4437_v55 }
0x13ec   :  { %3782 = vmatpush.msrb.mxu3 %v4446_v56  ;;  %3688 = vmatpush.msrb.mxu2 %v4417_v57  ;;  %v3888_v57 = vld [vmem:[%s6732_s16 + $0x30] sm:$0xff] }
0x13ed   :  { %3719 = vmatpush.msra.mxu0 %v4427_v58  ;;  %3751 = vmatpush.msra.mxu1 %v4436_v59  ;;  %v3887_v59 = vld [vmem:[%s6732_s16 + $0x28] sm:$0xff] }
0x13ee   :  { %3783 = vmatpush.msrb.mxu3 %v4445_v61  ;;  %3689 = vmatpush.msrb.mxu2 %v4416_v3  ;;  %v3886_v3 = vld [vmem:[%s6732_s16 + $0x20] sm:$0xff] }
0x13ef   :  { %3720 = vmatpush.msra.mxu0 %v4426_v4  ;;  %3752 = vmatpush.msra.mxu1 %v4435_v5 }
0x13f0   :  { %3784 = vmatpush.msrb.mxu3 %v4444_v6  ;;  %3690 = vmatpush.msrb.mxu2 %v4415_v8 }
0x13f1   :  { %3721 = vmatpush.msra.mxu0 %v4425_v2  ;;  %3753 = vmatpush.msra.mxu1 %v4434_v10 }
0x13f2   :  { %3785 = vmatpush.msrb.mxu3 %v4443_v11  ;;  %3691 = vmatpush.msrb.mxu2 %v4414_v12 }
0x13f3   :  { %3722 = vmatpush.msra.mxu0 %v4424_v39  ;;  %3754 = vmatpush.msra.mxu1 %v4433_v26 }
0x13f4   :  { %3786 = vmatpush.msrb.mxu3 %v4442_v60  ;;  %3692 = vmatpush.msrb.mxu2 %v4413_v0 }
0x13f5   :  { %3723 = vmatpush.msra.mxu0 %v4423_v14  ;;  %3755 = vmatpush.msra.mxu1 %v4432_v23 }
0x13f6   :  { %3787 = vmatpush.msrb.mxu3 %v4441_v17  ;;  %4421 = vmatmul.msk.f32.vlgmr.msrb.gmra.mxu2 %vm486_vm3, %v3674_v22  ;;  %v3794_v17 = vld [vmem:[%s6731_s15] sm:$0x1] }
0x13f7   :  { %3815 = vmatpush.msra.mxu2 %v3800_v15  ;;  %3724 = vmatpush.msra.mxu0 %v4422_v16 }
0x13f8   :  { %3756 = vmatpush.msra.mxu1 %v4431_v45  ;;  %3788 = vmatpush.msrb.mxu3 %v4440_v7  ;;  %v3855_v7 = vld [vmem:[%s6733_s17] sm:$0x1] }
0x13f9   :  { %4430 = vmatmul.msk.f32.vlgmr.msra.gmra.mxu0 %vm486_vm3, %v3706_v19  ;;  %4439 = vmatmul.msk.f32.vlgmr.msra.gmra.mxu1 %vm486_vm3, %v3738_v63 }
0x13fa   :  { %4448 = vmatmul.msk.f32.vlgmr.msrb.gmra.mxu3 %vm486_vm3, %v3770_v13  ;;  %3816 = vmatpush.msra.mxu2 %v3799_v1 }
0x13fb   :  { %3876 = vmatpush.msrb.mxu0 %v3860_v18  ;;  %3905 = vmatpush.msrb.mxu1 %v3889_v52 }
0x13fc   :  { %3817 = vmatpush.msra.mxu2 %v3798_v21 }
0x13fd   :  { %3877 = vmatpush.msrb.mxu0 %v3859_v47  ;;  %3906 = vmatpush.msrb.mxu1 %v3888_v57 }
0x13fe   :  { %3818 = vmatpush.msra.mxu2 %v3797_v24 }
0x13ff   :  { %3878 = vmatpush.msrb.mxu0 %v3858_v48  ;;  %3907 = vmatpush.msrb.mxu1 %v3887_v59 }
0x1400   :  { %3819 = vmatpush.msra.mxu2 %v3796_v28 }
0x1401   :  { %4449 = vmatmul.msk.f32.vlgmr.msra.gmra.mxu2 %vm694_vm4, %v3795_v30  ;;  %3879 = vmatpush.msrb.mxu0 %v3857_v51 }
0x1402   :  { %3845 = vmatpush.msrb.mxu2 %v3830_v25  ;;  %3908 = vmatpush.msrb.mxu1 %v3886_v3 }
0x1404   :  { %3846 = vmatpush.msrb.mxu2 %v3829_v32 }
0x1406   :  { %3847 = vmatpush.msrb.mxu2 %v3828_v33 }
0x1408   :  { %3848 = vmatpush.msrb.mxu2 %v3827_v20 }
0x140a   :  { %3849 = vmatpush.msrb.mxu2 %v3826_v34 }
0x140b   :  { %4450 = vmatmul.msk.f32.vlgmr.msrb.gmra.mxu2 %vm694_vm4, %v3825_v46 }
0x1450   :  { %v3342_v36 = vpop.f32.mrf.mxu0  ;;  %v3374_v29 = vpop.f32.mrf.mxu1 }
0x1454   :  { %v3310_v31 = vpop.f32.mrf.mxu2 }
0x1455   :  { %v3313_v38 = vadd.f32 %v3310_v31, %v3281_v35 }
0x1457   :  { %v3345_v37 = vadd.f32 %v3342_v36, %v3313_v38  ;;  %v3406_v40 = vpop.f32.mrf.mxu3 }
0x1459   :  { %v3377_v27 = vadd.f32 %v3374_v29, %v3345_v37 }
0x145a   :  { %v3470_v44 = vpop.f32.mrf.mxu0  ;;  %v3502_v49 = vpop.f32.mrf.mxu1 }
0x145b   :  { %v3409_v41 = vadd.f32 %v3406_v40, %v3377_v27 }
0x145d   :  { %v3438_v42 = vpop.f32.mrf.mxu2 }
0x145e   :  { %v3441_v43 = vadd.f32 %v3438_v42, %v3409_v41 }
0x1460   :  { %v3473_v9 = vadd.f32 %v3470_v44, %v3441_v43 }
0x1461   :  { %v3534_v53 = vpop.f32.mrf.mxu3 }
0x1462   :  { %v3505_v50 = vadd.f32 %v3502_v49, %v3473_v9 }
0x1464   :  { %v3537_v54 = vadd.f32 %v3534_v53, %v3505_v50 }
0x1466   :  { %v3598_v58 = vpop.f32.mrf.mxu0  ;;  %v3630_v4 = vpop.f32.mrf.mxu1 }
0x1468   :  { %v3566_v55 = vpop.f32.mrf.mxu2 }
0x1469   :  { %v3569_v56 = vadd.f32 %v3566_v55, %v3537_v54 }
0x146b   :  { %v3601_v61 = vadd.f32 %v3598_v58, %v3569_v56 }
0x146d   :  { %v3633_v5 = vadd.f32 %v3630_v4, %v3601_v61  ;;  %v3662_v6 = vpop.f32.mrf.mxu3 }
0x146f   :  { %v3665_v8 = vadd.f32 %v3662_v6, %v3633_v5 }
0x1476   :  { %v3726_v11 = vpop.f32.mrf.mxu0  ;;  %v3758_v39 = vpop.f32.mrf.mxu1 }
0x1479   :  { %v3694_v2 = vpop.f32.mrf.mxu2 }
0x147a   :  { %v3697_v10 = vadd.f32 %v3694_v2, %v3665_v8 }
0x147c   :  { %v3729_v12 = vadd.f32 %v3726_v11, %v3697_v10 }
0x147d   :  { %v3790_v60 = vpop.f32.mrf.mxu3 }
0x147e   :  { %v3761_v26 = vadd.f32 %v3758_v39, %v3729_v12 }
0x1480   :  { %v3793_v0 = vadd.f32 %v3790_v60, %v3761_v26 }
0x1482   :  { %v3856_v14 = vmax.f32 %v3793_v0, 0.0 }
0x1484   :  { %v3821_v23 = vpop.f32.mrf.mxu2  ;;  %4451 = vmatmul.msk.f32.vlgmr.msrb.gmra.mxu0 %vm1964_vm10, %v3856_v14 }
0x1485   :  { %v3824_v22 = vadd.f32 %v3821_v23, %v3794_v17 }
0x148e   :  { %v3851_v15 = vpop.f32.mrf.mxu2 }
0x148f   :  { %v3854_v16 = vadd.f32 %v3851_v15, %v3824_v22 }
0x1491   :  { %v3885_v45 = vmax.f32 %v3854_v16, 0.0 }
0x1493   :  { %4452 = vmatmul.msk.f32.vlgmr.msrb.gmra.mxu1 %vm1964_vm10, %v3885_v45 }
0x1501   :  { %v3881_v19 = vpop.f32.mrf.mxu0 }
0x1502   :  { %v3884_v63 = vadd.f32 %v3881_v19, %v3855_v7 }
0x1510   :  { %v3910_v1 = vpop.f32.mrf.mxu1 }
0x1511   :  { %v3913_v13 = vadd.f32 %v3910_v1, %v3884_v63 }
0x1513   :  { %3914 = vst.msk [vmem:[#allocation4 + $0x1] sm:$0x1] %vm2018_vm11, %v3913_v13 }
0x1514   :  { %3925 = dma.vmem_to_hbm [thread:$0]  %s3921_s9, 32, %s3923_s22, [#allocation5]  }
0x1515   :  { %4696 = dma.done.wait [#allocation5], 32  }
0x1516   :  { %4697 = vsyncadd [#allocation5], 4294967264 }
0x1517   :  { %3930 = vsyncpa [#allocation5], 1 }

</bundles_post_ra>
